<compile_context>
chip_gen: v5e
topology: v5e:2x2
jax: 0.10.0
libtpu: 0.0.40
codegen_flags: <defaults>
</compile_context>

<pallas_src>
import functools

import jax
import jax.numpy as jnp
from jax import lax
from jax.experimental import pallas as pl
from jax.experimental.pallas import tpu as pltpu


def _resblock_kernel(x_ref, w1_ref, w2_ref, o_ref,
                     xpad_ref, mid_ref, patch_ref, *, res_scale, compute_dtype):
    """One batch element per grid step.

    x_ref    : (1, H, W, C)   input tile (NHWC)
    w1_ref   : (9*C, C)       conv1 weights, rows ordered (ky, kx, cin)
    w2_ref   : (9*C, C)       conv2 weights
    o_ref    : (1, H, W, C)   output tile
    xpad_ref : (H+2, W+2, C)  VMEM scratch: zero-padded input
    mid_ref  : (H+2, W+2, C)  VMEM scratch: zero-padded ReLU(conv1)
    patch_ref: (H*W, 9*C)     VMEM scratch: im2col patch (reused by both convs)
    """
    _, H, W, C = x_ref.shape
    f32 = jnp.float32

    def zero_border(ref):
        # Re-zero only the 1-pixel halo strips (a few KB) every step, never the full
        # scratch.  We deliberately do NOT guard this with pl.when(program_id == 0):
        # with a "parallel" grid axis each TensorCore owns its own scratch and its
        # own sub-range of program ids, so a program_id==0 guard would leave the
        # second core's halo uninitialized.
        ref[0:1, :, :] = jnp.zeros((1, W + 2, C), ref.dtype)
        ref[H + 1:H + 2, :, :] = jnp.zeros((1, W + 2, C), ref.dtype)
        ref[:, 0:1, :] = jnp.zeros((H + 2, 1, C), ref.dtype)
        ref[:, W + 1:W + 2, :] = jnp.zeros((H + 2, 1, C), ref.dtype)

    def im2col(src_ref):
        # Build the (H*W, 9*C) patch: column block k = ky*3+kx holds the
        # (ky, kx)-shifted window, channels contiguous within each block (this
        # matches the (ky, kx, cin) row ordering of the weight matrices).
        for k in range(9):
            dy, dx = divmod(k, 3)
            tap = src_ref[dy:dy + H, dx:dx + W, :].reshape(H * W, C)
            patch_ref[:, k * C:(k + 1) * C] = tap.astype(compute_dtype)

    # ---- zero halo + copy input interior into the padded scratch ----
    zero_border(xpad_ref)
    xpad_ref[1:H + 1, 1:W + 1, :] = x_ref[0]

    # ---- conv1: single K = 9*C MXU matmul ----
    im2col(xpad_ref)
    acc1 = jnp.dot(patch_ref[...], w1_ref[...], preferred_element_type=f32)

    # ---- ReLU, write into padded mid scratch ----
    zero_border(mid_ref)
    mid_ref[1:H + 1, 1:W + 1, :] = jnp.maximum(acc1, 0.0).reshape(H, W, C)

    # ---- conv2: single K = 9*C MXU matmul ----
    im2col(mid_ref)
    acc2 = jnp.dot(patch_ref[...], w2_ref[...], preferred_element_type=f32)

    # ---- residual scale & add, lane-dense store (C is the minor axis) ----
    out = acc2 * res_scale + x_ref[0].reshape(H * W, C).astype(f32)
    o_ref[0] = out.reshape(H, W, C).astype(o_ref.dtype)


def resblock_pallas_nhwc(x_nhwc, w1_oihw, w2_oihw, res_scale=0.1,
                         compute_dtype=jnp.float32):
    """NHWC-native entry point (no layout transposes)."""
    N, H, W, C = x_nhwc.shape
    assert w1_oihw.shape == (C, C, 3, 3) and w2_oihw.shape == (C, C, 3, 3)

    # OIHW -> ((ky*3+kx)*Cin + cin, Cout) = (9*C, C): one im2col matmul per conv.
    def prep_w(w):
        return jnp.transpose(w, (2, 3, 1, 0)).reshape(9 * C, C).astype(compute_dtype)

    w1 = prep_w(w1_oihw)
    w2 = prep_w(w2_oihw)

    kernel = functools.partial(_resblock_kernel, res_scale=res_scale,
                               compute_dtype=compute_dtype)

    return pl.pallas_call(
        kernel,
        out_shape=jax.ShapeDtypeStruct((N, H, W, C), x_nhwc.dtype),
        grid_spec=pltpu.PrefetchScalarGridSpec(
            num_scalar_prefetch=0,
            grid=(N,),
            in_specs=[
                pl.BlockSpec((1, H, W, C), lambda n: (n, 0, 0, 0)),
                pl.BlockSpec((9 * C, C), lambda n: (0, 0)),
                pl.BlockSpec((9 * C, C), lambda n: (0, 0)),
            ],
            out_specs=pl.BlockSpec((1, H, W, C), lambda n: (n, 0, 0, 0)),
            scratch_shapes=[
                pltpu.VMEM((H + 2, W + 2, C), x_nhwc.dtype),   # padded input
                pltpu.VMEM((H + 2, W + 2, C), jnp.float32),    # padded ReLU(conv1)
                pltpu.VMEM((H * W, 9 * C), compute_dtype),     # im2col patch (reused)
            ],
        ),
        compiler_params=pltpu.CompilerParams(
            dimension_semantics=("parallel",)),
    )(x_nhwc, w1, w2)


def resblock_pallas(x_nchw, w1_oihw, w2_oihw, res_scale=0.1,
                    compute_dtype=jnp.float32):
    """PyTorch-convention wrapper: x (N, F, H, W) float32, weights (F, F, 3, 3)."""
    # TODO(synk): keep activations NHWC across the whole DSen2-CR network so these
    # two transposes (full HBM round trips) are paid once, not per ResBlock.
    x_nhwc = jnp.transpose(x_nchw, (0, 2, 3, 1))
    out_nhwc = resblock_pallas_nhwc(x_nhwc, w1_oihw, w2_oihw, res_scale,
                                    compute_dtype)
    return jnp.transpose(out_nhwc, (0, 3, 1, 2))


def resblock_reference(x_nchw, w1_oihw, w2_oihw, res_scale=0.1):
    dn = ("NCHW", "OIHW", "NCHW")
    h = lax.conv_general_dilated(x_nchw, w1_oihw, window_strides=(1, 1),
                                 padding="SAME", dimension_numbers=dn)
    h = jnp.maximum(h, 0.0)
    h = lax.conv_general_dilated(h, w2_oihw, window_strides=(1, 1),
                                 padding="SAME", dimension_numbers=dn)
    return h * res_scale + x_nchw


if __name__ == "__main__":
    # Small-but-representative config: channels are a multiple of 128 so the lane
    # axis is dense, as in the real model (F=256).  N=2 -> two parallel grid steps.
    N, F, H, W = 2, 128, 16, 16
    res_scale = 0.1

    key = jax.random.PRNGKey(0)
    kx, kw1, kw2 = jax.random.split(key, 3)

    x = jax.random.normal(kx, (N, F, H, W), dtype=jnp.float32)
    fan_in = F * 3 * 3
    w1 = jax.random.normal(kw1, (F, F, 3, 3), dtype=jnp.float32) * (2.0 / fan_in) ** 0.5
    w2 = jax.random.normal(kw2, (F, F, 3, 3), dtype=jnp.float32) * (2.0 / fan_in) ** 0.5

    out = jax.block_until_ready(resblock_pallas(x, w1, w2, res_scale))
    ref = jax.block_until_ready(resblock_reference(x, w1, w2, res_scale))

    assert out.shape == (N, F, H, W)
    assert jnp.allclose(out, ref, atol=1e-3, rtol=1e-3), "mismatch vs reference conv"

    print("KERNEL_OK")
</pallas_src>

<mosaic_0001>
module attributes {stable_mosaic.version = 11 : i64} {
  func.func @_resblock_kernel(%arg0: i32, %arg1: memref<1x16x16x128xf32, #tpu.memory_space<vmem>>, %arg2: memref<1152x128xf32, #tpu.memory_space<vmem>>, %arg3: memref<1152x128xf32, #tpu.memory_space<vmem>>, %arg4: memref<1x16x16x128xf32, #tpu.memory_space<vmem>>, %arg5: memref<18x18x128xf32, #tpu.memory_space<vmem>>, %arg6: memref<18x18x128xf32, #tpu.memory_space<vmem>>, %arg7: memref<256x1152xf32, #tpu.memory_space<vmem>>) attributes {dimension_semantics = [#tpu.dimension_semantics<parallel>], iteration_bounds = array<i64: 2>, scalar_prefetch = 0 : i64, scratch_operands = 3 : i64, tpu.core_type = #tpu.core_type<tc>, window_params = [{transform_indices = @transform_0, window_bounds = array<i64: 1, 16, 16, 128>}, {pipeline_mode = #tpu.pipeline_mode<synchronous>, transform_indices = @transform_1, window_bounds = array<i64: 1152, 128>}, {pipeline_mode = #tpu.pipeline_mode<synchronous>, transform_indices = @transform_2, window_bounds = array<i64: 1152, 128>}, {transform_indices = @transform_3, window_bounds = array<i64: 1, 16, 16, 128>}]} {
    %cst = arith.constant 0.000000e+00 : f32
    %0 = vector.broadcast %cst : f32 to vector<1x18x128xf32>
    %c0 = arith.constant 0 : index
    %c0_0 = arith.constant 0 : index
    %c0_1 = arith.constant 0 : index
    %1 = vector.load %arg5[%c0, %c0_0, %c0_1] : memref<18x18x128xf32, #tpu.memory_space<vmem>>, vector<1x18x128xf32>
    tpu.vector_store %arg5[%c0, %c0_0, %c0_1], %0 {strides = array<i32>} : memref<18x18x128xf32, #tpu.memory_space<vmem>>, vector<1x18x128xf32>,
    %cst_2 = arith.constant 0.000000e+00 : f32
    %2 = vector.broadcast %cst_2 : f32 to vector<1x18x128xf32>
    %c17 = arith.constant 17 : index
    %c0_3 = arith.constant 0 : index
    %c0_4 = arith.constant 0 : index
    %3 = vector.load %arg5[%c17, %c0_3, %c0_4] : memref<18x18x128xf32, #tpu.memory_space<vmem>>, vector<1x18x128xf32>
    tpu.vector_store %arg5[%c17, %c0_3, %c0_4], %2 {strides = array<i32>} : memref<18x18x128xf32, #tpu.memory_space<vmem>>, vector<1x18x128xf32>,
    %cst_5 = arith.constant 0.000000e+00 : f32
    %4 = vector.broadcast %cst_5 : f32 to vector<18x1x128xf32>
    %c0_6 = arith.constant 0 : index
    %c0_7 = arith.constant 0 : index
    %c0_8 = arith.constant 0 : index
    %5 = vector.load %arg5[%c0_6, %c0_7, %c0_8] : memref<18x18x128xf32, #tpu.memory_space<vmem>>, vector<18x1x128xf32>
    tpu.vector_store %arg5[%c0_6, %c0_7, %c0_8], %4 {strides = array<i32>} : memref<18x18x128xf32, #tpu.memory_space<vmem>>, vector<18x1x128xf32>,
    %cst_9 = arith.constant 0.000000e+00 : f32
    %6 = vector.broadcast %cst_9 : f32 to vector<18x1x128xf32>
    %c0_10 = arith.constant 0 : index
    %c17_11 = arith.constant 17 : index
    %c0_12 = arith.constant 0 : index
    %7 = vector.load %arg5[%c0_10, %c17_11, %c0_12] : memref<18x18x128xf32, #tpu.memory_space<vmem>>, vector<18x1x128xf32>
    tpu.vector_store %arg5[%c0_10, %c17_11, %c0_12], %6 {strides = array<i32>} : memref<18x18x128xf32, #tpu.memory_space<vmem>>, vector<18x1x128xf32>,
    %c0_13 = arith.constant 0 : index
    %c0_14 = arith.constant 0 : index
    %c0_15 = arith.constant 0 : index
    %c0_16 = arith.constant 0 : index
    %8 = vector.load %arg1[%c0_13, %c0_14, %c0_15, %c0_16] : memref<1x16x16x128xf32, #tpu.memory_space<vmem>>, vector<1x16x16x128xf32>
    %9 = vector.shape_cast %8 : vector<1x16x16x128xf32> to vector<16x16x128xf32>
    %c1 = arith.constant 1 : index
    %c1_17 = arith.constant 1 : index
    %c0_18 = arith.constant 0 : index
    %10 = vector.load %arg5[%c1, %c1_17, %c0_18] : memref<18x18x128xf32, #tpu.memory_space<vmem>>, vector<16x16x128xf32>
    tpu.vector_store %arg5[%c1, %c1_17, %c0_18], %9 {strides = array<i32>} : memref<18x18x128xf32, #tpu.memory_space<vmem>>, vector<16x16x128xf32>,
    %c0_19 = arith.constant 0 : index
    %c0_20 = arith.constant 0 : index
    %c0_21 = arith.constant 0 : index
    %11 = vector.load %arg5[%c0_19, %c0_20, %c0_21] : memref<18x18x128xf32, #tpu.memory_space<vmem>>, vector<16x16x128xf32>
    %12 = vector.shape_cast %11 : vector<16x16x128xf32> to vector<256x128xf32>
    %c0_22 = arith.constant 0 : index
    %c0_23 = arith.constant 0 : index
    %13 = vector.load %arg7[%c0_22, %c0_23] : memref<256x1152xf32, #tpu.memory_space<vmem>>, vector<256x128xf32>
    tpu.vector_store %arg7[%c0_22, %c0_23], %12 {strides = array<i32>} : memref<256x1152xf32, #tpu.memory_space<vmem>>, vector<256x128xf32>,
    %c0_24 = arith.constant 0 : index
    %c1_25 = arith.constant 1 : index
    %c0_26 = arith.constant 0 : index
    %14 = vector.load %arg5[%c0_24, %c1_25, %c0_26] : memref<18x18x128xf32, #tpu.memory_space<vmem>>, vector<16x16x128xf32>
    %15 = vector.shape_cast %14 : vector<16x16x128xf32> to vector<256x128xf32>
    %c0_27 = arith.constant 0 : index
    %c128 = arith.constant 128 : index
    %16 = vector.load %arg7[%c0_27, %c128] : memref<256x1152xf32, #tpu.memory_space<vmem>>, vector<256x128xf32>
    tpu.vector_store %arg7[%c0_27, %c128], %15 {strides = array<i32>} : memref<256x1152xf32, #tpu.memory_space<vmem>>, vector<256x128xf32>,
    %c0_28 = arith.constant 0 : index
    %c2 = arith.constant 2 : index
    %c0_29 = arith.constant 0 : index
    %17 = vector.load %arg5[%c0_28, %c2, %c0_29] : memref<18x18x128xf32, #tpu.memory_space<vmem>>, vector<16x16x128xf32>
    %18 = vector.shape_cast %17 : vector<16x16x128xf32> to vector<256x128xf32>
    %c0_30 = arith.constant 0 : index
    %c256 = arith.constant 256 : index
    %19 = vector.load %arg7[%c0_30, %c256] : memref<256x1152xf32, #tpu.memory_space<vmem>>, vector<256x128xf32>
    tpu.vector_store %arg7[%c0_30, %c256], %18 {strides = array<i32>} : memref<256x1152xf32, #tpu.memory_space<vmem>>, vector<256x128xf32>,
    %c1_31 = arith.constant 1 : index
    %c0_32 = arith.constant 0 : index
    %c0_33 = arith.constant 0 : index
    %20 = vector.load %arg5[%c1_31, %c0_32, %c0_33] : memref<18x18x128xf32, #tpu.memory_space<vmem>>, vector<16x16x128xf32>
    %21 = vector.shape_cast %20 : vector<16x16x128xf32> to vector<256x128xf32>
    %c0_34 = arith.constant 0 : index
    %c384 = arith.constant 384 : index
    %22 = vector.load %arg7[%c0_34, %c384] : memref<256x1152xf32, #tpu.memory_space<vmem>>, vector<256x128xf32>
    tpu.vector_store %arg7[%c0_34, %c384], %21 {strides = array<i32>} : memref<256x1152xf32, #tpu.memory_space<vmem>>, vector<256x128xf32>,
    %c1_35 = arith.constant 1 : index
    %c1_36 = arith.constant 1 : index
    %c0_37 = arith.constant 0 : index
    %23 = vector.load %arg5[%c1_35, %c1_36, %c0_37] : memref<18x18x128xf32, #tpu.memory_space<vmem>>, vector<16x16x128xf32>
    %24 = vector.shape_cast %23 : vector<16x16x128xf32> to vector<256x128xf32>
    %c0_38 = arith.constant 0 : index
    %c512 = arith.constant 512 : index
    %25 = vector.load %arg7[%c0_38, %c512] : memref<256x1152xf32, #tpu.memory_space<vmem>>, vector<256x128xf32>
    tpu.vector_store %arg7[%c0_38, %c512], %24 {strides = array<i32>} : memref<256x1152xf32, #tpu.memory_space<vmem>>, vector<256x128xf32>,
    %c1_39 = arith.constant 1 : index
    %c2_40 = arith.constant 2 : index
    %c0_41 = arith.constant 0 : index
    %26 = vector.load %arg5[%c1_39, %c2_40, %c0_41] : memref<18x18x128xf32, #tpu.memory_space<vmem>>, vector<16x16x128xf32>
    %27 = vector.shape_cast %26 : vector<16x16x128xf32> to vector<256x128xf32>
    %c0_42 = arith.constant 0 : index
    %c640 = arith.constant 640 : index
    %28 = vector.load %arg7[%c0_42, %c640] : memref<256x1152xf32, #tpu.memory_space<vmem>>, vector<256x128xf32>
    tpu.vector_store %arg7[%c0_42, %c640], %27 {strides = array<i32>} : memref<256x1152xf32, #tpu.memory_space<vmem>>, vector<256x128xf32>,
    %c2_43 = arith.constant 2 : index
    %c0_44 = arith.constant 0 : index
    %c0_45 = arith.constant 0 : index
    %29 = vector.load %arg5[%c2_43, %c0_44, %c0_45] : memref<18x18x128xf32, #tpu.memory_space<vmem>>, vector<16x16x128xf32>
    %30 = vector.shape_cast %29 : vector<16x16x128xf32> to vector<256x128xf32>
    %c0_46 = arith.constant 0 : index
    %c768 = arith.constant 768 : index
    %31 = vector.load %arg7[%c0_46, %c768] : memref<256x1152xf32, #tpu.memory_space<vmem>>, vector<256x128xf32>
    tpu.vector_store %arg7[%c0_46, %c768], %30 {strides = array<i32>} : memref<256x1152xf32, #tpu.memory_space<vmem>>, vector<256x128xf32>,
    %c2_47 = arith.constant 2 : index
    %c1_48 = arith.constant 1 : index
    %c0_49 = arith.constant 0 : index
    %32 = vector.load %arg5[%c2_47, %c1_48, %c0_49] : memref<18x18x128xf32, #tpu.memory_space<vmem>>, vector<16x16x128xf32>
    %33 = vector.shape_cast %32 : vector<16x16x128xf32> to vector<256x128xf32>
    %c0_50 = arith.constant 0 : index
    %c896 = arith.constant 896 : index
    %34 = vector.load %arg7[%c0_50, %c896] : memref<256x1152xf32, #tpu.memory_space<vmem>>, vector<256x128xf32>
    tpu.vector_store %arg7[%c0_50, %c896], %33 {strides = array<i32>} : memref<256x1152xf32, #tpu.memory_space<vmem>>, vector<256x128xf32>,
    %c2_51 = arith.constant 2 : index
    %c2_52 = arith.constant 2 : index
    %c0_53 = arith.constant 0 : index
    %35 = vector.load %arg5[%c2_51, %c2_52, %c0_53] : memref<18x18x128xf32, #tpu.memory_space<vmem>>, vector<16x16x128xf32>
    %36 = vector.shape_cast %35 : vector<16x16x128xf32> to vector<256x128xf32>
    %c0_54 = arith.constant 0 : index
    %c1024 = arith.constant 1024 : index
    %37 = vector.load %arg7[%c0_54, %c1024] : memref<256x1152xf32, #tpu.memory_space<vmem>>, vector<256x128xf32>
    tpu.vector_store %arg7[%c0_54, %c1024], %36 {strides = array<i32>} : memref<256x1152xf32, #tpu.memory_space<vmem>>, vector<256x128xf32>,
    %c0_55 = arith.constant 0 : index
    %c0_56 = arith.constant 0 : index
    %38 = vector.load %arg7[%c0_55, %c0_56] : memref<256x1152xf32, #tpu.memory_space<vmem>>, vector<256x1152xf32>
    %c0_57 = arith.constant 0 : index
    %c0_58 = arith.constant 0 : index
    %39 = vector.load %arg2[%c0_57, %c0_58] : memref<1152x128xf32, #tpu.memory_space<vmem>>, vector<1152x128xf32>
    %cst_59 = arith.constant dense<0.000000e+00> : vector<256x128xf32>
    %40 = tpu.matmul %38, %39, %cst_59 {dimension_numbers = #tpu.dot_dimension_numbers<[1], [0], [0], [1], [0, 0, 1, 1], [], []>} : vector<256x1152xf32>, vector<1152x128xf32>, vector<256x128xf32> -> vector<256x128xf32>
    %cst_60 = arith.constant 0.000000e+00 : f32
    %41 = vector.broadcast %cst_60 : f32 to vector<1x18x128xf32>
    %c0_61 = arith.constant 0 : index
    %c0_62 = arith.constant 0 : index
    %c0_63 = arith.constant 0 : index
    %42 = vector.load %arg6[%c0_61, %c0_62, %c0_63] : memref<18x18x128xf32, #tpu.memory_space<vmem>>, vector<1x18x128xf32>
    tpu.vector_store %arg6[%c0_61, %c0_62, %c0_63], %41 {strides = array<i32>} : memref<18x18x128xf32, #tpu.memory_space<vmem>>, vector<1x18x128xf32>,
    %cst_64 = arith.constant 0.000000e+00 : f32
    %43 = vector.broadcast %cst_64 : f32 to vector<1x18x128xf32>
    %c17_65 = arith.constant 17 : index
    %c0_66 = arith.constant 0 : index
    %c0_67 = arith.constant 0 : index
    %44 = vector.load %arg6[%c17_65, %c0_66, %c0_67] : memref<18x18x128xf32, #tpu.memory_space<vmem>>, vector<1x18x128xf32>
    tpu.vector_store %arg6[%c17_65, %c0_66, %c0_67], %43 {strides = array<i32>} : memref<18x18x128xf32, #tpu.memory_space<vmem>>, vector<1x18x128xf32>,
    %cst_68 = arith.constant 0.000000e+00 : f32
    %45 = vector.broadcast %cst_68 : f32 to vector<18x1x128xf32>
    %c0_69 = arith.constant 0 : index
    %c0_70 = arith.constant 0 : index
    %c0_71 = arith.constant 0 : index
    %46 = vector.load %arg6[%c0_69, %c0_70, %c0_71] : memref<18x18x128xf32, #tpu.memory_space<vmem>>, vector<18x1x128xf32>
    tpu.vector_store %arg6[%c0_69, %c0_70, %c0_71], %45 {strides = array<i32>} : memref<18x18x128xf32, #tpu.memory_space<vmem>>, vector<18x1x128xf32>,
    %cst_72 = arith.constant 0.000000e+00 : f32
    %47 = vector.broadcast %cst_72 : f32 to vector<18x1x128xf32>
    %c0_73 = arith.constant 0 : index
    %c17_74 = arith.constant 17 : index
    %c0_75 = arith.constant 0 : index
    %48 = vector.load %arg6[%c0_73, %c17_74, %c0_75] : memref<18x18x128xf32, #tpu.memory_space<vmem>>, vector<18x1x128xf32>
    tpu.vector_store %arg6[%c0_73, %c17_74, %c0_75], %47 {strides = array<i32>} : memref<18x18x128xf32, #tpu.memory_space<vmem>>, vector<18x1x128xf32>,
    %cst_76 = arith.constant 0.000000e+00 : f32
    %49 = vector.broadcast %cst_76 : f32 to vector<256x128xf32>
    %50 = arith.maximumf %40, %49 : vector<256x128xf32>
    %51 = vector.shape_cast %50 : vector<256x128xf32> to vector<16x16x128xf32>
    %c1_77 = arith.constant 1 : index
    %c1_78 = arith.constant 1 : index
    %c0_79 = arith.constant 0 : index
    %52 = vector.load %arg6[%c1_77, %c1_78, %c0_79] : memref<18x18x128xf32, #tpu.memory_space<vmem>>, vector<16x16x128xf32>
    tpu.vector_store %arg6[%c1_77, %c1_78, %c0_79], %51 {strides = array<i32>} : memref<18x18x128xf32, #tpu.memory_space<vmem>>, vector<16x16x128xf32>,
    %c0_80 = arith.constant 0 : index
    %c0_81 = arith.constant 0 : index
    %c0_82 = arith.constant 0 : index
    %53 = vector.load %arg6[%c0_80, %c0_81, %c0_82] : memref<18x18x128xf32, #tpu.memory_space<vmem>>, vector<16x16x128xf32>
    %54 = vector.shape_cast %53 : vector<16x16x128xf32> to vector<256x128xf32>
    %c0_83 = arith.constant 0 : index
    %c0_84 = arith.constant 0 : index
    %55 = vector.load %arg7[%c0_83, %c0_84] : memref<256x1152xf32, #tpu.memory_space<vmem>>, vector<256x128xf32>
    tpu.vector_store %arg7[%c0_83, %c0_84], %54 {strides = array<i32>} : memref<256x1152xf32, #tpu.memory_space<vmem>>, vector<256x128xf32>,
    %c0_85 = arith.constant 0 : index
    %c1_86 = arith.constant 1 : index
    %c0_87 = arith.constant 0 : index
    %56 = vector.load %arg6[%c0_85, %c1_86, %c0_87] : memref<18x18x128xf32, #tpu.memory_space<vmem>>, vector<16x16x128xf32>
    %57 = vector.shape_cast %56 : vector<16x16x128xf32> to vector<256x128xf32>
    %c0_88 = arith.constant 0 : index
    %c128_89 = arith.constant 128 : index
    %58 = vector.load %arg7[%c0_88, %c128_89] : memref<256x1152xf32, #tpu.memory_space<vmem>>, vector<256x128xf32>
    tpu.vector_store %arg7[%c0_88, %c128_89], %57 {strides = array<i32>} : memref<256x1152xf32, #tpu.memory_space<vmem>>, vector<256x128xf32>,
    %c0_90 = arith.constant 0 : index
    %c2_91 = arith.constant 2 : index
    %c0_92 = arith.constant 0 : index
    %59 = vector.load %arg6[%c0_90, %c2_91, %c0_92] : memref<18x18x128xf32, #tpu.memory_space<vmem>>, vector<16x16x128xf32>
    %60 = vector.shape_cast %59 : vector<16x16x128xf32> to vector<256x128xf32>
    %c0_93 = arith.constant 0 : index
    %c256_94 = arith.constant 256 : index
    %61 = vector.load %arg7[%c0_93, %c256_94] : memref<256x1152xf32, #tpu.memory_space<vmem>>, vector<256x128xf32>
    tpu.vector_store %arg7[%c0_93, %c256_94], %60 {strides = array<i32>} : memref<256x1152xf32, #tpu.memory_space<vmem>>, vector<256x128xf32>,
    %c1_95 = arith.constant 1 : index
    %c0_96 = arith.constant 0 : index
    %c0_97 = arith.constant 0 : index
    %62 = vector.load %arg6[%c1_95, %c0_96, %c0_97] : memref<18x18x128xf32, #tpu.memory_space<vmem>>, vector<16x16x128xf32>
    %63 = vector.shape_cast %62 : vector<16x16x128xf32> to vector<256x128xf32>
    %c0_98 = arith.constant 0 : index
    %c384_99 = arith.constant 384 : index
    %64 = vector.load %arg7[%c0_98, %c384_99] : memref<256x1152xf32, #tpu.memory_space<vmem>>, vector<256x128xf32>
    tpu.vector_store %arg7[%c0_98, %c384_99], %63 {strides = array<i32>} : memref<256x1152xf32, #tpu.memory_space<vmem>>, vector<256x128xf32>,
    %c1_100 = arith.constant 1 : index
    %c1_101 = arith.constant 1 : index
    %c0_102 = arith.constant 0 : index
    %65 = vector.load %arg6[%c1_100, %c1_101, %c0_102] : memref<18x18x128xf32, #tpu.memory_space<vmem>>, vector<16x16x128xf32>
    %66 = vector.shape_cast %65 : vector<16x16x128xf32> to vector<256x128xf32>
    %c0_103 = arith.constant 0 : index
    %c512_104 = arith.constant 512 : index
    %67 = vector.load %arg7[%c0_103, %c512_104] : memref<256x1152xf32, #tpu.memory_space<vmem>>, vector<256x128xf32>
    tpu.vector_store %arg7[%c0_103, %c512_104], %66 {strides = array<i32>} : memref<256x1152xf32, #tpu.memory_space<vmem>>, vector<256x128xf32>,
    %c1_105 = arith.constant 1 : index
    %c2_106 = arith.constant 2 : index
    %c0_107 = arith.constant 0 : index
    %68 = vector.load %arg6[%c1_105, %c2_106, %c0_107] : memref<18x18x128xf32, #tpu.memory_space<vmem>>, vector<16x16x128xf32>
    %69 = vector.shape_cast %68 : vector<16x16x128xf32> to vector<256x128xf32>
    %c0_108 = arith.constant 0 : index
    %c640_109 = arith.constant 640 : index
    %70 = vector.load %arg7[%c0_108, %c640_109] : memref<256x1152xf32, #tpu.memory_space<vmem>>, vector<256x128xf32>
    tpu.vector_store %arg7[%c0_108, %c640_109], %69 {strides = array<i32>} : memref<256x1152xf32, #tpu.memory_space<vmem>>, vector<256x128xf32>,
    %c2_110 = arith.constant 2 : index
    %c0_111 = arith.constant 0 : index
    %c0_112 = arith.constant 0 : index
    %71 = vector.load %arg6[%c2_110, %c0_111, %c0_112] : memref<18x18x128xf32, #tpu.memory_space<vmem>>, vector<16x16x128xf32>
    %72 = vector.shape_cast %71 : vector<16x16x128xf32> to vector<256x128xf32>
    %c0_113 = arith.constant 0 : index
    %c768_114 = arith.constant 768 : index
    %73 = vector.load %arg7[%c0_113, %c768_114] : memref<256x1152xf32, #tpu.memory_space<vmem>>, vector<256x128xf32>
    tpu.vector_store %arg7[%c0_113, %c768_114], %72 {strides = array<i32>} : memref<256x1152xf32, #tpu.memory_space<vmem>>, vector<256x128xf32>,
    %c2_115 = arith.constant 2 : index
    %c1_116 = arith.constant 1 : index
    %c0_117 = arith.constant 0 : index
    %74 = vector.load %arg6[%c2_115, %c1_116, %c0_117] : memref<18x18x128xf32, #tpu.memory_space<vmem>>, vector<16x16x128xf32>
    %75 = vector.shape_cast %74 : vector<16x16x128xf32> to vector<256x128xf32>
    %c0_118 = arith.constant 0 : index
    %c896_119 = arith.constant 896 : index
    %76 = vector.load %arg7[%c0_118, %c896_119] : memref<256x1152xf32, #tpu.memory_space<vmem>>, vector<256x128xf32>
    tpu.vector_store %arg7[%c0_118, %c896_119], %75 {strides = array<i32>} : memref<256x1152xf32, #tpu.memory_space<vmem>>, vector<256x128xf32>,
    %c2_120 = arith.constant 2 : index
    %c2_121 = arith.constant 2 : index
    %c0_122 = arith.constant 0 : index
    %77 = vector.load %arg6[%c2_120, %c2_121, %c0_122] : memref<18x18x128xf32, #tpu.memory_space<vmem>>, vector<16x16x128xf32>
    %78 = vector.shape_cast %77 : vector<16x16x128xf32> to vector<256x128xf32>
    %c0_123 = arith.constant 0 : index
    %c1024_124 = arith.constant 1024 : index
    %79 = vector.load %arg7[%c0_123, %c1024_124] : memref<256x1152xf32, #tpu.memory_space<vmem>>, vector<256x128xf32>
    tpu.vector_store %arg7[%c0_123, %c1024_124], %78 {strides = array<i32>} : memref<256x1152xf32, #tpu.memory_space<vmem>>, vector<256x128xf32>,
    %c0_125 = arith.constant 0 : index
    %c0_126 = arith.constant 0 : index
    %80 = vector.load %arg7[%c0_125, %c0_126] : memref<256x1152xf32, #tpu.memory_space<vmem>>, vector<256x1152xf32>
    %c0_127 = arith.constant 0 : index
    %c0_128 = arith.constant 0 : index
    %81 = vector.load %arg3[%c0_127, %c0_128] : memref<1152x128xf32, #tpu.memory_space<vmem>>, vector<1152x128xf32>
    %cst_129 = arith.constant dense<0.000000e+00> : vector<256x128xf32>
    %82 = tpu.matmul %80, %81, %cst_129 {dimension_numbers = #tpu.dot_dimension_numbers<[1], [0], [0], [1], [0, 0, 1, 1], [], []>} : vector<256x1152xf32>, vector<1152x128xf32>, vector<256x128xf32> -> vector<256x128xf32>
    %cst_130 = arith.constant 1.000000e-01 : f32
    %83 = vector.broadcast %cst_130 : f32 to vector<256x128xf32>
    %84 = arith.mulf %82, %83 : vector<256x128xf32>
    %c0_131 = arith.constant 0 : index
    %c0_132 = arith.constant 0 : index
    %c0_133 = arith.constant 0 : index
    %c0_134 = arith.constant 0 : index
    %85 = vector.load %arg1[%c0_131, %c0_132, %c0_133, %c0_134] : memref<1x16x16x128xf32, #tpu.memory_space<vmem>>, vector<1x16x16x128xf32>
    %86 = vector.shape_cast %85 : vector<1x16x16x128xf32> to vector<16x16x128xf32>
    %87 = vector.shape_cast %86 : vector<16x16x128xf32> to vector<256x128xf32>
    %88 = arith.addf %84, %87 : vector<256x128xf32>
    %89 = vector.shape_cast %88 : vector<256x128xf32> to vector<16x16x128xf32>
    %c0_135 = arith.constant 0 : index
    %c0_136 = arith.constant 0 : index
    %c0_137 = arith.constant 0 : index
    %c0_138 = arith.constant 0 : index
    %90 = vector.load %arg4[%c0_135, %c0_136, %c0_137, %c0_138] : memref<1x16x16x128xf32, #tpu.memory_space<vmem>>, vector<1x16x16x128xf32>
    %91 = vector.shape_cast %90 : vector<1x16x16x128xf32> to vector<16x16x128xf32>
    %92 = vector.shape_cast %89 : vector<16x16x128xf32> to vector<1x16x16x128xf32>
    tpu.vector_store %arg4[%c0_135, %c0_136, %c0_137, %c0_138], %92 {strides = array<i32>} : memref<1x16x16x128xf32, #tpu.memory_space<vmem>>, vector<1x16x16x128xf32>,
    return
  }
  func.func @transform_0(%arg0: i32) -> (i32, i32, i32, i32) {
    %c0_i32 = arith.constant 0 : i32
    %c0_i32_0 = arith.constant 0 : i32
    %c0_i32_1 = arith.constant 0 : i32
    %c0_i32_2 = arith.constant 0 : i32
    return %arg0, %c0_i32, %c0_i32_0, %c0_i32_1 : i32, i32, i32, i32
  }
  func.func @transform_1(%arg0: i32) -> (i32, i32) {
    %c0_i32 = arith.constant 0 : i32
    %c0_i32_0 = arith.constant 0 : i32
    %c0_i32_1 = arith.constant 0 : i32
    return %c0_i32, %c0_i32_0 : i32, i32
  }
  func.func @transform_2(%arg0: i32) -> (i32, i32) {
    %c0_i32 = arith.constant 0 : i32
    %c0_i32_0 = arith.constant 0 : i32
    %c0_i32_1 = arith.constant 0 : i32
    return %c0_i32, %c0_i32_0 : i32, i32
  }
  func.func @transform_3(%arg0: i32) -> (i32, i32, i32, i32) {
    %c0_i32 = arith.constant 0 : i32
    %c0_i32_0 = arith.constant 0 : i32
    %c0_i32_1 = arith.constant 0 : i32
    %c0_i32_2 = arith.constant 0 : i32
    return %arg0, %c0_i32, %c0_i32_0, %c0_i32_1 : i32, i32, i32, i32
  }
}

</mosaic_0001>

<bundles_post_ra>
// kernel: tpu_custom_call.1
= control target key start
LH: loop header
LB: loop body
LE: loop exit
PB: predicated region body
PF: predicated region fallthrough
CT: control target
= control target key end

     0   :  { %8 = vsyncpa [#allocation6], 0  ;;  %s7063_s0 = inlined_call_operand.hbm [shape: f32[2,16,16,128], index: 0, kind: input, shape index: {}]   ;;  %s7064_s1 = inlined_call_operand.hbm [shape: f32[1152,128], index: 1, kind: input, shape index: {}]   ;;  %s7065_s2 = inlined_call_operand.hbm [shape: f32[1152,128], index: 2, kind: input, shape index: {}]   ;;  %s7066_s3 = inlined_call_operand.hbm [shape: f32[2,16,16,128], index: 3, kind: output, shape index: {}]  }
   0x1   :  { %10 = vsyncpa [#allocation6 + $0x1], 0 }
   0x2   :  { %11 = vsyncpa [#allocation9], 0 }
   0x3   :  { %12 = vsyncpa [#allocation7], 0 }
   0x4   :  { %14 = vsyncpa [#allocation7 + $0x1], 0  ;;  %s5048_s12 = smov 0   ;;  %s5050_s13 = smov 0  }
   0x5   :  { %s5052_s14 = smov 0   ;;  %s5054_s15 = smov 0  }
   0x6 LB: > { %s5069_s16 = sadd.s32 4294967295, %s5019_s15   ;;  %s4728_s17 = sadd.s32 4294967294, %s5019_s15   ;;  %s5019_s15 = sphi %s5054_s15, %s7251_s15   ;;  %s5015_s14 = sphi %s5052_s14, %s7250_s14   ;;  %s5011_s13 = sphi %s5050_s13, %s7249_s13   ;;  %s5007_s12 = sphi %s5048_s12, %s7248_s12  }
   0x7   : > { %p40_p0 = scmp.ne.s32.totalorder %s5011_s13, %s5007_s12  ;;  %p41_p1 = scmp.eq.s32.totalorder %s5069_s16, 0 }
   0x8   : > { %p106_p2 = scmp.eq.s32.totalorder %s5069_s16, 1  ;;  %p112_p3 = scmp.eq.s32.totalorder %s4728_s17, 1 }
   0x9   : > { %p5078_p4 = por %p41_p1, %p40_p0  ;;  %p4729_p5 = scmp.ge.s32.totalorder %s5019_s15, 1 }
   0xa   : > { %p5083_p6 = por %p112_p3, %p40_p0  ;;  %p119_p7 = scmp.lt.s32.totalorder %s5019_s15, 3 }
   0xb   : > { %s130_s22 = sshll.u32 %s7064_s1, 4  ;;  %s5021_s24 = smov [#allocation8]   ;;  %s131_s22 = int_to_ptr.hbm [resolvable:$true] %s130_s22 }
   0xc   : > { %p5091_p8 = pnand %p4729_p5, %p119_p7  ;;  %s132_s25 = sshll.u32 %s5021_s24, 4  ;;  %s133_s25 = int_to_ptr.vmem [resolvable:$true] %s132_s25 }
   0xd   : > { %s144_s28 = sshll.u32 %s7065_s2, 4  ;;  %s5022_s29 = smov 128   ;;  %s145_s28 = int_to_ptr.hbm [resolvable:$true] %s144_s28 }
   0xe   : > { %p4792_p9 = pneg %p5091_p8  ;;  %s5023_s30 = smov 8  }
   0xf   : > { %s5024_s4 = smov [#allocation10]   ;;  %s5110_s6 = sadd.s32 1, %s5019_s15  }
  0x10   : > { %p4793_p10 = pnand %p4792_p9, %p41_p1  ;;  %s146_s5 = sshll.u32 %s5024_s4, 4  ;;  %s147_s5 = int_to_ptr.vmem [resolvable:$true] %s146_s5 }
  0x11   : > { %s27_s7 = sadd.s32 1, %s5015_s14  ;;  %s24_s8 = ssub.s32 %s5019_s15, %s5110_s6 }
  0x12   : > { %4795 = dma.hbm_to_vmem [thread:$0]  (!%p4793_p10), %s131_s22, 18432, %s133_s25, [#allocation9], %s5022_s29, %s5022_s29, %s5023_s30  }
  0x13   : > { %4798 = dma.hbm_to_vmem [thread:$0]  (!%p4793_p10), %s145_s28, 18432, %s147_s5, [#allocation9], %s5022_s29, %s5022_s29, %s5023_s30  }
  0x14   : > { %p34_p12 = scmp.ne.s32.totalorder %s5015_s14, %s5011_s13  ;;  %p25_p13 = scmp.eq.s32.totalorder %s24_s8, 0 }
  0x15   : > { %p35_p0 = scmp.eq.s32.totalorder %s5019_s15, 0  ;;  %p4809_p5 = scmp.lt.s32.totalorder %s5019_s15, 2 }
  0x16   : > { %p5120_p3 = por %p106_p2, %p34_p12  ;;  %s160_s11 = sand.u32 1, %s5015_s14  }
  0x17   : > { %s5126_s10 = scalar_select %p25_p13, %s5015_s14, %s27_s7  }
  0x18   : > { %p36_p7 = por %p35_p0, %p34_p12  ;;  %s4733_s17 = sshll.u32 %s160_s11, 8 }
  0x19   : > { %s4746_s20 = sshll.u32 %s5019_s15, 8  ;;  %s164_s25 = scalar_lea.vmem [#allocation5], %s4733_s17 }
  0x1a   : > { %s169_s24 = scalar_lea.hbm %s7063_s0, %s4746_s20  ;;  %s172_s26 = sshll.u32 %s164_s25, 4  ;;  %s173_s26 = int_to_ptr.vmem [resolvable:$true] %s172_s26 }
  0x1b   : > { %s170_s27 = sshll.u32 %s169_s24, 4  ;;  %p5133_p2 = pnand %p4809_p5, %p36_p7  ;;  %s171_s27 = int_to_ptr.hbm [resolvable:$true] %s170_s27 }
  0x1c   : > { %s161_s4 = scalar_lea.sflag [#allocation6], %s160_s11  ;;  %s4919_s5 = sshra.s32 %s171_s27, 4  ;;  %s4920_s5 = int_to_ptr.hbm [resolvable:$true] %s4919_s5 }
  0x1d   : > { %s4921_s7 = scalar_lea.hbm %s4920_s5, 256  ;;  %p4923_p10 = pneg %p5133_p2 }
  0x1e   : > { %p4922_p9 = scmp.ne.s32.totalorder %s4920_s5, %s4921_s7  ;;  %s4926_s20 = scalar_lea.hbm %s7063_s0, 512 }
  0x1f   : > { %p4927_p0 = scmp.lt.s32.totalorder %s4920_s5, %s7063_s0  ;;  %p4928_p5 = scmp.lt.s32.totalorder %s4926_s20, %s4921_s7 }
  0x20   : > { %p4924_p12 = pnand %p4923_p10, %p4922_p9 }
  0x21   : > { %p4929_p7 = por %p4928_p5, %p4927_p0 }
  0x22   : > { %p4925_p13 = pneg %p4924_p12 }
  0x24   : > { %p4930_p11 = pnand %p4929_p7, %p4925_p13 }
  0x26   : > { %4933 = shalt.err (!%p4930_p11)
}
  0x27   : > { %4802 = dma.hbm_to_vmem [thread:$0]  (!%p5133_p2), %s171_s27, 4096, %s173_s26, %s161_s4, %s5022_s29, %s5022_s29, %s5023_s30  }
  0x28   : > { %184 = sbr.rel (%p5091_p8) target bundleno = 1549 (0x60d), region = 32 }
  0x2d   : > { %s5153_s11 = sand.u32 1, %s5011_s13  }
  0x2e   : > { %s4737_s24 = sshll.u32 %s5153_s11, 8  ;;  %s187_s25 = scalar_lea.sflag [#allocation6], %s5153_s11 }
  0x2f   : > { %s5159_s5 = scalar_lea.vmem [#allocation5], %s4737_s24 }
  0x30   : > { %4994 = dma.done.wait (%p5078_p4), %s187_s25, 4096  }
  0x31   : > { %4996 = vsyncadd (%p5078_p4), %s187_s25, 4294963200 }
  0x32   : > { %4998 = dma.done.wait (%p41_p1), [#allocation9], 36864  }
  0x33   : > { %5000 = vsyncadd (%p41_p1), [#allocation9], 4294930432  ;;  %v5025_v0 = vmov 0.0   ;;  %v1212_v1 = vld [vmem:[#allocation8 + $0x78] sm:$0xff]  ;;  %v1211_v3 = vld [vmem:[#allocation8 + $0x70] sm:$0xff]  ;;  %s6866_s18 = scalar_lea.vmem [#allocation11], %s4737_s24 }
  0x34   : > { %224 = vst [vmem:[#allocation2] sm:$0xff] %v5025_v0  ;;  %v1228_v2 = vld [vmem:[#allocation8 + $0xf8] sm:$0xff]  ;;  %1341 = vmatpush.msra.mxu0 %v1212_v1  ;;  %4748 = vmatpush.msra.mxu2 %v1212_v1  ;;  %v1227_v4 = vld [vmem:[#allocation8 + $0xf0] sm:$0xff]  ;;  %v1210_v5 = vld [vmem:[#allocation8 + $0x68] sm:$0xff]  ;;  %s4747_s23 = sshll.u32 %s5069_s16, 8  ;;  %s4633_s27 = sshll.u32 %s6866_s18, 4  ;;  %s4634_s27 = int_to_ptr.vmem [resolvable:$true] %s4633_s27 }
  0x35   : > { %231 = vst [vmem:[#allocation2] sm:$0x1] %v5025_v0  ;;  %4764 = vmatpush.msra.mxu3 %v1228_v2  ;;  %1454 = vmatpush.msra.mxu1 %v1228_v2  ;;  %v1226_v6 = vld [vmem:[#allocation8 + $0xe8] sm:$0xff]  ;;  %v1209_v7 = vld [vmem:[#allocation8 + $0x60] sm:$0xff]  ;;  %v1208_v9 = vld [vmem:[#allocation8 + $0x58] sm:$0xff]  ;;  %s4632_s26 = scalar_lea.hbm %s7066_s3, %s4747_s23  ;;  %s4621_s16 = scalar_lea.sflag [#allocation7], %s5153_s11 }
  0x36   : > { %225 = vst [vmem:[#allocation2 + $0x8] sm:$0xff] %v5025_v0  ;;  %1342 = vmatpush.msra.mxu0 %v1211_v3  ;;  %4749 = vmatpush.msra.mxu2 %v1211_v3  ;;  %v1225_v8 = vld [vmem:[#allocation8 + $0xe0] sm:$0xff]  ;;  %v1224_v10 = vld [vmem:[#allocation8 + $0xd8] sm:$0xff]  ;;  %v1207_v11 = vld [vmem:[#allocation8 + $0x50] sm:$0xff]  ;;  %s4635_s28 = sshll.u32 %s4632_s26, 4  ;;  %s4969_s20 = scalar_lea.hbm %s7066_s3, 512  ;;  %s4636_s28 = int_to_ptr.hbm [resolvable:$true] %s4635_s28 }
  0x37   : > { %226 = vst [vmem:[#allocation2 + $0x10] sm:$0x3] %v5025_v0  ;;  %4765 = vmatpush.msra.mxu3 %v1227_v4  ;;  %1455 = vmatpush.msra.mxu1 %v1227_v4  ;;  %v1223_v12 = vld [vmem:[#allocation8 + $0xd0] sm:$0xff]  ;;  %v1206_v13 = vld [vmem:[#allocation8 + $0x48] sm:$0xff]  ;;  %v1205_v15 = vld [vmem:[#allocation8 + $0x40] sm:$0xff]  ;;  %s4963_s4 = sshra.s32 %s4636_s28, 4  ;;  %s4964_s4 = int_to_ptr.hbm [resolvable:$true] %s4963_s4 }
  0x38   : > { %228 = vst [vmem:[#allocation2 + $0x198] sm:$0xff] %v5025_v0  ;;  %1343 = vmatpush.msra.mxu0 %v1210_v5  ;;  %4750 = vmatpush.msra.mxu2 %v1210_v5  ;;  %v1222_v14 = vld [vmem:[#allocation8 + $0xc8] sm:$0xff]  ;;  %v1221_v16 = vld [vmem:[#allocation8 + $0xc0] sm:$0xff]  ;;  %v1204_v17 = vld [vmem:[#allocation8 + $0x38] sm:$0xff]  ;;  %s4965_s7 = scalar_lea.hbm %s4964_s4, 256  ;;  %p4970_p11 = scmp.lt.s32.totalorder %s4964_s4, %s7066_s3 }
  0x39   : > { %229 = vst [vmem:[#allocation2 + $0x1a0] sm:$0xff] %v5025_v0  ;;  %4766 = vmatpush.msra.mxu3 %v1226_v6  ;;  %1456 = vmatpush.msra.mxu1 %v1226_v6  ;;  %v1220_v18 = vld [vmem:[#allocation8 + $0xb8] sm:$0xff]  ;;  %v1203_v19 = vld [vmem:[#allocation8 + $0x30] sm:$0xff]  ;;  %v1202_v21 = vld [vmem:[#allocation8 + $0x28] sm:$0xff]  ;;  %p4966_p1 = scmp.ne.s32.totalorder %s4964_s4, %s4965_s7  ;;  %p4971_p2 = scmp.lt.s32.totalorder %s4969_s20, %s4965_s7 }
  0x3a   : > { %230 = vst [vmem:[#allocation2 + $0x1a8] sm:$0x3] %v5025_v0  ;;  %1344 = vmatpush.msra.mxu0 %v1209_v7  ;;  %4751 = vmatpush.msra.mxu2 %v1209_v7  ;;  %v1219_v20 = vld [vmem:[#allocation8 + $0xb0] sm:$0xff]  ;;  %v1218_v22 = vld [vmem:[#allocation8 + $0xa8] sm:$0xff]  ;;  %v1201_v23 = vld [vmem:[#allocation8 + $0x20] sm:$0xff] }
  0x3b   : > { %232 = vst [vmem:[#allocation2 + $0x18] sm:$0x1] %v5025_v0  ;;  %4767 = vmatpush.msra.mxu3 %v1225_v8  ;;  %1457 = vmatpush.msra.mxu1 %v1225_v8  ;;  %v1217_v24 = vld [vmem:[#allocation8 + $0xa0] sm:$0xff]  ;;  %v1200_v25 = vld [vmem:[#allocation8 + $0x18] sm:$0xff]  ;;  %v1199_v27 = vld [vmem:[#allocation8 + $0x10] sm:$0xff]  ;;  %p4967_p4 = pnand %p4966_p1, %p5120_p3  ;;  %p4972_p9 = por %p4971_p2, %p4970_p11 }
  0x3c   : > { %233 = vst [vmem:[#allocation2 + $0x30] sm:$0x1] %v5025_v0  ;;  %1345 = vmatpush.msra.mxu0 %v1208_v9  ;;  %4752 = vmatpush.msra.mxu2 %v1208_v9  ;;  %v1216_v26 = vld [vmem:[#allocation8 + $0x98] sm:$0xff]  ;;  %v1215_v28 = vld [vmem:[#allocation8 + $0x90] sm:$0xff]  ;;  %v1198_v29 = vld [vmem:[#allocation8 + $0x8] sm:$0xff] }
  0x3d   : > { %234 = vst [vmem:[#allocation2 + $0x48] sm:$0x1] %v5025_v0  ;;  %4768 = vmatpush.msra.mxu3 %v1224_v10  ;;  %1458 = vmatpush.msra.mxu1 %v1224_v10  ;;  %v1214_v30 = vld [vmem:[#allocation8 + $0x88] sm:$0xff]  ;;  %v1197_v31 = vld [vmem:[#allocation8] sm:$0xff]  ;;  %v5209_v34 = vld [vmem:[%s5159_s5 + $0x70] sm:$0xff]  ;;  %p4968_p8 = pneg %p4967_p4 }
  0x3e   : > { %235 = vst [vmem:[#allocation2 + $0x60] sm:$0x1] %v5025_v0  ;;  %1346 = vmatpush.msra.mxu0 %v1207_v11  ;;  %4753 = vmatpush.msra.mxu2 %v1207_v11  ;;  %v1213_v32 = vld [vmem:[#allocation8 + $0x80] sm:$0xff]  ;;  %v5228_v35 = vld [vmem:[%s5159_s5 + $0x78] sm:$0xff]  ;;  %v1243_v39 = vld [vmem:[#allocation8 + $0x170] sm:$0xff] }
  0x3f   : > { %236 = vst [vmem:[#allocation2 + $0x78] sm:$0x1] %v5025_v0  ;;  %4769 = vmatpush.msra.mxu3 %v1223_v12  ;;  %1459 = vmatpush.msra.mxu1 %v1223_v12  ;;  %v332_v33 = vld [vmem:[#allocation2] sm:$0xff]  ;;  %v1244_v36 = vld [vmem:[#allocation8 + $0x178] sm:$0xff]  ;;  %v1259_v41 = vld [vmem:[#allocation8 + $0x1f0] sm:$0xff]  ;;  %p4973_p10 = pnand %p4972_p9, %p4968_p8 }
  0x40   : > { %237 = vst [vmem:[#allocation2 + $0x90] sm:$0x1] %v5025_v0  ;;  %1347 = vmatpush.msra.mxu0 %v1206_v13  ;;  %4754 = vmatpush.msra.mxu2 %v1206_v13  ;;  %v1260_v37 = vld [vmem:[#allocation8 + $0x1f8] sm:$0xff]  ;;  %v5240_v38 = vld [vmem:[%s5159_s5 + $0x80] sm:$0xff]  ;;  %v284_v43 = vld [vmem:[%s5159_s5 + $0x88] sm:$0xff] }
  0x41   : > { %238 = vst [vmem:[#allocation2 + $0xa8] sm:$0x1] %v5025_v0  ;;  %4770 = vmatpush.msra.mxu3 %v1222_v14  ;;  %1460 = vmatpush.msra.mxu1 %v1222_v14  ;;  %v396_v40 = vld [vmem:[#allocation2 + $0x1] sm:$0xff]  ;;  %v1276_v42 = vld [vmem:[#allocation8 + $0x278] sm:$0xff]  ;;  %v397_v45 = vld [vmem:[#allocation2 + $0x9] sm:$0xff] }
  0x42   : > { %239 = vst [vmem:[#allocation2 + $0xc0] sm:$0x1] %v5025_v0  ;;  %1348 = vmatpush.msra.mxu0 %v1205_v15  ;;  %4755 = vmatpush.msra.mxu2 %v1205_v15  ;;  %v1242_v44 = vld [vmem:[#allocation8 + $0x168] sm:$0xff]  ;;  %v1275_v47 = vld [vmem:[#allocation8 + $0x270] sm:$0xff]  ;;  %v5261_v48 = vld [vmem:[%s5159_s5] sm:$0xff] }
  0x43   : > { %240 = vst [vmem:[#allocation2 + $0xd8] sm:$0x1] %v5025_v0  ;;  %4771 = vmatpush.msra.mxu3 %v1221_v16  ;;  %1461 = vmatpush.msra.mxu1 %v1221_v16  ;;  %v1258_v46 = vld [vmem:[#allocation8 + $0x1e8] sm:$0xff]  ;;  %v285_v49 = vld [vmem:[%s5159_s5 + $0x90] sm:$0xff]  ;;  %v1241_v50 = vld [vmem:[#allocation8 + $0x160] sm:$0xff] }
  0x44   : > { %241 = vst [vmem:[#allocation2 + $0xf0] sm:$0x1] %v5025_v0  ;;  %1349 = vmatpush.msra.mxu0 %v1204_v17  ;;  %4756 = vmatpush.msra.mxu2 %v1204_v17  ;;  %v1257_v51 = vld [vmem:[#allocation8 + $0x1e0] sm:$0xff]  ;;  %v1274_v52 = vld [vmem:[#allocation8 + $0x268] sm:$0xff]  ;;  %v286_v55 = vld [vmem:[%s5159_s5 + $0x98] sm:$0xff] }
  0x45   : > { %242 = vst [vmem:[#allocation2 + $0x108] sm:$0x1] %v5025_v0  ;;  %4772 = vmatpush.msra.mxu3 %v1220_v18  ;;  %1462 = vmatpush.msra.mxu1 %v1220_v18  ;;  %v5274_v54 = vld [vmem:[%s5159_s5 + $0x8] sm:$0xff]  ;;  %v1240_v56 = vld [vmem:[#allocation8 + $0x158] sm:$0xff]  ;;  %v1273_v58 = vld [vmem:[#allocation8 + $0x260] sm:$0xff] }
  0x46   : > { %243 = vst [vmem:[#allocation2 + $0x120] sm:$0x1] %v5025_v0  ;;  %1350 = vmatpush.msra.mxu0 %v1203_v19  ;;  %4757 = vmatpush.msra.mxu2 %v1203_v19  ;;  %v1256_v57 = vld [vmem:[#allocation8 + $0x1d8] sm:$0xff]  ;;  %v5282_v59 = vld [vmem:[%s5159_s5 + $0x10] sm:$0xff]  ;;  %v5291_v62 = vld [vmem:[%s5159_s5 + $0x20] sm:$0xff] }
  0x47   : > { %244 = vst [vmem:[#allocation2 + $0x138] sm:$0x1] %v5025_v0  ;;  %4773 = vmatpush.msra.mxu3 %v1219_v20  ;;  %1463 = vmatpush.msra.mxu1 %v1219_v20  ;;  %v5286_v60 = vld [vmem:[%s5159_s5 + $0x18] sm:$0xff]  ;;  %v287_v63 = vld [vmem:[%s5159_s5 + $0xa0] sm:$0xff]  ;;  %v1239_v1 = vld [vmem:[#allocation8 + $0x150] sm:$0xff] }
  0x48   : > { %245 = vst [vmem:[#allocation2 + $0x150] sm:$0x1] %v5025_v0  ;;  %1351 = vmatpush.msra.mxu0 %v1202_v21  ;;  %4758 = vmatpush.msra.mxu2 %v1202_v21  ;;  %v1255_v2 = vld [vmem:[#allocation8 + $0x1d0] sm:$0xff]  ;;  %v1272_v3 = vld [vmem:[#allocation8 + $0x258] sm:$0xff]  ;;  %v5302_v6 = vld [vmem:[%s5159_s5 + $0x28] sm:$0xff] }
  0x49   : > { %246 = vst [vmem:[#allocation2 + $0x168] sm:$0x1] %v5025_v0  ;;  %4774 = vmatpush.msra.mxu3 %v1218_v22  ;;  %1464 = vmatpush.msra.mxu1 %v1218_v22  ;;  %v288_v7 = vld [vmem:[%s5159_s5 + $0xa8] sm:$0xff]  ;;  %v1271_v10 = vld [vmem:[#allocation8 + $0x250] sm:$0xff]  ;;  %v1237_v15 = vld [vmem:[#allocation8 + $0x140] sm:$0xff] }
  0x4a   : > { %247 = vst [vmem:[#allocation2 + $0x180] sm:$0x1] %v5025_v0  ;;  %1352 = vmatpush.msra.mxu0 %v1201_v23  ;;  %4759 = vmatpush.msra.mxu2 %v1201_v23  ;;  %v1238_v8 = vld [vmem:[#allocation8 + $0x148] sm:$0xff]  ;;  %v5311_v13 = vld [vmem:[%s5159_s5 + $0x30] sm:$0xff]  ;;  %v1253_v16 = vld [vmem:[#allocation8 + $0x1c0] sm:$0xff] }
  0x4b   : > { %250 = vst [vmem:[#allocation2 + $0x29] sm:$0x1] %v5025_v0  ;;  %4775 = vmatpush.msra.mxu3 %v1217_v24  ;;  %1465 = vmatpush.msra.mxu1 %v1217_v24  ;;  %v1254_v9 = vld [vmem:[#allocation8 + $0x1c8] sm:$0xff]  ;;  %v289_v14 = vld [vmem:[%s5159_s5 + $0xb0] sm:$0xff]  ;;  %v5320_v20 = vld [vmem:[%s5159_s5 + $0x38] sm:$0xff] }
  0x4c   : > { %251 = vst [vmem:[#allocation2 + $0x41] sm:$0x1] %v5025_v0  ;;  %1353 = vmatpush.msra.mxu0 %v1200_v25  ;;  %4760 = vmatpush.msra.mxu2 %v1200_v25  ;;  %v1270_v17 = vld [vmem:[#allocation8 + $0x248] sm:$0xff]  ;;  %v290_v21 = vld [vmem:[%s5159_s5 + $0xb8] sm:$0xff]  ;;  %v1269_v24 = vld [vmem:[#allocation8 + $0x240] sm:$0xff] }
  0x4d   : > { %252 = vst [vmem:[#allocation2 + $0x59] sm:$0x1] %v5025_v0  ;;  %4776 = vmatpush.msra.mxu3 %v1216_v26  ;;  %1466 = vmatpush.msra.mxu1 %v1216_v26  ;;  %v1236_v22 = vld [vmem:[#allocation8 + $0x138] sm:$0xff] }
  0x4e   : > { %253 = vst [vmem:[#allocation2 + $0x71] sm:$0x1] %v5025_v0  ;;  %1354 = vmatpush.msra.mxu0 %v1199_v27  ;;  %4761 = vmatpush.msra.mxu2 %v1199_v27  ;;  %v1252_v23 = vld [vmem:[#allocation8 + $0x1b8] sm:$0xff]  ;;  %v5329_v27 = vld [vmem:[%s5159_s5 + $0x40] sm:$0xff] }
  0x4f   : > { %254 = vst [vmem:[#allocation2 + $0x89] sm:$0x1] %v5025_v0  ;;  %4777 = vmatpush.msra.mxu3 %v1215_v28  ;;  %1467 = vmatpush.msra.mxu1 %v1215_v28  ;;  %v291_v28 = vld [vmem:[%s5159_s5 + $0xc0] sm:$0xff] }
  0x50   : > { %255 = vst [vmem:[#allocation2 + $0xa1] sm:$0x1] %v5025_v0  ;;  %1355 = vmatpush.msra.mxu0 %v1198_v29  ;;  %4762 = vmatpush.msra.mxu2 %v1198_v29  ;;  %v1235_v29 = vld [vmem:[#allocation8 + $0x130] sm:$0xff] }
  0x51   : > { %256 = vst [vmem:[#allocation2 + $0xb9] sm:$0x1] %v5025_v0  ;;  %4778 = vmatpush.msra.mxu3 %v1214_v30  ;;  %1468 = vmatpush.msra.mxu1 %v1214_v30  ;;  %v1251_v30 = vld [vmem:[#allocation8 + $0x1b0] sm:$0xff] }
  0x52   : > { %257 = vst [vmem:[#allocation2 + $0xd1] sm:$0x1] %v5025_v0  ;;  %1356 = vmatpush.msra.mxu0 %v1197_v31  ;;  %4763 = vmatpush.msra.mxu2 %v1197_v31  ;;  %v1268_v31 = vld [vmem:[#allocation8 + $0x238] sm:$0xff] }
  0x53   : > { %258 = vst [vmem:[#allocation2 + $0xe9] sm:$0x1] %v5025_v0  ;;  %4779 = vmatpush.msra.mxu3 %v1213_v32  ;;  %1357 = vmatmul.f32.vlgmr.msra.gmra.mxu0 %v332_v33 }
  0x54   : > { %259 = vst [vmem:[#allocation2 + $0x101] sm:$0x1] %v5025_v0  ;;  %1518 = vmatmul.f32.vlgmr.msra.gmra.mxu3 %v5209_v34  ;;  %1469 = vmatpush.msra.mxu1 %v1213_v32 }
  0x55   : > { %260 = vst [vmem:[#allocation2 + $0x119] sm:$0x1] %v5025_v0  ;;  %1567 = vmatpush.msrb.mxu2 %v1244_v36  ;;  %1680 = vmatpush.msrb.mxu3 %v1260_v37  ;;  %v1234_v36 = vld [vmem:[#allocation8 + $0x128] sm:$0xff] }
  0x56   : > { %261 = vst [vmem:[#allocation2 + $0x131] sm:$0x1] %v5025_v0  ;;  %1470 = vmatmul.f32.vlgmr.msra.gmra.mxu1 %v396_v40  ;;  %1793 = vmatpush.msrb.mxu0 %v1276_v42  ;;  %v1250_v37 = vld [vmem:[#allocation8 + $0x1a8] sm:$0xff]  ;;  %v293_v42 = vld [vmem:[%s5159_s5 + $0xd0] sm:$0xff] }
  0x57   : > { %262 = vst [vmem:[#allocation2 + $0x149] sm:$0x1] %v5025_v0  ;;  %1568 = vmatpush.msrb.mxu2 %v1243_v39  ;;  %1681 = vmatpush.msrb.mxu3 %v1259_v41  ;;  %v5347_v41 = vld [vmem:[%s5159_s5 + $0x50] sm:$0xff] }
  0x58   : > { %263 = vst [vmem:[#allocation2 + $0x161] sm:$0x1] %v5025_v0  ;;  %1794 = vmatpush.msrb.mxu0 %v1275_v47 }
  0x59   : > { %264 = vst [vmem:[#allocation2 + $0x179] sm:$0x1] %v5025_v0  ;;  %1569 = vmatpush.msrb.mxu2 %v1242_v44  ;;  %1682 = vmatpush.msrb.mxu3 %v1258_v46  ;;  %v1249_v44 = vld [vmem:[#allocation8 + $0x1a0] sm:$0xff] }
  0x5a   : > { %265 = vst [vmem:[#allocation2 + $0x191] sm:$0x1] %v5025_v0  ;;  %1795 = vmatpush.msrb.mxu0 %v1274_v52  ;;  %v1248_v52 = vld [vmem:[#allocation8 + $0x198] sm:$0xff] }
  0x5b   : > { %2358 = vst [vmem:[#allocation3] sm:$0xff] %v5025_v0  ;;  %1360 = vmatmul.f32.gmra.mxu0 %v5025_v0  ;;  %1570 = vmatpush.msrb.mxu2 %v1241_v50  ;;  %v294_v50 = vld [vmem:[%s5159_s5 + $0xd8] sm:$0xff] }
  0x5c   : > { %2359 = vst [vmem:[#allocation3 + $0x8] sm:$0xff] %v5025_v0  ;;  %1521 = vmatmul.f32.gmra.mxu3 %v5228_v35  ;;  %1796 = vmatpush.msrb.mxu0 %v1273_v58  ;;  %v295_v58 = vld [vmem:[%s5159_s5 + $0xe0] sm:$0xff] }
  0x5d   : > { %2360 = vst [vmem:[#allocation3 + $0x10] sm:$0x3] %v5025_v0  ;;  %1683 = vmatpush.msrb.mxu3 %v1257_v51  ;;  %1571 = vmatpush.msrb.mxu2 %v1240_v56  ;;  %v1232_v51 = vld [vmem:[#allocation8 + $0x118] sm:$0xff] }
  0x5e   : > { %2362 = vst [vmem:[#allocation3 + $0x198] sm:$0xff] %v5025_v0  ;;  %1473 = vmatmul.f32.gmra.mxu1 %v397_v45  ;;  %1797 = vmatpush.msrb.mxu0 %v1272_v3  ;;  %v1266_v45 = vld [vmem:[#allocation8 + $0x228] sm:$0xff]  ;;  %v1291_v3 = vld [vmem:[#allocation8 + $0x2f0] sm:$0xff] }
  0x5f   : > { %2363 = vst [vmem:[#allocation3 + $0x1a0] sm:$0xff] %v5025_v0  ;;  %1684 = vmatpush.msrb.mxu3 %v1256_v57  ;;  %1572 = vmatpush.msrb.mxu2 %v1239_v1  ;;  %v5365_v57 = vld [vmem:[%s5159_s5 + $0x60] sm:$0xff]  ;;  %v1264_v1 = vld [vmem:[#allocation8 + $0x218] sm:$0xff] }
  0x60   : > { %2364 = vst [vmem:[#allocation3 + $0x1a8] sm:$0x3] %v5025_v0  ;;  %1798 = vmatpush.msrb.mxu0 %v1271_v10  ;;  %v1230_v10 = vld [vmem:[#allocation8 + $0x108] sm:$0xff] }
  0x61   : > { %2366 = vst [vmem:[#allocation3 + $0x18] sm:$0x1] %v5025_v0  ;;  %1685 = vmatpush.msrb.mxu3 %v1255_v2  ;;  %1573 = vmatpush.msrb.mxu2 %v1238_v8  ;;  %v1292_v2 = vld [vmem:[#allocation8 + $0x2f8] sm:$0xff]  ;;  %v5374_v8 = vld [vmem:[%s5159_s5 + $0x68] sm:$0xff] }
  0x62   : > { %2367 = vst [vmem:[#allocation3 + $0x30] sm:$0x1] %v5025_v0  ;;  %1799 = vmatpush.msrb.mxu0 %v1270_v17  ;;  %1906 = vmatpush.msrb.mxu1 %v1292_v2  ;;  %v1288_v17 = vld [vmem:[#allocation8 + $0x2d8] sm:$0xff]  ;;  %v1323_v2 = vld [vmem:[#allocation8 + $0x3f0] sm:$0xff] }
  0x63   : > { %2368 = vst [vmem:[#allocation3 + $0x48] sm:$0x1] %v5025_v0  ;;  %1686 = vmatpush.msrb.mxu3 %v1254_v9  ;;  %1574 = vmatpush.msrb.mxu2 %v1237_v15  ;;  %v296_v9 = vld [vmem:[%s5159_s5 + $0xe8] sm:$0xff]  ;;  %v1263_v15 = vld [vmem:[#allocation8 + $0x210] sm:$0xff] }
  0x64   : > { %2369 = vst [vmem:[#allocation3 + $0x60] sm:$0x1] %v5025_v0  ;;  %1524 = vmatmul.f32.gmra.mxu3 %v5240_v38  ;;  %1800 = vmatpush.msrb.mxu0 %v1269_v24  ;;  %v1286_v24 = vld [vmem:[#allocation8 + $0x2c8] sm:$0xff] }
  0x65   : > { %2370 = vst [vmem:[#allocation3 + $0x78] sm:$0x1] %v5025_v0  ;;  %1687 = vmatpush.msrb.mxu3 %v1253_v16  ;;  %1575 = vmatpush.msrb.mxu2 %v1236_v22  ;;  %v1289_v16 = vld [vmem:[#allocation8 + $0x2e0] sm:$0xff] }
  0x66   : > { %2371 = vst [vmem:[#allocation3 + $0x90] sm:$0x1] %v5025_v0  ;;  %1476 = vmatmul.f32.gmra.mxu1 %v5261_v48  ;;  %1801 = vmatpush.msrb.mxu0 %v1268_v31  ;;  %v1284_v31 = vld [vmem:[#allocation8 + $0x2b8] sm:$0xff] }
  0x67   : > { %2372 = vst [vmem:[#allocation3 + $0xa8] sm:$0x1] %v5025_v0  ;;  %1688 = vmatpush.msrb.mxu3 %v1252_v23  ;;  %1576 = vmatpush.msrb.mxu2 %v1235_v29  ;;  %v1229_v23 = vld [vmem:[#allocation8 + $0x100] sm:$0xff] }
  0x68   : > { %2373 = vst [vmem:[#allocation3 + $0xc0] sm:$0x1] %v5025_v0  ;;  %1907 = vmatpush.msrb.mxu1 %v1291_v3  ;;  %v1285_v29 = vld [vmem:[#allocation8 + $0x2c0] sm:$0xff] }
  0x69   : > { %2374 = vst [vmem:[#allocation3 + $0xd8] sm:$0x1] %v5025_v0  ;;  %1689 = vmatpush.msrb.mxu3 %v1251_v30  ;;  %1577 = vmatpush.msrb.mxu2 %v1234_v36  ;;  %v1261_v30 = vld [vmem:[#allocation8 + $0x200] sm:$0xff] }
  0x6a   : > { %2375 = vst [vmem:[#allocation3 + $0xf0] sm:$0x1] %v5025_v0 }
  0x6b   : > { %2376 = vst [vmem:[#allocation3 + $0x108] sm:$0x1] %v5025_v0  ;;  %1690 = vmatpush.msrb.mxu3 %v1250_v37  ;;  %v1308_v37 = vld [vmem:[#allocation8 + $0x378] sm:$0xff] }
  0x6c   : > { %2377 = vst [vmem:[#allocation3 + $0x120] sm:$0x1] %v5025_v0  ;;  %1527 = vmatmul.f32.gmra.mxu3 %v284_v43 }
  0x6d   : > { %2378 = vst [vmem:[#allocation3 + $0x138] sm:$0x1] %v5025_v0  ;;  %1691 = vmatpush.msrb.mxu3 %v1249_v44 }
  0x6e   : > { %2379 = vst [vmem:[#allocation3 + $0x150] sm:$0x1] %v5025_v0  ;;  %1479 = vmatmul.f32.gmra.mxu1 %v5274_v54 }
  0x6f   : > { %2380 = vst [vmem:[#allocation3 + $0x168] sm:$0x1] %v5025_v0  ;;  %1692 = vmatpush.msrb.mxu3 %v1248_v52  ;;  %v1340_v52 = vld [vmem:[#allocation8 + $0x478] sm:$0xff] }
  0x70   : > { %2381 = vst [vmem:[#allocation3 + $0x180] sm:$0x1] %v5025_v0 }
  0x71   : > { %2384 = vst [vmem:[#allocation3 + $0x29] sm:$0x1] %v5025_v0 }
  0x72   : > { %2385 = vst [vmem:[#allocation3 + $0x41] sm:$0x1] %v5025_v0 }
  0x73   : > { %2386 = vst [vmem:[#allocation3 + $0x59] sm:$0x1] %v5025_v0 }
  0x74   : > { %2387 = vst [vmem:[#allocation3 + $0x71] sm:$0x1] %v5025_v0  ;;  %1530 = vmatmul.f32.gmra.mxu3 %v285_v49 }
  0x75   : > { %2388 = vst [vmem:[#allocation3 + $0x89] sm:$0x1] %v5025_v0 }
  0x76   : > { %2389 = vst [vmem:[#allocation3 + $0xa1] sm:$0x1] %v5025_v0  ;;  %1482 = vmatmul.f32.gmra.mxu1 %v5282_v59 }
  0x77   : > { %2390 = vst [vmem:[#allocation3 + $0xb9] sm:$0x1] %v5025_v0 }
  0x78   : > { %2391 = vst [vmem:[#allocation3 + $0xd1] sm:$0x1] %v5025_v0 }
  0x79   : > { %2392 = vst [vmem:[#allocation3 + $0xe9] sm:$0x1] %v5025_v0 }
  0x7a   : > { %2393 = vst [vmem:[#allocation3 + $0x101] sm:$0x1] %v5025_v0 }
  0x7b   : > { %2394 = vst [vmem:[#allocation3 + $0x119] sm:$0x1] %v5025_v0 }
  0x7c   : > { %2395 = vst [vmem:[#allocation3 + $0x131] sm:$0x1] %v5025_v0  ;;  %1533 = vmatmul.f32.gmra.mxu3 %v286_v55 }
  0x7d   : > { %2396 = vst [vmem:[#allocation3 + $0x149] sm:$0x1] %v5025_v0 }
  0x7e   : > { %2397 = vst [vmem:[#allocation3 + $0x161] sm:$0x1] %v5025_v0  ;;  %1485 = vmatmul.f32.gmra.mxu1 %v5286_v60 }
  0x7f   : > { %2398 = vst [vmem:[#allocation3 + $0x179] sm:$0x1] %v5025_v0 }
  0x80   : > { %2399 = vst [vmem:[#allocation3 + $0x191] sm:$0x1] %v5025_v0 }
  0x81   : > { %314 = vst [vmem:[#allocation2 + $0xc1] sm:$0xff] %v5209_v34  ;;  %v5338_v34 = vld [vmem:[%s5159_s5 + $0x48] sm:$0xff] }
  0x82   : > { %248 = vst [vmem:[#allocation2 + $0x198] sm:$0x1] %v5025_v0 }
  0x83   : > { %249 = vst [vmem:[#allocation2 + $0x11] sm:$0x1] %v5025_v0 }
  0x84   : > { %266 = vst [vmem:[#allocation2 + $0x1a9] sm:$0x1] %v5025_v0  ;;  %1536 = vmatmul.f32.gmra.mxu3 %v287_v63 }
  0x85   : > { %2365 = vst [vmem:[#allocation3] sm:$0x1] %v5025_v0 }
  0x86   : > { %2382 = vst [vmem:[#allocation3 + $0x198] sm:$0x1] %v5025_v0  ;;  %1488 = vmatmul.f32.gmra.mxu1 %v5291_v62 }
  0x87   : > { %2383 = vst [vmem:[#allocation3 + $0x11] sm:$0x1] %v5025_v0 }
  0x88   : > { %v348_v53 = vld [vmem:[#allocation2 + $0xc0] sm:$0xff]  ;;  %2400 = vst [vmem:[#allocation3 + $0x1a9] sm:$0x1] %v5025_v0 }
  0x89   : > { %1405 = vmatmul.f32.vlgmr.msra.gmra.mxu2 %v348_v53  ;;  %315 = vst [vmem:[#allocation2 + $0xc9] sm:$0xff] %v5228_v35  ;;  %v292_v35 = vld [vmem:[%s5159_s5 + $0xc8] sm:$0xff]  ;;  %v1265_v53 = vld [vmem:[#allocation8 + $0x220] sm:$0xff] }
  0x8a   : > { %300 = vst [vmem:[#allocation2 + $0x19] sm:$0xff] %v5261_v48 }
  0x8b   : > { %316 = vst [vmem:[#allocation2 + $0xd9] sm:$0xff] %v5240_v38  ;;  %v1267_v38 = vld [vmem:[#allocation8 + $0x230] sm:$0xff] }
  0x8c   : > { %301 = vst [vmem:[#allocation2 + $0x21] sm:$0xff] %v5274_v54  ;;  %1539 = vmatmul.f32.gmra.mxu3 %v288_v7  ;;  %1802 = vmatpush.msrb.mxu0 %v1267_v38  ;;  %v1282_v38 = vld [vmem:[#allocation8 + $0x2a8] sm:$0xff] }
  0x8d   : > { %317 = vst [vmem:[#allocation2 + $0xe1] sm:$0xff] %v284_v43  ;;  %v1233_v43 = vld [vmem:[#allocation8 + $0x120] sm:$0xff] }
  0x8e   : > { %302 = vst [vmem:[#allocation2 + $0x31] sm:$0xff] %v5282_v59  ;;  %1491 = vmatmul.f32.gmra.mxu1 %v5302_v6  ;;  %1578 = vmatpush.msrb.mxu2 %v1233_v43  ;;  %v1280_v43 = vld [vmem:[#allocation8 + $0x298] sm:$0xff] }
  0x8f   : > { %318 = vst [vmem:[#allocation2 + $0xf1] sm:$0xff] %v285_v49  ;;  %1803 = vmatpush.msrb.mxu0 %v1266_v45  ;;  %v5356_v49 = vld [vmem:[%s5159_s5 + $0x58] sm:$0xff]  ;;  %v1279_v45 = vld [vmem:[#allocation8 + $0x290] sm:$0xff] }
  0x90   : > { %v349_v61 = vld [vmem:[#allocation2 + $0xc8] sm:$0xff]  ;;  %303 = vst [vmem:[#allocation2 + $0x39] sm:$0xff] %v5286_v60  ;;  %1579 = vmatpush.msrb.mxu2 %v1232_v51 }
  0x91   : > { %1408 = vmatmul.f32.gmra.mxu2 %v349_v61  ;;  %v5294_v0 = vld [vmem:[#allocation2 + $0x18] sm:$0xff]  ;;  %319 = vst [vmem:[#allocation2 + $0xf9] sm:$0xff] %v286_v55  ;;  %1804 = vmatpush.msrb.mxu0 %v1265_v53  ;;  %v1231_v61 = vld [vmem:[#allocation8 + $0x110] sm:$0xff]  ;;  %v1278_v51 = vld [vmem:[#allocation8 + $0x288] sm:$0xff] }
  0x92   : > { %1363 = vmatmul.f32.gmra.mxu0 %v5294_v0  ;;  %304 = vst [vmem:[#allocation2 + $0x49] sm:$0xff] %v5291_v62  ;;  %v350_v4 = vld [vmem:[#allocation2 + $0xd8] sm:$0xff]  ;;  %1580 = vmatpush.msrb.mxu2 %v1231_v61  ;;  %v1277_v53 = vld [vmem:[#allocation8 + $0x280] sm:$0xff] }
  0x93   : > { %320 = vst [vmem:[#allocation2 + $0x109] sm:$0xff] %v287_v63  ;;  %v5299_v5 = vld [vmem:[#allocation2 + $0x20] sm:$0xff]  ;;  %v1247_v63 = vld [vmem:[#allocation8 + $0x190] sm:$0xff]  ;;  %1805 = vmatpush.msrb.mxu0 %v1264_v1 }
  0x94   : > { %305 = vst [vmem:[#allocation2 + $0x51] sm:$0xff] %v5302_v6  ;;  %v351_v11 = vld [vmem:[#allocation2 + $0xe0] sm:$0xff]  ;;  %1542 = vmatmul.f32.gmra.mxu3 %v289_v14  ;;  %1581 = vmatpush.msrb.mxu2 %v1230_v10  ;;  %v1307_v1 = vld [vmem:[#allocation8 + $0x370] sm:$0xff] }
  0x95   : > { %321 = vst [vmem:[#allocation2 + $0x111] sm:$0xff] %v288_v7  ;;  %v5308_v12 = vld [vmem:[#allocation2 + $0x30] sm:$0xff]  ;;  %1693 = vmatpush.msrb.mxu3 %v1247_v63  ;;  %1806 = vmatpush.msrb.mxu0 %v1263_v15 }
  0x96   : > { %306 = vst [vmem:[#allocation2 + $0x61] sm:$0xff] %v5311_v13  ;;  %v352_v18 = vld [vmem:[#allocation2 + $0xf0] sm:$0xff]  ;;  %1494 = vmatmul.f32.gmra.mxu1 %v5311_v13  ;;  %1582 = vmatpush.msrb.mxu2 %v1229_v23 }
  0x97   : > { %322 = vst [vmem:[#allocation2 + $0x121] sm:$0xff] %v289_v14  ;;  %v5317_v19 = vld [vmem:[#allocation2 + $0x38] sm:$0xff]  ;;  %v1246_v14 = vld [vmem:[#allocation8 + $0x188] sm:$0xff] }
  0x98   : > { %307 = vst [vmem:[#allocation2 + $0x69] sm:$0xff] %v5320_v20  ;;  %v353_v25 = vld [vmem:[#allocation2 + $0xf8] sm:$0xff]  ;;  %1694 = vmatpush.msrb.mxu3 %v1246_v14  ;;  %2019 = vmatpush.msra.mxu2 %v1308_v37 }
  0x99   : > { %1411 = vmatmul.f32.gmra.mxu2 %v350_v4  ;;  %323 = vst [vmem:[#allocation2 + $0x129] sm:$0xff] %v290_v21  ;;  %v5326_v26 = vld [vmem:[#allocation2 + $0x48] sm:$0xff]  ;;  %v654_v15 = vld [vmem:[#allocation2 + $0x32] sm:$0xff] }
  0x9a   : > { %1366 = vmatmul.f32.gmra.mxu0 %v5299_v5  ;;  %308 = vst [vmem:[#allocation2 + $0x79] sm:$0xff] %v5329_v27  ;;  %v354_v32 = vld [vmem:[#allocation2 + $0x108] sm:$0xff]  ;;  %2020 = vmatpush.msra.mxu2 %v1307_v1 }
  0x9b   : > { %324 = vst [vmem:[#allocation2 + $0x139] sm:$0xff] %v291_v28  ;;  %v5335_v33 = vld [vmem:[#allocation2 + $0x50] sm:$0xff] }
  0x9c   : > { %1545 = vmatmul.f32.gmra.mxu3 %v290_v21  ;;  %309 = vst [vmem:[#allocation2 + $0x81] sm:$0xff] %v5338_v34  ;;  %v355_v39 = vld [vmem:[#allocation2 + $0x110] sm:$0xff] }
  0x9d   : > { %325 = vst [vmem:[#allocation2 + $0x141] sm:$0xff] %v292_v35  ;;  %v5344_v40 = vld [vmem:[#allocation2 + $0x60] sm:$0xff]  ;;  %v1287_v21 = vld [vmem:[#allocation8 + $0x2d0] sm:$0xff] }
  0x9e   : > { %1497 = vmatmul.f32.gmra.mxu1 %v5320_v20  ;;  %310 = vst [vmem:[#allocation2 + $0x91] sm:$0xff] %v5347_v41  ;;  %v356_v46 = vld [vmem:[#allocation2 + $0x120] sm:$0xff] }
  0x9f   : > { %326 = vst [vmem:[#allocation2 + $0x151] sm:$0xff] %v293_v42  ;;  %v5353_v47 = vld [vmem:[#allocation2 + $0x68] sm:$0xff] }
  0xa0   : > { %311 = vst [vmem:[#allocation2 + $0x99] sm:$0xff] %v5356_v49  ;;  %v357_v55 = vld [vmem:[#allocation2 + $0x128] sm:$0xff] }
  0xa1   : > { %1414 = vmatmul.f32.gmra.mxu2 %v351_v11  ;;  %327 = vst [vmem:[#allocation2 + $0x159] sm:$0xff] %v294_v50  ;;  %v5362_v56 = vld [vmem:[#allocation2 + $0x78] sm:$0xff]  ;;  %v1290_v11 = vld [vmem:[#allocation8 + $0x2e8] sm:$0xff] }
  0xa2   : > { %1369 = vmatmul.f32.gmra.mxu0 %v5308_v12  ;;  %312 = vst [vmem:[#allocation2 + $0xa9] sm:$0xff] %v5365_v57  ;;  %v358_v4 = vld [vmem:[#allocation2 + $0x138] sm:$0xff]  ;;  %1908 = vmatpush.msrb.mxu1 %v1290_v11  ;;  %v1339_v11 = vld [vmem:[#allocation8 + $0x470] sm:$0xff] }
  0xa3   : > { %328 = vst [vmem:[#allocation2 + $0x169] sm:$0xff] %v295_v58  ;;  %v5371_v7 = vld [vmem:[#allocation2 + $0x80] sm:$0xff] }
  0xa4   : > { %1548 = vmatmul.f32.gmra.mxu3 %v291_v28  ;;  %313 = vst [vmem:[#allocation2 + $0xb1] sm:$0xff] %v5374_v8  ;;  %1909 = vmatpush.msrb.mxu1 %v1289_v16  ;;  %v1262_v28 = vld [vmem:[#allocation8 + $0x208] sm:$0xff] }
  0xa5   : > { %329 = vst [vmem:[#allocation2 + $0x171] sm:$0xff] %v296_v9  ;;  %v5380_v22 = vld [vmem:[#allocation2 + $0x90] sm:$0xff]  ;;  %1807 = vmatpush.msrb.mxu0 %v1262_v28 }
  0xa6   : > { %1500 = vmatmul.f32.gmra.mxu1 %v5329_v27  ;;  %v461_v28 = vld [vmem:[#allocation2 + $0xa] sm:$0xff] }
  0xa7   : > { %1910 = vmatpush.msrb.mxu1 %v1288_v17  ;;  %1808 = vmatpush.msrb.mxu0 %v1261_v30  ;;  %v5385_v36 = vld [vmem:[#allocation2 + $0x98] sm:$0xff]  ;;  %v460_v17 = vld [vmem:[#allocation2 + $0x2] sm:$0xff] }
  0xa8   : > { %v361_v44 = vld [vmem:[#allocation2 + $0x158] sm:$0xff]  ;;  %v1338_v30 = vld [vmem:[#allocation8 + $0x468] sm:$0xff] }
  0xa9   : > { %1417 = vmatmul.f32.gmra.mxu2 %v352_v18  ;;  %v359_v18 = vld [vmem:[#allocation2 + $0x140] sm:$0xff]  ;;  %1911 = vmatpush.msrb.mxu1 %v1287_v21  ;;  %v1322_v21 = vld [vmem:[#allocation8 + $0x3e8] sm:$0xff] }
  0xaa   : > { %1372 = vmatmul.f32.gmra.mxu0 %v5317_v19 }
  0xab   : > { %1912 = vmatpush.msrb.mxu1 %v1286_v24  ;;  %2245 = vmatpush.msra.mxu0 %v1340_v52  ;;  %v5396_v61 = vld [vmem:[#allocation2 + $0xb0] sm:$0xff]  ;;  %v655_v24 = vld [vmem:[#allocation2 + $0x3a] sm:$0xff]  ;;  %v658_v52 = vld [vmem:[#allocation2 + $0x62] sm:$0xff] }
  0xac   : > { %1551 = vmatmul.f32.gmra.mxu3 %v292_v35  ;;  %v1283_v35 = vld [vmem:[#allocation8 + $0x2b0] sm:$0xff] }
  0xad   : > { %1913 = vmatpush.msrb.mxu1 %v1285_v29  ;;  %2246 = vmatpush.msra.mxu0 %v1339_v11 }
  0xae   : > { %1503 = vmatmul.f32.gmra.mxu1 %v5338_v34 }
  0xaf   : > { %1914 = vmatpush.msrb.mxu1 %v1284_v31  ;;  %2247 = vmatpush.msra.mxu0 %v1338_v30 }
  0xb1   : > { %1420 = vmatmul.f32.gmra.mxu2 %v353_v25  ;;  %v1245_v25 = vld [vmem:[#allocation8 + $0x180] sm:$0xff]  ;;  %1915 = vmatpush.msrb.mxu1 %v1283_v35 }
  0xb2   : > { %1375 = vmatmul.f32.gmra.mxu0 %v5326_v26  ;;  %1695 = vmatpush.msrb.mxu3 %v1245_v25 }
  0xb3   : > { %1916 = vmatpush.msrb.mxu1 %v1282_v38  ;;  %v1305_v38 = vld [vmem:[#allocation8 + $0x360] sm:$0xff] }
  0xb4   : > { %1554 = vmatmul.f32.gmra.mxu3 %v293_v42  ;;  %v1281_v42 = vld [vmem:[#allocation8 + $0x2a0] sm:$0xff] }
  0xb5   : > { %1917 = vmatpush.msrb.mxu1 %v1281_v42 }
  0xb6   : > { %1506 = vmatmul.f32.gmra.mxu1 %v5347_v41 }
  0xb7   : > { %1918 = vmatpush.msrb.mxu1 %v1280_v43 }
  0xb9   : > { %1423 = vmatmul.f32.gmra.mxu2 %v354_v32  ;;  %v360_v32 = vld [vmem:[#allocation2 + $0x150] sm:$0xff]  ;;  %1919 = vmatpush.msrb.mxu1 %v1279_v45  ;;  %v1337_v45 = vld [vmem:[#allocation8 + $0x460] sm:$0xff] }
  0xba   : > { %1378 = vmatmul.f32.gmra.mxu0 %v5335_v33 }
  0xbb   : > { %1920 = vmatpush.msrb.mxu1 %v1278_v51  ;;  %2248 = vmatpush.msra.mxu0 %v1337_v45 }
  0xbc   : > { %1557 = vmatmul.f32.gmra.mxu3 %v294_v50 }
  0xbd   : > { %1921 = vmatpush.msrb.mxu1 %v1277_v53 }
  0xbe   : > { %1509 = vmatmul.f32.gmra.mxu1 %v5356_v49 }
  0xc1   : > { %1426 = vmatmul.f32.gmra.mxu2 %v355_v39  ;;  %v1324_v39 = vld [vmem:[#allocation8 + $0x3f8] sm:$0xff] }
  0xc2   : > { %1381 = vmatmul.f32.gmra.mxu0 %v5344_v40  ;;  %2132 = vmatpush.msra.mxu3 %v1324_v39  ;;  %v1321_v39 = vld [vmem:[#allocation8 + $0x3e0] sm:$0xff] }
  0xc4   : > { %1560 = vmatmul.f32.gmra.mxu3 %v295_v58  ;;  %v652_v58 = vld [vmem:[#allocation2 + $0x1a] sm:$0xff] }
  0xc5   : > { %2133 = vmatpush.msra.mxu3 %v1323_v2  ;;  %v659_v2 = vld [vmem:[#allocation2 + $0x6a] sm:$0xff] }
  0xc6   : > { %1512 = vmatmul.f32.gmra.mxu1 %v5365_v57 }
  0xc7   : > { %2134 = vmatpush.msra.mxu3 %v1322_v21 }
  0xc9   : > { %1429 = vmatmul.f32.gmra.mxu2 %v356_v46  ;;  %v5390_v46 = vld [vmem:[#allocation2 + $0xa8] sm:$0xff]  ;;  %2135 = vmatpush.msra.mxu3 %v1321_v39 }
  0xca   : > { %1384 = vmatmul.f32.gmra.mxu0 %v5353_v47  ;;  %v1318_v39 = vld [vmem:[#allocation8 + $0x3c8] sm:$0xff] }
  0xcc   : > { %1563 = vmatmul.f32.gmra.mxu3 %v296_v9  ;;  %v653_v9 = vld [vmem:[#allocation2 + $0x22] sm:$0xff] }
  0xce   : > { %1515 = vmatmul.f32.gmra.mxu1 %v5374_v8 }
  0xd0   : > { %v5401_v3 = vpop.f32.mrf.mxu0 }
  0xd1   : > { %1432 = vmatmul.f32.gmra.mxu2 %v357_v55 }
  0xd2   : > { %1387 = vmatmul.f32.gmra.mxu0 %v5362_v56 }
  0xd3   : > { %v5392_v50 = vpop.f32.mrf.mxu1 }
  0xd4   : > { %1696 = vmatmul.f32.vlgmr.msrb.gmra.mxu3 %v5294_v0 }
  0xd6   : > { %1922 = vmatmul.f32.vlgmr.msrb.gmra.mxu1 %v652_v58 }
  0xd7   : > { %v1519_v0 = vpop.f32.mrf.mxu3 }
  0xd8   : > { %v5407_v16 = vpop.f32.mrf.mxu0 }
  0xd9   : > { %1435 = vmatmul.f32.gmra.mxu2 %v358_v4 }
  0xda   : > { %1390 = vmatmul.f32.gmra.mxu0 %v5371_v7 }
  0xdb   : > { %v5398_v63 = vpop.f32.mrf.mxu1 }
  0xdc   : > { %1699 = vmatmul.f32.gmra.mxu3 %v5299_v5  ;;  %v362_v5 = vld [vmem:[#allocation2 + $0x168] sm:$0xff] }
  0xde   : > { %1925 = vmatmul.f32.gmra.mxu1 %v653_v9 }
  0xdf   : > { %v1522_v55 = vpop.f32.mrf.mxu3 }
  0xe1   : > { %1438 = vmatmul.f32.gmra.mxu2 %v359_v18 }
  0xe2   : > { %1393 = vmatmul.f32.gmra.mxu0 %v5380_v22 }
  0xe3   : > { %v5404_v10 = vpop.f32.mrf.mxu1 }
  0xe4   : > { %1702 = vmatmul.f32.gmra.mxu3 %v5308_v12  ;;  %v363_v12 = vld [vmem:[#allocation2 + $0x170] sm:$0xff] }
  0xe6   : > { %1928 = vmatmul.f32.gmra.mxu1 %v654_v15 }
  0xe7   : > { %v1525_v4 = vpop.f32.mrf.mxu3 }
  0xe9   : > { %1441 = vmatmul.f32.gmra.mxu2 %v360_v32  ;;  %v656_v32 = vld [vmem:[#allocation2 + $0x4a] sm:$0xff] }
  0xea   : > { %1396 = vmatmul.f32.gmra.mxu0 %v5385_v36 }
  0xeb   : > { %v5410_v18 = vpop.f32.mrf.mxu1 }
  0xec   : > { %1705 = vmatmul.f32.gmra.mxu3 %v5317_v19  ;;  %v1306_v19 = vld [vmem:[#allocation8 + $0x368] sm:$0xff] }
  0xed   : > { %2021 = vmatpush.msra.mxu2 %v1306_v19  ;;  %v1319_v19 = vld [vmem:[#allocation8 + $0x3d0] sm:$0xff] }
  0xee   : > { %1931 = vmatmul.f32.gmra.mxu1 %v655_v24 }
  0xef   : > { %v1528_v14 = vpop.f32.mrf.mxu3  ;;  %2022 = vmatpush.msra.mxu2 %v1305_v38 }
  0xf1   : > { %1444 = vmatmul.f32.gmra.mxu2 %v361_v44 }
  0xf2   : > { %1399 = vmatmul.f32.gmra.mxu0 %v5390_v46 }
  0xf3   : > { %v5418_v29 = vpop.f32.mrf.mxu1 }
  0xf4   : > { %1708 = vmatmul.f32.gmra.mxu3 %v5326_v26 }
  0xf6   : > { %1934 = vmatmul.f32.gmra.mxu1 %v656_v32 }
  0xf9   : > { %1447 = vmatmul.f32.gmra.mxu2 %v362_v5  ;;  %v1320_v5 = vld [vmem:[#allocation8 + $0x3d8] sm:$0xff] }
  0xfa   : > { %1402 = vmatmul.f32.gmra.mxu0 %v5396_v61  ;;  %2136 = vmatpush.msra.mxu3 %v1320_v5 }
  0xfb   : > { %v5426_v37 = vpop.f32.mrf.mxu1 }
  0xfc   : > { %1711 = vmatmul.f32.gmra.mxu3 %v5335_v33 }
  0xfd   : > { %2137 = vmatpush.msra.mxu3 %v1319_v19  ;;  %v1333_v19 = vld [vmem:[#allocation8 + $0x440] sm:$0xff] }
  0xff   : > { %2138 = vmatpush.msra.mxu3 %v1318_v39  ;;  %v540_v39 = vld [vmem:[#allocation2 + $0xd8] sm:$0xff] }
 0x101   : > { %1450 = vmatmul.f32.gmra.mxu2 %v363_v12 }
 0x102   : > { %1809 = vmatmul.f32.vlgmr.msrb.gmra.mxu0 %v5261_v48  ;;  %v1531_v48 = vpop.f32.mrf.mxu3 }
 0x103   : > { %v5434_v44 = vpop.f32.mrf.mxu1 }
 0x104   : > { %1714 = vmatmul.f32.gmra.mxu3 %v5344_v40 }
 0x109   : > { %1583 = vmatmul.f32.vlgmr.msrb.gmra.mxu2 %v460_v17 }
 0x10a   : > { %1812 = vmatmul.f32.gmra.mxu0 %v5274_v54  ;;  %v1534_v31 = vpop.f32.mrf.mxu3 }
 0x10c   : > { %v1406_v23 = vpop.f32.mrf.mxu2  ;;  %1717 = vmatmul.f32.gmra.mxu3 %v5353_v47  ;;  %v5442_v47 = vpop.f32.mrf.mxu1 }
 0x10d   : > { %v5413_v25 = vadd.f32 %v1519_v0, %v1406_v23  ;;  %v657_v0 = vld [vmem:[#allocation2 + $0x52] sm:$0xff]  ;;  %v661_v23 = vld [vmem:[#allocation2 + $0x82] sm:$0xff] }
 0x10e   : > { %1937 = vmatmul.f32.gmra.mxu1 %v657_v0 }
 0x10f   : > { %v5416_v26 = vpop.f32.mrf.mxu0 }
 0x111   : > { %1586 = vmatmul.f32.gmra.mxu2 %v461_v28  ;;  %v1335_v28 = vld [vmem:[#allocation8 + $0x450] sm:$0xff] }
 0x112   : > { %1815 = vmatmul.f32.gmra.mxu0 %v5282_v59  ;;  %v1537_v42 = vpop.f32.mrf.mxu3 }
 0x114   : > { %v1409_v54 = vpop.f32.mrf.mxu2  ;;  %1720 = vmatmul.f32.gmra.mxu3 %v5362_v56  ;;  %v5451_v12 = vpop.f32.mrf.mxu1 }
 0x115   : > { %v5421_v35 = vadd.f32 %v1522_v55, %v1409_v54  ;;  %v662_v54 = vld [vmem:[#allocation2 + $0x92] sm:$0xff] }
 0x116   : > { %1940 = vmatmul.f32.gmra.mxu1 %v658_v52 }
 0x117   : > { %v5424_v33 = vpop.f32.mrf.mxu0 }
 0x119   : > { %1589 = vmatmul.f32.gmra.mxu2 %v652_v58  ;;  %v1304_v58 = vld [vmem:[#allocation8 + $0x358] sm:$0xff] }
 0x11a   : > { %1818 = vmatmul.f32.gmra.mxu0 %v5286_v60  ;;  %v1540_v51 = vpop.f32.mrf.mxu3  ;;  %2023 = vmatpush.msra.mxu2 %v1304_v58 }
 0x11c   : > { %v1412_v59 = vpop.f32.mrf.mxu2  ;;  %1723 = vmatmul.f32.gmra.mxu3 %v5371_v7  ;;  %v1303_v7 = vld [vmem:[#allocation8 + $0x350] sm:$0xff] }
 0x11d   : > { %v5429_v43 = vadd.f32 %v1525_v4, %v1412_v59  ;;  %2024 = vmatpush.msra.mxu2 %v1303_v7 }
 0x11e   : > { %1943 = vmatmul.f32.gmra.mxu1 %v659_v2 }
 0x11f   : > { %v5432_v40 = vpop.f32.mrf.mxu0 }
 0x121   : > { %1592 = vmatmul.f32.gmra.mxu2 %v653_v9  ;;  %v1336_v9 = vld [vmem:[#allocation8 + $0x458] sm:$0xff] }
 0x122   : > { %1821 = vmatmul.f32.gmra.mxu0 %v5291_v62  ;;  %v1543_v1 = vpop.f32.mrf.mxu3 }
 0x123   : > { %2249 = vmatpush.msra.mxu0 %v1336_v9 }
 0x124   : > { %v1415_v60 = vpop.f32.mrf.mxu2  ;;  %1726 = vmatmul.f32.gmra.mxu3 %v5380_v22 }
 0x125   : > { %v5437_v53 = vadd.f32 %v1528_v14, %v1415_v60  ;;  %v660_v14 = vld [vmem:[#allocation2 + $0x7a] sm:$0xff]  ;;  %2250 = vmatpush.msra.mxu0 %v1335_v28  ;;  %v1334_v60 = vld [vmem:[#allocation8 + $0x448] sm:$0xff] }
 0x126   : > { %1946 = vmatmul.f32.gmra.mxu1 %v660_v14  ;;  %v5503_v28 = vld [vmem:[#allocation2 + $0xc2] sm:$0xff] }
 0x127   : > { %v5440_v55 = vpop.f32.mrf.mxu0  ;;  %2251 = vmatpush.msra.mxu0 %v1334_v60  ;;  %7110 = vst [vmem:[#allocation18_spill] sm:$0xff] %v5503_v28 }
 0x129   : > { %1595 = vmatmul.f32.gmra.mxu2 %v654_v15  ;;  %2252 = vmatpush.msra.mxu0 %v1333_v19 }
 0x12a   : > { %1824 = vmatmul.f32.gmra.mxu0 %v5302_v6  ;;  %v1546_v11 = vpop.f32.mrf.mxu3 }
 0x12c   : > { %v1418_v62 = vpop.f32.mrf.mxu2  ;;  %1729 = vmatmul.f32.gmra.mxu3 %v5385_v36  ;;  %v1302_v36 = vld [vmem:[#allocation8 + $0x348] sm:$0xff] }
 0x12d   : > { %v5445_v4 = vadd.f32 %v1531_v48, %v1418_v62  ;;  %2025 = vmatpush.msra.mxu2 %v1302_v36  ;;  %v1301_v62 = vld [vmem:[#allocation8 + $0x340] sm:$0xff] }
 0x12e   : > { %1949 = vmatmul.f32.gmra.mxu1 %v661_v23 }
 0x12f   : > { %v5448_v56 = vpop.f32.mrf.mxu0  ;;  %2026 = vmatpush.msra.mxu2 %v1301_v62  ;;  %v602_v62 = vld [vmem:[#allocation2 + $0xc1] sm:$0xff] }
 0x131   : > { %1598 = vmatmul.f32.gmra.mxu2 %v655_v24  ;;  %v5461_v24 = vpop.f32.mrf.mxu1 }
 0x132   : > { %1827 = vmatmul.f32.gmra.mxu0 %v5311_v13  ;;  %v1549_v21 = vpop.f32.mrf.mxu3 }
 0x134   : > { %v1421_v6 = vpop.f32.mrf.mxu2  ;;  %1732 = vmatmul.f32.gmra.mxu3 %v5390_v46 }
 0x135   : > { %v5453_v15 = vadd.f32 %v1534_v31, %v1421_v6  ;;  %v5493_v6 = vld [vmem:[#allocation2 + $0xb2] sm:$0xff] }
 0x136   : > { %1952 = vmatmul.f32.gmra.mxu1 %v662_v54 }
 0x137   : > { %v5456_v17 = vpop.f32.mrf.mxu0 }
 0x139   : > { %1601 = vmatmul.f32.gmra.mxu2 %v656_v32  ;;  %v5472_v38 = vpop.f32.mrf.mxu1 }
 0x13a   : > { %1830 = vmatmul.f32.gmra.mxu0 %v5320_v20  ;;  %v1552_v30 = vpop.f32.mrf.mxu3 }
 0x13c   : > { %v1424_v13 = vpop.f32.mrf.mxu2  ;;  %1735 = vmatmul.f32.gmra.mxu3 %v5396_v61  ;;  %v538_v61 = vld [vmem:[#allocation2 + $0xc0] sm:$0xff] }
 0x13d   : > { %v5459_v48 = vadd.f32 %v1537_v42, %v1424_v13  ;;  %v663_v42 = vld [vmem:[#allocation2 + $0x9a] sm:$0xff] }
 0x13e   : > { %1955 = vmatmul.f32.gmra.mxu1 %v663_v42 }
 0x13f   : > { %v5464_v22 = vpop.f32.mrf.mxu0 }
 0x141   : > { %1604 = vmatmul.f32.gmra.mxu2 %v657_v0  ;;  %v5480_v45 = vpop.f32.mrf.mxu1 }
 0x142   : > { %1833 = vmatmul.f32.gmra.mxu0 %v5329_v27  ;;  %v1555_v59 = vpop.f32.mrf.mxu3 }
 0x144   : > { %v1427_v20 = vpop.f32.mrf.mxu2  ;;  %1738 = vmatmul.f32.gmra.mxu3 %v538_v61 }
 0x145   : > { %v5467_v31 = vadd.f32 %v1540_v51, %v1427_v20 }
 0x147   : > { %v5470_v32 = vpop.f32.mrf.mxu0 }
 0x149   : > { %1607 = vmatmul.f32.gmra.mxu2 %v658_v52  ;;  %v5483_v52 = vld [vmem:[#allocation2 + $0xaa] sm:$0xff] }
 0x14a   : > { %1836 = vmatmul.f32.gmra.mxu0 %v5338_v34  ;;  %v1558_v51 = vpop.f32.mrf.mxu3  ;;  %1958 = vmatmul.f32.gmra.mxu1 %v5483_v52 }
 0x14c   : > { %v1430_v27 = vpop.f32.mrf.mxu2 }
 0x14d   : > { %v5475_v0 = vadd.f32 %v1543_v1, %v1430_v27  ;;  %v1317_v1 = vld [vmem:[#allocation8 + $0x3c0] sm:$0xff]  ;;  %v1316_v27 = vld [vmem:[#allocation8 + $0x3b8] sm:$0xff] }
 0x14e   : > { %2139 = vmatpush.msra.mxu3 %v1317_v1  ;;  %v3346_v1 = vld [vmem:[#allocation10 + $0x78] sm:$0xff] }
 0x14f   : > { %7107 = vst [vmem:[#allocation15_spill] sm:$0xff] %v5475_v0  ;;  %v5478_v46 = vpop.f32.mrf.mxu0  ;;  %3475 = vmatpush.msra.mxu1 %v3346_v1 }
 0x150   : > { %2140 = vmatpush.msra.mxu3 %v1316_v27  ;;  %v542_v27 = vld [vmem:[#allocation2 + $0xf0] sm:$0xff] }
 0x151   : > { %1610 = vmatmul.f32.gmra.mxu2 %v659_v2 }
 0x152   : > { %1839 = vmatmul.f32.gmra.mxu0 %v5347_v41  ;;  %v5491_v41 = vpop.f32.mrf.mxu1  ;;  %v1561_v9 = vpop.f32.mrf.mxu3  ;;  %1961 = vmatmul.f32.gmra.mxu1 %v5493_v6 }
 0x154   : > { %v1433_v34 = vpop.f32.mrf.mxu2 }
 0x155   : > { %v5485_v58 = vadd.f32 %v1546_v11, %v1433_v34 }
 0x157   : > { %7108 = vst [vmem:[#allocation16_spill] sm:$0xff] %v5485_v58  ;;  %v5488_v5 = vpop.f32.mrf.mxu0  ;;  %v606_v58 = vld [vmem:[#allocation2 + $0xf1] sm:$0xff] }
 0x159   : > { %1613 = vmatmul.f32.gmra.mxu2 %v660_v14  ;;  %v539_v14 = vld [vmem:[#allocation2 + $0xc8] sm:$0xff] }
 0x15a   : > { %1842 = vmatmul.f32.gmra.mxu0 %v5356_v49  ;;  %1741 = vmatmul.f32.gmra.mxu3 %v539_v14  ;;  %v5501_v13 = vpop.f32.mrf.mxu3 }
 0x15b   : > { %1964 = vmatmul.f32.gmra.mxu1 %v5503_v28 }
 0x15c   : > { %v1436_v2 = vpop.f32.mrf.mxu2 }
 0x15d   : > { %v5495_v11 = vadd.f32 %v1549_v21, %v1436_v2  ;;  %v5507_v21 = vpop.f32.mrf.mxu1  ;;  %v541_v2 = vld [vmem:[#allocation2 + $0xe0] sm:$0xff] }
 0x15f   : > { %7109 = vst [vmem:[#allocation17_spill] sm:$0xff] %v5495_v11  ;;  %v5498_v7 = vpop.f32.mrf.mxu0 }
 0x161   : > { %1616 = vmatmul.f32.gmra.mxu2 %v661_v23  ;;  %v1300_v23 = vld [vmem:[#allocation8 + $0x338] sm:$0xff] }
 0x162   : > { %1845 = vmatmul.f32.gmra.mxu0 %v5365_v57  ;;  %1744 = vmatmul.f32.gmra.mxu3 %v540_v39  ;;  %v5513_v60 = vpop.f32.mrf.mxu3 }
 0x163   : > { %2027 = vmatpush.msra.mxu2 %v1300_v23  ;;  %v603_v23 = vld [vmem:[#allocation2 + $0xc9] sm:$0xff] }
 0x164   : > { %v1439_v49 = vpop.f32.mrf.mxu2 }
 0x165   : > { %v5505_v20 = vadd.f32 %v1552_v30, %v1439_v49  ;;  %v5515_v30 = vld [vmem:[#allocation2 + $0xca] sm:$0xff] }
 0x166   : > { %1967 = vmatmul.f32.gmra.mxu1 %v5515_v30 }
 0x167   : > { %7111 = vst [vmem:[#allocation19_spill] sm:$0xff] %v5505_v20  ;;  %v5510_v36 = vpop.f32.mrf.mxu0  ;;  %v5546_v20 = vld [vmem:[#allocation2 + $0xf2] sm:$0xff] }
 0x169   : > { %1619 = vmatmul.f32.gmra.mxu2 %v662_v54  ;;  %v5522_v54 = vpop.f32.mrf.mxu1 }
 0x16a   : > { %1848 = vmatmul.f32.gmra.mxu0 %v5374_v8  ;;  %1747 = vmatmul.f32.gmra.mxu3 %v541_v2  ;;  %v1332_v8 = vld [vmem:[#allocation8 + $0x438] sm:$0xff]  ;;  %v5524_v19 = vpop.f32.mrf.mxu3 }
 0x16b   : > { %2253 = vmatpush.msra.mxu0 %v1332_v8 }
 0x16c   : > { %v1442_v57 = vpop.f32.mrf.mxu2 }
 0x16d   : > { %v5517_v34 = vadd.f32 %v1555_v59, %v1442_v57  ;;  %v5526_v59 = vld [vmem:[#allocation2 + $0xda] sm:$0xff]  ;;  %v1299_v57 = vld [vmem:[#allocation8 + $0x330] sm:$0xff] }
 0x16e   : > { %1970 = vmatmul.f32.gmra.mxu1 %v5526_v59  ;;  %2028 = vmatpush.msra.mxu2 %v1299_v57 }
 0x16f   : > { %7112 = vst [vmem:[#allocation20_spill] sm:$0xff] %v5517_v34  ;;  %v5520_v61 = vpop.f32.mrf.mxu0  ;;  %v543_v34 = vld [vmem:[#allocation2 + $0xf8] sm:$0xff] }
 0x171   : > { %1622 = vmatmul.f32.gmra.mxu2 %v663_v42  ;;  %v5534_v42 = vpop.f32.mrf.mxu1 }
 0x172   : > { %1851 = vmatmul.f32.gmra.mxu0 %v602_v62  ;;  %1750 = vmatmul.f32.gmra.mxu3 %v542_v27  ;;  %v1315_v62 = vld [vmem:[#allocation8 + $0x3b0] sm:$0xff]  ;;  %v5536_v2 = vpop.f32.mrf.mxu3 }
 0x173   : > { %2141 = vmatpush.msra.mxu3 %v1315_v62  ;;  %v1331_v27 = vld [vmem:[#allocation8 + $0x430] sm:$0xff] }
 0x174   : > { %v1445_v14 = vpop.f32.mrf.mxu2  ;;  %2254 = vmatpush.msra.mxu0 %v1331_v27  ;;  %v1314_v27 = vld [vmem:[#allocation8 + $0x3a8] sm:$0xff] }
 0x175   : > { %v5528_v49 = vadd.f32 %v1558_v51, %v1445_v14  ;;  %v5538_v51 = vld [vmem:[#allocation2 + $0xe2] sm:$0xff]  ;;  %2142 = vmatpush.msra.mxu3 %v1314_v27 }
 0x176   : > { %1973 = vmatmul.f32.gmra.mxu1 %v5538_v51 }
 0x177   : > { %7113 = vst [vmem:[#allocation21_spill] sm:$0xff] %v5528_v49  ;;  %v5531_v39 = vpop.f32.mrf.mxu0  ;;  %v604_v49 = vld [vmem:[#allocation2 + $0xd9] sm:$0xff] }
 0x179   : > { %1625 = vmatmul.f32.gmra.mxu2 %v5483_v52  ;;  %v3345_v52 = vld [vmem:[#allocation10 + $0x70] sm:$0xff] }
 0x17a   : > { %1854 = vmatmul.f32.gmra.mxu0 %v603_v23  ;;  %3476 = vmatpush.msra.mxu1 %v3345_v52  ;;  %v1923_v23 = vpop.f32.mrf.mxu1  ;;  %v5544_v62 = vpop.f32.mrf.mxu3  ;;  %v605_v52 = vld [vmem:[#allocation2 + $0xe1] sm:$0xff] }
 0x17b   : > { %1753 = vmatmul.f32.gmra.mxu3 %v543_v34  ;;  %v1472_v34 = vadd.f32 %v5392_v50, %v5401_v3  ;;  %v1475_v3 = vadd.f32 %v5398_v63, %v5407_v16  ;;  %v1297_v16 = vld [vmem:[#allocation8 + $0x320] sm:$0xff] }
 0x17c   : > { %v1448_v1 = vpop.f32.mrf.mxu2 }
 0x17d   : > { %v5540_v8 = vadd.f32 %v1561_v9, %v1448_v1 }
 0x17e   : > { %1976 = vmatmul.f32.gmra.mxu1 %v5546_v20 }
 0x17f   : > { %7114 = vst [vmem:[#allocation22_spill] sm:$0xff] %v5540_v8  ;;  %v1810_v14 = vpop.f32.mrf.mxu0  ;;  %v544_v8 = vld [vmem:[#allocation2 + $0x108] sm:$0xff] }
 0x181   : > { %1628 = vmatmul.f32.gmra.mxu2 %v5493_v6  ;;  %v1298_v6 = vld [vmem:[#allocation8 + $0x328] sm:$0xff] }
 0x182   : > { %1857 = vmatmul.f32.gmra.mxu0 %v604_v49  ;;  %2029 = vmatpush.msra.mxu2 %v1298_v6  ;;  %v1926_v49 = vpop.f32.mrf.mxu1  ;;  %v545_v6 = vld [vmem:[#allocation2 + $0x110] sm:$0xff] }
 0x183   : > { %1756 = vmatmul.f32.gmra.mxu3 %v544_v8 }
 0x184   : > { %v1451_v57 = vpop.f32.mrf.mxu2  ;;  %2030 = vmatpush.msra.mxu2 %v1297_v16  ;;  %v3343_v16 = vld [vmem:[#allocation10 + $0x60] sm:$0xff] }
 0x185   : > { %v5549_v9 = vadd.f32 %v5501_v13, %v1451_v57  ;;  %v5555_v13 = vpop.f32.mrf.mxu3  ;;  %v5557_v57 = vld [vmem:[#allocation2 + $0xfa] sm:$0xff] }
 0x186   : > { %1979 = vmatmul.f32.gmra.mxu1 %v5557_v57 }
 0x187   : > { %7115 = vst [vmem:[#allocation23_spill] sm:$0xff] %v5549_v9  ;;  %v1813_v1 = vpop.f32.mrf.mxu0 }
 0x189   : > { %1631 = vmatmul.f32.gmra.mxu2 %v5503_v28 }
 0x18a   : > { %1860 = vmatmul.f32.gmra.mxu0 %v605_v52  ;;  %v3344_v52 = vld [vmem:[#allocation10 + $0x68] sm:$0xff] }
 0x18b   : > { %3477 = vmatpush.msra.mxu1 %v3344_v52  ;;  %1759 = vmatmul.f32.gmra.mxu3 %v545_v6  ;;  %v1929_v52 = vpop.f32.mrf.mxu1  ;;  %v546_v6 = vld [vmem:[#allocation2 + $0x120] sm:$0xff] }
 0x18c   : > { %v1584_v11 = vpop.f32.mrf.mxu2 }
 0x18d   : > { %v1585_v9 = vadd.f32 %v1584_v11, %v1472_v34  ;;  %v1330_v11 = vld [vmem:[#allocation8 + $0x428] sm:$0xff]  ;;  %v5566_v0 = vpop.f32.mrf.mxu3  ;;  %3478 = vmatpush.msra.mxu1 %v3343_v16  ;;  %v1484_v16 = vadd.f32 %v5418_v29, %v5432_v40  ;;  %v1487_v40 = vadd.f32 %v5426_v37, %v5440_v55  ;;  %v1295_v55 = vld [vmem:[#allocation8 + $0x310] sm:$0xff] }
 0x18e   : > { %2255 = vmatpush.msra.mxu0 %v1330_v11 }
 0x18f   : > { %v1698_v28 = vadd.f32 %v5513_v60, %v1585_v9  ;;  %v1816_v8 = vpop.f32.mrf.mxu0  ;;  %v5568_v60 = vld [vmem:[#allocation2 + $0x10a] sm:$0xff] }
 0x190   : > { %1982 = vmatmul.f32.gmra.mxu1 %v5568_v60 }
 0x191   : > { %1634 = vmatmul.f32.gmra.mxu2 %v5515_v30  ;;  %v1811_v50 = vadd.f32 %v1810_v14, %v1698_v28 }
 0x192   : > { %1863 = vmatmul.f32.gmra.mxu0 %v606_v58  ;;  %v607_v58 = vld [vmem:[#allocation2 + $0xf9] sm:$0xff] }
 0x193   : > { %v5564_v27 = vadd.f32 %v1923_v23, %v1811_v50  ;;  %1762 = vmatmul.f32.gmra.mxu3 %v546_v6  ;;  %v1478_v23 = vadd.f32 %v5404_v10, %v5416_v26  ;;  %v1932_v6 = vpop.f32.mrf.mxu1  ;;  %v547_v10 = vld [vmem:[#allocation2 + $0x128] sm:$0xff] }
 0x194   : > { %v1587_v34 = vpop.f32.mrf.mxu2 }
 0x195   : > { %v1588_v9 = vadd.f32 %v1587_v34, %v1475_v3  ;;  %v1313_v3 = vld [vmem:[#allocation8 + $0x3a0] sm:$0xff]  ;;  %v5577_v34 = vpop.f32.mrf.mxu3 }
 0x196   : > { %2143 = vmatpush.msra.mxu3 %v1313_v3 }
 0x197   : > { %v1701_v28 = vadd.f32 %v5524_v19, %v1588_v9  ;;  %v1819_v14 = vpop.f32.mrf.mxu0  ;;  %v5579_v19 = vld [vmem:[#allocation2 + $0x112] sm:$0xff] }
 0x198   : > { %1985 = vmatmul.f32.gmra.mxu1 %v5579_v19 }
 0x199   : > { %1637 = vmatmul.f32.gmra.mxu2 %v5526_v59  ;;  %v1814_v63 = vadd.f32 %v1813_v1, %v1701_v28 }
 0x19a   : > { %1866 = vmatmul.f32.gmra.mxu0 %v607_v58  ;;  %v608_v58 = vld [vmem:[#allocation2 + $0x109] sm:$0xff] }
 0x19b   : > { %v5575_v50 = vadd.f32 %v1926_v49, %v1814_v63  ;;  %1765 = vmatmul.f32.gmra.mxu3 %v547_v10  ;;  %v1481_v49 = vadd.f32 %v5410_v18, %v5424_v33  ;;  %v1935_v33 = vpop.f32.mrf.mxu1 }
 0x19c   : > { %v1590_v11 = vpop.f32.mrf.mxu2 }
 0x19d   : > { %v1591_v9 = vadd.f32 %v1590_v11, %v1478_v23  ;;  %v1329_v23 = vld [vmem:[#allocation8 + $0x420] sm:$0xff] }
 0x19e   : > { %2256 = vmatpush.msra.mxu0 %v1329_v23  ;;  %v5590_v11 = vld [vmem:[#allocation2 + $0x122] sm:$0xff]  ;;  %v5601_v23 = vld [vmem:[#allocation2 + $0x12a] sm:$0xff] }
 0x19f   : > { %v1704_v1 = vadd.f32 %v5536_v2, %v1591_v9  ;;  %v1822_v28 = vpop.f32.mrf.mxu0  ;;  %v5588_v2 = vpop.f32.mrf.mxu3 }
 0x1a0   : > { %1988 = vmatmul.f32.gmra.mxu1 %v5590_v11 }
 0x1a1   : > { %1640 = vmatmul.f32.gmra.mxu2 %v5538_v51  ;;  %v1817_v26 = vadd.f32 %v1816_v8, %v1704_v1  ;;  %v609_v1 = vld [vmem:[#allocation2 + $0x111] sm:$0xff] }
 0x1a2   : > { %1869 = vmatmul.f32.gmra.mxu0 %v608_v58  ;;  %v548_v58 = vld [vmem:[#allocation2 + $0x138] sm:$0xff] }
 0x1a3   : > { %v5586_v63 = vadd.f32 %v1929_v52, %v1817_v26  ;;  %1768 = vmatmul.f32.gmra.mxu3 %v548_v58  ;;  %v1296_v52 = vld [vmem:[#allocation8 + $0x318] sm:$0xff]  ;;  %v549_v58 = vld [vmem:[#allocation2 + $0x140] sm:$0xff] }
 0x1a4   : > { %v1593_v3 = vpop.f32.mrf.mxu2  ;;  %2031 = vmatpush.msra.mxu2 %v1296_v52  ;;  %v1312_v26 = vld [vmem:[#allocation8 + $0x398] sm:$0xff] }
 0x1a5   : > { %v1594_v9 = vadd.f32 %v1593_v3, %v1481_v49  ;;  %2144 = vmatpush.msra.mxu3 %v1312_v26  ;;  %v1328_v52 = vld [vmem:[#allocation8 + $0x418] sm:$0xff] }
 0x1a6   : > { %2257 = vmatpush.msra.mxu0 %v1328_v52  ;;  %v5612_v26 = vld [vmem:[#allocation2 + $0x13a] sm:$0xff]  ;;  %2032 = vmatpush.msra.mxu2 %v1295_v55 }
 0x1a7   : > { %v1707_v51 = vadd.f32 %v5544_v62, %v1594_v9  ;;  %v1825_v8 = vpop.f32.mrf.mxu0  ;;  %v5599_v62 = vpop.f32.mrf.mxu3 }
 0x1a8   : > { %1991 = vmatmul.f32.gmra.mxu1 %v5601_v23 }
 0x1a9   : > { %1643 = vmatmul.f32.gmra.mxu2 %v5546_v20  ;;  %v1820_v18 = vadd.f32 %v1819_v14, %v1707_v51  ;;  %v610_v51 = vld [vmem:[#allocation2 + $0x121] sm:$0xff] }
 0x1aa   : > { %1872 = vmatmul.f32.gmra.mxu0 %v609_v1  ;;  %v3342_v1 = vld [vmem:[#allocation10 + $0x58] sm:$0xff] }
 0x1ab   : > { %v5597_v10 = vadd.f32 %v1932_v6, %v1820_v18  ;;  %3479 = vmatpush.msra.mxu1 %v3342_v1  ;;  %1771 = vmatmul.f32.gmra.mxu3 %v549_v58  ;;  %v1938_v18 = vpop.f32.mrf.mxu1  ;;  %v1311_v1 = vld [vmem:[#allocation8 + $0x390] sm:$0xff] }
 0x1ac   : > { %v1596_v49 = vpop.f32.mrf.mxu2  ;;  %2145 = vmatpush.msra.mxu3 %v1311_v1 }
 0x1ad   : > { %v1597_v3 = vadd.f32 %v1596_v49, %v1484_v16 }
 0x1af   : > { %v1710_v14 = vadd.f32 %v5555_v13, %v1597_v3  ;;  %v1828_v9 = vpop.f32.mrf.mxu0  ;;  %v5610_v13 = vpop.f32.mrf.mxu3  ;;  %v611_v3 = vld [vmem:[#allocation2 + $0x129] sm:$0xff] }
 0x1b0   : > { %1994 = vmatmul.f32.gmra.mxu1 %v5612_v26 }
 0x1b1   : > { %1646 = vmatmul.f32.gmra.mxu2 %v5557_v57  ;;  %v1823_v29 = vadd.f32 %v1822_v28, %v1710_v14  ;;  %v550_v14 = vld [vmem:[#allocation2 + $0x150] sm:$0xff] }
 0x1b2   : > { %1875 = vmatmul.f32.gmra.mxu0 %v610_v51 }
 0x1b3   : > { %v5608_v6 = vadd.f32 %v1935_v33, %v1823_v29  ;;  %1774 = vmatmul.f32.gmra.mxu3 %v550_v14  ;;  %v1490_v33 = vadd.f32 %v5434_v44, %v5448_v56  ;;  %v1941_v52 = vpop.f32.mrf.mxu1  ;;  %v551_v44 = vld [vmem:[#allocation2 + $0x158] sm:$0xff]  ;;  %v1327_v14 = vld [vmem:[#allocation8 + $0x410] sm:$0xff] }
 0x1b4   : > { %v1599_v16 = vpop.f32.mrf.mxu2  ;;  %2258 = vmatpush.msra.mxu0 %v1327_v14 }
 0x1b5   : > { %v1600_v49 = vadd.f32 %v1599_v16, %v1487_v40 }
 0x1b7   : > { %v1713_v57 = vadd.f32 %v5566_v0, %v1600_v49  ;;  %v1831_v28 = vpop.f32.mrf.mxu0  ;;  %v5621_v29 = vpop.f32.mrf.mxu3  ;;  %v5623_v0 = vld [vmem:[#allocation2 + $0x142] sm:$0xff]  ;;  %v612_v49 = vld [vmem:[#allocation2 + $0x139] sm:$0xff] }
 0x1b8   : > { %1997 = vmatmul.f32.gmra.mxu1 %v5623_v0 }
 0x1b9   : > { %1649 = vmatmul.f32.gmra.mxu2 %v5568_v60  ;;  %v1826_v37 = vadd.f32 %v1825_v8, %v1713_v57  ;;  %v3341_v57 = vld [vmem:[#allocation10 + $0x50] sm:$0xff] }
 0x1ba   : > { %1878 = vmatmul.f32.gmra.mxu0 %v611_v3  ;;  %3480 = vmatpush.msra.mxu1 %v3341_v57  ;;  %v1310_v57 = vld [vmem:[#allocation8 + $0x388] sm:$0xff] }
 0x1bb   : > { %v5619_v51 = vadd.f32 %v1938_v18, %v1826_v37  ;;  %1777 = vmatmul.f32.gmra.mxu3 %v551_v44  ;;  %v1493_v18 = vadd.f32 %v5442_v47, %v5456_v17  ;;  %v1294_v17 = vld [vmem:[#allocation8 + $0x308] sm:$0xff] }
 0x1bc   : > { %v1602_v58 = vpop.f32.mrf.mxu2  ;;  %2033 = vmatpush.msra.mxu2 %v1294_v17  ;;  %2146 = vmatpush.msra.mxu3 %v1310_v57  ;;  %v615_v57 = vld [vmem:[#allocation2 + $0x159] sm:$0xff] }
 0x1bd   : > { %v1603_v40 = vadd.f32 %v1602_v58, %v1490_v33  ;;  %v613_v58 = vld [vmem:[#allocation2 + $0x141] sm:$0xff] }
 0x1bf   : > { %v1716_v8 = vadd.f32 %v5577_v34, %v1603_v40  ;;  %v1834_v16 = vpop.f32.mrf.mxu0  ;;  %v5632_v55 = vpop.f32.mrf.mxu3  ;;  %v5634_v34 = vld [vmem:[#allocation2 + $0x152] sm:$0xff] }
 0x1c0   : > { %2000 = vmatmul.f32.gmra.mxu1 %v5634_v34  ;;  %v1944_v40 = vpop.f32.mrf.mxu1 }
 0x1c1   : > { %1652 = vmatmul.f32.gmra.mxu2 %v5579_v19  ;;  %v1829_v56 = vadd.f32 %v1828_v9, %v1716_v8  ;;  %v552_v8 = vld [vmem:[#allocation2 + $0x168] sm:$0xff] }
 0x1c2   : > { %1881 = vmatmul.f32.gmra.mxu0 %v612_v49 }
 0x1c3   : > { %v5630_v3 = vadd.f32 %v1941_v52, %v1829_v56  ;;  %1780 = vmatmul.f32.gmra.mxu3 %v552_v8  ;;  %v1496_v52 = vadd.f32 %v5451_v12, %v5464_v22  ;;  %v5645_v56 = vld [vmem:[#allocation2 + $0x15a] sm:$0xff]  ;;  %v5650_v12 = vld [vmem:[%s5159_s5 + $0xf0] sm:$0xff] }
 0x1c4   : > { %v1605_v37 = vpop.f32.mrf.mxu2  ;;  %330 = vst [vmem:[#allocation2 + $0x181] sm:$0xff] %v5650_v12 }
 0x1c5   : > { %v1606_v33 = vadd.f32 %v1605_v37, %v1493_v18  ;;  %v614_v37 = vld [vmem:[#allocation2 + $0x151] sm:$0xff] }
 0x1c7   : > { %v1719_v1 = vadd.f32 %v5588_v2, %v1606_v33  ;;  %v1837_v9 = vpop.f32.mrf.mxu0  ;;  %v5643_v2 = vpop.f32.mrf.mxu3  ;;  %v3340_v33 = vld [vmem:[#allocation10 + $0x48] sm:$0xff] }
 0x1c8   : > { %2003 = vmatmul.f32.gmra.mxu1 %v5645_v56 }
 0x1c9   : > { %1655 = vmatmul.f32.gmra.mxu2 %v5590_v11  ;;  %v1832_v47 = vadd.f32 %v1831_v28, %v1719_v1  ;;  %3481 = vmatpush.msra.mxu1 %v3340_v33  ;;  %v553_v1 = vld [vmem:[#allocation2 + $0x170] sm:$0xff] }
 0x1ca   : > { %1884 = vmatmul.f32.gmra.mxu0 %v613_v58  ;;  %v1499_v58 = vadd.f32 %v5461_v24, %v5470_v32  ;;  %v1293_v32 = vld [vmem:[#allocation8 + $0x300] sm:$0xff] }
 0x1cb   : > { %v5641_v49 = vadd.f32 %v1944_v40, %v1832_v47  ;;  %1783 = vmatmul.f32.gmra.mxu3 %v553_v1  ;;  %v5660_v47 = vld [vmem:[#allocation2 + $0x16a] sm:$0xff]  ;;  %2034 = vmatpush.msra.mxu2 %v1293_v32  ;;  %v5673_v1 = vld [vmem:[#allocation2 + $0x172] sm:$0xff] }
 0x1cc   : > { %v1608_v44 = vpop.f32.mrf.mxu2 }
 0x1cd   : > { %v1609_v18 = vadd.f32 %v1608_v44, %v1496_v52  ;;  %v554_v44 = vld [vmem:[#allocation2 + $0x180] sm:$0xff] }
 0x1cf   : > { %v1722_v28 = vadd.f32 %v5599_v62, %v1609_v18  ;;  %v1840_v14 = vpop.f32.mrf.mxu0  ;;  %v1326_v62 = vld [vmem:[#allocation8 + $0x408] sm:$0xff]  ;;  %v5658_v8 = vpop.f32.mrf.mxu3  ;;  %v5665_v18 = vld [vmem:[%s5159_s5 + $0xf8] sm:$0xff] }
 0x1d0   : > { %2259 = vmatpush.msra.mxu0 %v1326_v62  ;;  %2006 = vmatmul.f32.gmra.mxu1 %v5660_v47  ;;  %331 = vst [vmem:[#allocation2 + $0x189] sm:$0xff] %v5665_v18 }
 0x1d1   : > { %1658 = vmatmul.f32.gmra.mxu2 %v5601_v23  ;;  %v5653_v22 = vadd.f32 %v1834_v16, %v1722_v28  ;;  %v1502_v28 = vadd.f32 %v5472_v38, %v5478_v46  ;;  %v1505_v38 = vadd.f32 %v5480_v45, %v5488_v5  ;;  %v1325_v46 = vld [vmem:[#allocation8 + $0x400] sm:$0xff]  ;;  %v1508_v45 = vadd.f32 %v5491_v41, %v5498_v7 }
 0x1d2   : > { %1887 = vmatmul.f32.gmra.mxu0 %v614_v37  ;;  %v1309_v37 = vld [vmem:[#allocation8 + $0x380] sm:$0xff]  ;;  %v1511_v41 = vadd.f32 %v5507_v21, %v5510_v36 }
 0x1d3   : > { %1786 = vmatmul.f32.gmra.mxu3 %v554_v44  ;;  %2260 = vmatpush.msra.mxu0 %v1325_v46  ;;  %v3338_v46 = vld [vmem:[#allocation10 + $0x38] sm:$0xff] }
 0x1d4   : > { %v1611_v40 = vpop.f32.mrf.mxu2  ;;  %2147 = vmatpush.msra.mxu3 %v1309_v37 }
 0x1d5   : > { %v1612_v17 = vadd.f32 %v1611_v40, %v1499_v58  ;;  %v616_v40 = vld [vmem:[#allocation2 + $0x169] sm:$0xff] }
 0x1d7   : > { %v1725_v16 = vadd.f32 %v5610_v13, %v1612_v17  ;;  %v1843_v52 = vpop.f32.mrf.mxu0  ;;  %v1739_v33 = vpop.f32.mrf.mxu3  ;;  %v3339_v17 = vld [vmem:[#allocation10 + $0x40] sm:$0xff] }
 0x1d8   : > { %2009 = vmatmul.f32.gmra.mxu1 %v5673_v1 }
 0x1d9   : > { %1661 = vmatmul.f32.gmra.mxu2 %v5612_v26  ;;  %v5668_v24 = vadd.f32 %v1837_v9, %v1725_v16  ;;  %3482 = vmatpush.msra.mxu1 %v3339_v17  ;;  %v555_v16 = vld [vmem:[#allocation2 + $0x188] sm:$0xff]  ;;  %v781_v17 = vld [vmem:[#allocation2 + $0x31] sm:$0xff] }
 0x1da   : > { %1890 = vmatmul.f32.gmra.mxu0 %v615_v57 }
 0x1db   : > { %1789 = vmatmul.f32.gmra.mxu3 %v555_v16  ;;  %3483 = vmatpush.msra.mxu1 %v3338_v46  ;;  %v717_v46 = vld [vmem:[#allocation2 + $0x30] sm:$0xff] }
 0x1dc   : > { %v1614_v13 = vpop.f32.mrf.mxu2 }
 0x1dd   : > { %v1615_v58 = vadd.f32 %v1614_v13, %v1502_v28  ;;  %v682_v28 = vld [vmem:[#allocation2 + $0x182] sm:$0xff] }
 0x1df   : > { %v1728_v9 = vadd.f32 %v5621_v29, %v1615_v58  ;;  %v1846_v62 = vpop.f32.mrf.mxu0  ;;  %v1742_v32 = vpop.f32.mrf.mxu3  ;;  %v617_v58 = vld [vmem:[#allocation2 + $0x171] sm:$0xff] }
 0x1e0   : > { %2012 = vmatmul.f32.gmra.mxu1 %v682_v28 }
 0x1e1   : > { %1664 = vmatmul.f32.gmra.mxu2 %v5623_v0  ;;  %v5678_v57 = vadd.f32 %v1840_v14, %v1728_v9 }
 0x1e2   : > { %1893 = vmatmul.f32.gmra.mxu0 %v616_v40  ;;  %v683_v40 = vld [vmem:[#allocation2 + $0x18a] sm:$0xff] }
 0x1e3   : > { %2148 = vmatmul.f32.vlgmr.msra.gmra.mxu3 %v781_v17 }
 0x1e4   : > { %v1617_v44 = vpop.f32.mrf.mxu2 }
 0x1e5   : > { %v1618_v29 = vadd.f32 %v1617_v44, %v1505_v38  ;;  %v782_v44 = vld [vmem:[#allocation2 + $0x39] sm:$0xff] }
 0x1e7   : > { %v1731_v37 = vadd.f32 %v5632_v55, %v1618_v29  ;;  %v1849_v13 = vpop.f32.mrf.mxu0  ;;  %v1745_v9 = vpop.f32.mrf.mxu3 }
 0x1e8   : > { %2015 = vmatmul.f32.gmra.mxu1 %v683_v40  ;;  %v845_v40 = vld [vmem:[#allocation2 + $0x32] sm:$0xff] }
 0x1e9   : > { %1667 = vmatmul.f32.gmra.mxu2 %v5634_v34  ;;  %v5684_v14 = vadd.f32 %v1843_v52, %v1731_v37 }
 0x1ea   : > { %1896 = vmatmul.f32.gmra.mxu0 %v617_v58  ;;  %v783_v58 = vld [vmem:[#allocation2 + $0x49] sm:$0xff] }
 0x1eb   : > { %2151 = vmatmul.f32.gmra.mxu3 %v782_v44 }
 0x1ec   : > { %v1620_v5 = vpop.f32.mrf.mxu2 }
 0x1ed   : > { %v1621_v16 = vadd.f32 %v1620_v5, %v1508_v45 }
 0x1ef   : > { %v1734_v38 = vadd.f32 %v5643_v2, %v1621_v16  ;;  %v1852_v55 = vpop.f32.mrf.mxu0  ;;  %v1748_v28 = vpop.f32.mrf.mxu3  ;;  %v3337_v16 = vld [vmem:[#allocation10 + $0x30] sm:$0xff] }
 0x1f0   : > { %3484 = vmatpush.msra.mxu1 %v3337_v16  ;;  %v719_v16 = vld [vmem:[#allocation2 + $0x48] sm:$0xff] }
 0x1f1   : > { %1670 = vmatmul.f32.gmra.mxu2 %v5645_v56  ;;  %v5690_v52 = vadd.f32 %v1846_v62, %v1734_v38 }
 0x1f2   : > { %1899 = vmatmul.f32.gmra.mxu0 %v5650_v12  ;;  %v1514_v12 = vadd.f32 %v5522_v54, %v5520_v61 }
 0x1f3   : > { %2154 = vmatmul.f32.gmra.mxu3 %v783_v58  ;;  %v718_v58 = vld [vmem:[#allocation2 + $0x38] sm:$0xff] }
 0x1f4   : > { %v1623_v7 = vpop.f32.mrf.mxu2 }
 0x1f5   : > { %v1624_v29 = vadd.f32 %v1623_v7, %v1511_v41  ;;  %v846_v41 = vld [vmem:[#allocation2 + $0x3a] sm:$0xff] }
 0x1f6   : > { %v785_v7 = vld [vmem:[#allocation2 + $0x61] sm:$0xff] }
 0x1f7   : > { %v1737_v37 = vadd.f32 %v5658_v8, %v1624_v29  ;;  %v1855_v2 = vpop.f32.mrf.mxu0  ;;  %v1751_v45 = vpop.f32.mrf.mxu3  ;;  %v784_v8 = vld [vmem:[#allocation2 + $0x51] sm:$0xff] }
 0x1f9   : > { %1673 = vmatmul.f32.gmra.mxu2 %v5660_v47  ;;  %v5697_v17 = vadd.f32 %v1849_v13, %v1737_v37 }
 0x1fa   : > { %1902 = vmatmul.f32.gmra.mxu0 %v5665_v18  ;;  %v1517_v18 = vadd.f32 %v5534_v42, %v5531_v39  ;;  %v847_v42 = vld [vmem:[#allocation2 + $0x4a] sm:$0xff] }
 0x1fb   : > { %2157 = vmatmul.f32.gmra.mxu3 %v784_v8  ;;  %v5713_v8 = vpop.f32.mrf.mxu1 }
 0x1fc   : > { %v1626_v62 = vpop.f32.mrf.mxu2 }
 0x1fd   : > { %v1627_v21 = vadd.f32 %v1626_v62, %v1514_v12  ;;  %v3336_v62 = vld [vmem:[#allocation10 + $0x28] sm:$0xff] }
 0x1fe   : > { %3485 = vmatpush.msra.mxu1 %v3336_v62 }
 0x1ff   : > { %v1740_v36 = vadd.f32 %v1739_v33, %v1627_v21  ;;  %v1858_v5 = vpop.f32.mrf.mxu0  ;;  %v1754_v61 = vpop.f32.mrf.mxu3  ;;  %v786_v21 = vld [vmem:[#allocation2 + $0x69] sm:$0xff] }
 0x201   : > { %1676 = vmatmul.f32.gmra.mxu2 %v5673_v1  ;;  %v5703_v38 = vadd.f32 %v1852_v55, %v1740_v36 }
 0x202   : > { %2261 = vmatmul.f32.vlgmr.msra.gmra.mxu0 %v845_v40 }
 0x203   : > { %2160 = vmatmul.f32.gmra.mxu3 %v785_v7 }
 0x204   : > { %v1629_v13 = vpop.f32.mrf.mxu2 }
 0x205   : > { %v1630_v54 = vadd.f32 %v1629_v13, %v1517_v18  ;;  %v787_v13 = vld [vmem:[#allocation2 + $0x79] sm:$0xff] }
 0x207   : > { %v1743_v44 = vadd.f32 %v1742_v32, %v1630_v54  ;;  %v1861_v33 = vpop.f32.mrf.mxu0  ;;  %v1757_v55 = vpop.f32.mrf.mxu3 }
 0x209   : > { %2035 = vmatmul.f32.vlgmr.msra.gmra.mxu2 %v717_v46  ;;  %v5707_v29 = vadd.f32 %v1855_v2, %v1743_v44 }
 0x20a   : > { %2264 = vmatmul.f32.gmra.mxu0 %v846_v41  ;;  %v720_v41 = vld [vmem:[#allocation2 + $0x50] sm:$0xff] }
 0x20b   : > { %2163 = vmatmul.f32.gmra.mxu3 %v786_v21  ;;  %v721_v21 = vld [vmem:[#allocation2 + $0x60] sm:$0xff] }
 0x20c   : > { %v1632_v1 = vpop.f32.mrf.mxu2 }
 0x20d   : > { %v1633_v37 = vadd.f32 %v1632_v1, %v5413_v25 }
 0x20f   : > { %v1746_v12 = vadd.f32 %v1745_v9, %v1633_v37  ;;  %v1864_v39 = vpop.f32.mrf.mxu0  ;;  %v1760_v36 = vpop.f32.mrf.mxu3  ;;  %v848_v9 = vld [vmem:[#allocation2 + $0x52] sm:$0xff]  ;;  %v3335_v37 = vld [vmem:[#allocation10 + $0x20] sm:$0xff] }
 0x210   : > { %3486 = vmatpush.msra.mxu1 %v3335_v37 }
 0x211   : > { %2038 = vmatmul.f32.gmra.mxu2 %v718_v58  ;;  %v5710_v32 = vadd.f32 %v1858_v5, %v1746_v12  ;;  %v788_v58 = vld [vmem:[#allocation2 + $0x81] sm:$0xff] }
 0x212   : > { %2267 = vmatmul.f32.gmra.mxu0 %v847_v42 }
 0x213   : > { %2166 = vmatmul.f32.gmra.mxu3 %v787_v13 }
 0x214   : > { %v1635_v2 = vpop.f32.mrf.mxu2 }
 0x215   : > { %v1636_v40 = vadd.f32 %v1635_v2, %v5421_v35  ;;  %v849_v35 = vld [vmem:[#allocation2 + $0x62] sm:$0xff] }
 0x217   : > { %v1749_v25 = vadd.f32 %v1748_v28, %v1636_v40  ;;  %v1867_v18 = vpop.f32.mrf.mxu0  ;;  %v1763_v46 = vpop.f32.mrf.mxu3  ;;  %v789_v40 = vld [vmem:[#allocation2 + $0x91] sm:$0xff] }
 0x218   : > { %v5718_v28 = vpop.f32.mrf.mxu1 }
 0x219   : > { %2041 = vmatmul.f32.gmra.mxu2 %v719_v16  ;;  %v5715_v54 = vadd.f32 %v1861_v33, %v1749_v25 }
 0x21a   : > { %2270 = vmatmul.f32.gmra.mxu0 %v848_v9 }
 0x21b   : > { %2169 = vmatmul.f32.gmra.mxu3 %v788_v58 }
 0x21c   : > { %v1638_v5 = vpop.f32.mrf.mxu2 }
 0x21d   : > { %v1639_v44 = vadd.f32 %v1638_v5, %v5429_v43  ;;  %v722_v5 = vld [vmem:[#allocation2 + $0x68] sm:$0xff] }
 0x21f   : > { %v1752_v7 = vadd.f32 %v1751_v45, %v1639_v44  ;;  %v1870_v1 = vpop.f32.mrf.mxu0  ;;  %v1766_v42 = vpop.f32.mrf.mxu3  ;;  %v850_v45 = vld [vmem:[#allocation2 + $0x6a] sm:$0xff] }
 0x220   : > { %v5725_v25 = vpop.f32.mrf.mxu1 }
 0x221   : > { %2044 = vmatmul.f32.gmra.mxu2 %v720_v41  ;;  %v5720_v12 = vadd.f32 %v1864_v39, %v1752_v7  ;;  %v3334_v7 = vld [vmem:[#allocation10 + $0x18] sm:$0xff] }
 0x222   : > { %2273 = vmatmul.f32.gmra.mxu0 %v849_v35  ;;  %3487 = vmatpush.msra.mxu1 %v3334_v7  ;;  %v3333_v7 = vld [vmem:[#allocation10 + $0x10] sm:$0xff] }
 0x223   : > { %2172 = vmatmul.f32.gmra.mxu3 %v789_v40 }
 0x224   : > { %v1641_v33 = vpop.f32.mrf.mxu2  ;;  %3488 = vmatpush.msra.mxu1 %v3333_v7 }
 0x225   : > { %v1642_v62 = vadd.f32 %v1641_v33, %v5437_v53  ;;  %v851_v53 = vld [vmem:[#allocation2 + $0x7a] sm:$0xff] }
 0x227   : > { %v1755_v43 = vadd.f32 %v1754_v61, %v1642_v62  ;;  %v1873_v2 = vpop.f32.mrf.mxu0  ;;  %v1769_v9 = vpop.f32.mrf.mxu3  ;;  %v790_v61 = vld [vmem:[#allocation2 + $0x99] sm:$0xff] }
 0x228   : > { %v5730_v58 = vpop.f32.mrf.mxu1  ;;  %v723_v62 = vld [vmem:[#allocation2 + $0x78] sm:$0xff] }
 0x229   : > { %2047 = vmatmul.f32.gmra.mxu2 %v721_v21  ;;  %v5723_v16 = vadd.f32 %v1867_v18, %v1755_v43  ;;  %v791_v43 = vld [vmem:[#allocation2 + $0xa9] sm:$0xff] }
 0x22a   : > { %2276 = vmatmul.f32.gmra.mxu0 %v850_v45 }
 0x22b   : > { %2175 = vmatmul.f32.gmra.mxu3 %v790_v61 }
 0x22c   : > { %v1644_v39 = vpop.f32.mrf.mxu2 }
 0x22d   : > { %v1645_v13 = vadd.f32 %v1644_v39, %v5445_v4 }
 0x22f   : > { %v1758_v44 = vadd.f32 %v1757_v55, %v1645_v13  ;;  %v1876_v41 = vpop.f32.mrf.mxu0  ;;  %v1772_v37 = vpop.f32.mrf.mxu3  ;;  %v852_v55 = vld [vmem:[#allocation2 + $0x82] sm:$0xff] }
 0x230   : > { %v724_v13 = vld [vmem:[#allocation2 + $0x80] sm:$0xff] }
 0x231   : > { %2050 = vmatmul.f32.gmra.mxu2 %v722_v5  ;;  %v5728_v35 = vadd.f32 %v1870_v1, %v1758_v44  ;;  %v5736_v5 = vpop.f32.mrf.mxu1 }
 0x232   : > { %2279 = vmatmul.f32.gmra.mxu0 %v851_v53 }
 0x233   : > { %7116 = vst [vmem:[#allocation24_spill] sm:$0xff] %v5728_v35  ;;  %2178 = vmatmul.f32.gmra.mxu3 %v791_v43  ;;  %v793_v43 = vld [vmem:[#allocation2 + $0xc1] sm:$0xff]  ;;  %v733_v35 = vld [vmem:[#allocation2 + $0xf0] sm:$0xff] }
 0x234   : > { %v1647_v18 = vpop.f32.mrf.mxu2 }
 0x235   : > { %v1648_v33 = vadd.f32 %v1647_v18, %v5453_v15  ;;  %v853_v15 = vld [vmem:[#allocation2 + $0x92] sm:$0xff] }
 0x237   : > { %v1761_v4 = vadd.f32 %v1760_v36, %v1648_v33  ;;  %v1879_v21 = vpop.f32.mrf.mxu0  ;;  %v1775_v40 = vpop.f32.mrf.mxu3  ;;  %v792_v36 = vld [vmem:[#allocation2 + $0xb1] sm:$0xff] }
 0x239   : > { %2053 = vmatmul.f32.gmra.mxu2 %v723_v62  ;;  %v5733_v45 = vadd.f32 %v1873_v2, %v1761_v4  ;;  %v725_v62 = vld [vmem:[#allocation2 + $0x90] sm:$0xff] }
 0x23a   : > { %2282 = vmatmul.f32.gmra.mxu0 %v852_v55  ;;  %v854_v55 = vld [vmem:[#allocation2 + $0x9a] sm:$0xff] }
 0x23b   : > { %7117 = vst [vmem:[#allocation25_spill] sm:$0xff] %v5733_v45  ;;  %2181 = vmatmul.f32.gmra.mxu3 %v792_v36  ;;  %v855_v36 = vld [vmem:[#allocation2 + $0xaa] sm:$0xff] }
 0x23c   : > { %v1650_v1 = vpop.f32.mrf.mxu2 }
 0x23d   : > { %v1651_v39 = vadd.f32 %v1650_v1, %v5459_v48 }
 0x23f   : > { %v1764_v44 = vadd.f32 %v1763_v46, %v1651_v39  ;;  %v1882_v53 = vpop.f32.mrf.mxu0  ;;  %v1778_v18 = vpop.f32.mrf.mxu3 }
 0x240   : > { %v5741_v46 = vpop.f32.mrf.mxu1 }
 0x241   : > { %2056 = vmatmul.f32.gmra.mxu2 %v724_v13  ;;  %v5738_v61 = vadd.f32 %v1876_v41, %v1764_v44  ;;  %v7120_v13 = vld [vmem:[#allocation15_spill] sm:$0xff] }
 0x242   : > { %2285 = vmatmul.f32.gmra.mxu0 %v853_v15  ;;  %v726_v15 = vld [vmem:[#allocation2 + $0x98] sm:$0xff] }
 0x243   : > { %7118 = vst [vmem:[#allocation26_spill] sm:$0xff] %v5738_v61  ;;  %2184 = vmatmul.f32.gmra.mxu3 %v793_v43 }
 0x244   : > { %v1653_v2 = vpop.f32.mrf.mxu2 }
 0x245   : > { %v1654_v33 = vadd.f32 %v1653_v2, %v5467_v31  ;;  %v794_v2 = vld [vmem:[#allocation2 + $0xc9] sm:$0xff] }
 0x247   : > { %v1767_v48 = vadd.f32 %v1766_v42, %v1654_v33  ;;  %v1885_v4 = vpop.f32.mrf.mxu0  ;;  %v5745_v39 = vpop.f32.mrf.mxu3  ;;  %v3332_v42 = vld [vmem:[#allocation10 + $0x8] sm:$0xff] }
 0x248   : > { %3489 = vmatpush.msra.mxu1 %v3332_v42 }
 0x249   : > { %2059 = vmatmul.f32.gmra.mxu2 %v725_v62  ;;  %v5743_v1 = vadd.f32 %v1879_v21, %v1767_v48  ;;  %v5750_v21 = vpop.f32.mrf.mxu1 }
 0x24a   : > { %2288 = vmatmul.f32.gmra.mxu0 %v854_v55  ;;  %v7122_v55 = vld [vmem:[#allocation16_spill] sm:$0xff] }
 0x24b   : > { %7119 = vst [vmem:[#allocation27_spill] sm:$0xff] %v5743_v1  ;;  %2187 = vmatmul.f32.gmra.mxu3 %v794_v2  ;;  %v795_v1 = vld [vmem:[#allocation2 + $0xd9] sm:$0xff] }
 0x24c   : > { %v1656_v41 = vpop.f32.mrf.mxu2 }
 0x24d   : > { %v1657_v44 = vadd.f32 %v1656_v41, %v7120_v13  ;;  %v727_v41 = vld [vmem:[#allocation2 + $0xa8] sm:$0xff] }
 0x24f   : > { %v1770_v7 = vadd.f32 %v1769_v9, %v1657_v44  ;;  %v1888_v31 = vpop.f32.mrf.mxu0  ;;  %v5752_v48 = vpop.f32.mrf.mxu3  ;;  %v856_v44 = vld [vmem:[#allocation2 + $0xb2] sm:$0xff] }
 0x251   : > { %2062 = vmatmul.f32.gmra.mxu2 %v726_v15  ;;  %v5748_v33 = vadd.f32 %v1882_v53, %v1770_v7  ;;  %v5759_v7 = vpop.f32.mrf.mxu1 }
 0x252   : > { %2291 = vmatmul.f32.gmra.mxu0 %v855_v36  ;;  %v7124_v36 = vld [vmem:[#allocation17_spill] sm:$0xff] }
 0x253   : > { %7121 = vst [vmem:[#allocation15_spill] sm:$0xff] %v5748_v33  ;;  %2190 = vmatmul.f32.gmra.mxu3 %v795_v1  ;;  %v728_v33 = vld [vmem:[#allocation2 + $0xb0] sm:$0xff]  ;;  %v7126_v1 = vld [vmem:[#allocation18_spill] sm:$0xff] }
 0x254   : > { %v1659_v62 = vpop.f32.mrf.mxu2 }
 0x255   : > { %v1660_v43 = vadd.f32 %v1659_v62, %v7122_v55  ;;  %v3331_v55 = vld [vmem:[#allocation10] sm:$0xff] }
 0x256   : > { %3490 = vmatpush.msra.mxu1 %v3331_v55 }
 0x257   : > { %v1773_v13 = vadd.f32 %v1772_v37, %v1660_v43  ;;  %v1891_v9 = vpop.f32.mrf.mxu0  ;;  %v5757_v15 = vpop.f32.mrf.mxu3  ;;  %v796_v37 = vld [vmem:[#allocation2 + $0xe1] sm:$0xff] }
 0x259   : > { %2065 = vmatmul.f32.gmra.mxu2 %v727_v41  ;;  %v5755_v42 = vadd.f32 %v1885_v4, %v1773_v13  ;;  %v3362_v4 = vld [vmem:[#allocation10 + $0xf8] sm:$0xff] }
 0x25a   : > { %2294 = vmatmul.f32.gmra.mxu0 %v856_v44  ;;  %3588 = vmatpush.msrb.mxu2 %v3362_v4  ;;  %v3378_v41 = vld [vmem:[#allocation10 + $0x178] sm:$0xff] }
 0x25b   : > { %7123 = vst [vmem:[#allocation16_spill] sm:$0xff] %v5755_v42  ;;  %2193 = vmatmul.f32.gmra.mxu3 %v796_v37 }
 0x25c   : > { %v1662_v53 = vpop.f32.mrf.mxu2  ;;  %3701 = vmatpush.msrb.mxu3 %v3378_v41  ;;  %v7129_v41 = vld [vmem:[#allocation20_spill] sm:$0xff] }
 0x25d   : > { %v1663_v2 = vadd.f32 %v1662_v53, %v7124_v36  ;;  %v7127_v53 = vld [vmem:[#allocation19_spill] sm:$0xff] }
 0x25f   : > { %v1776_v61 = vadd.f32 %v1775_v40, %v1663_v2  ;;  %v1894_v62 = vpop.f32.mrf.mxu0  ;;  %v5765_v44 = vpop.f32.mrf.mxu3  ;;  %v729_v40 = vld [vmem:[#allocation2 + $0xc0] sm:$0xff] }
 0x260   : > { %v5768_v2 = vpop.f32.mrf.mxu1 }
 0x261   : > { %2068 = vmatmul.f32.gmra.mxu2 %v728_v33  ;;  %v5762_v43 = vadd.f32 %v1888_v31, %v1776_v61  ;;  %v797_v33 = vld [vmem:[#allocation2 + $0xf1] sm:$0xff] }
 0x262   : > { %2297 = vmatmul.f32.gmra.mxu0 %v7126_v1  ;;  %v3394_v31 = vld [vmem:[#allocation10 + $0x1f8] sm:$0xff]  ;;  %v2466_v1 = vld [vmem:[#allocation3] sm:$0xff] }
 0x263   : > { %7125 = vst [vmem:[#allocation17_spill] sm:$0xff] %v5762_v43  ;;  %2196 = vmatmul.f32.gmra.mxu3 %v797_v33  ;;  %3814 = vmatpush.msrb.mxu0 %v3394_v31  ;;  %v798_v43 = vld [vmem:[#allocation2 + $0xf9] sm:$0xff]  ;;  %v7131_v33 = vld [vmem:[#allocation21_spill] sm:$0xff] }
 0x264   : > { %v1665_v13 = vpop.f32.mrf.mxu2  ;;  %3491 = vmatmul.f32.vlgmr.msra.gmra.mxu1 %v2466_v1  ;;  %v3361_v1 = vld [vmem:[#allocation10 + $0xf0] sm:$0xff] }
 0x265   : > { %v1666_v36 = vadd.f32 %v1665_v13, %v7127_v53  ;;  %v730_v53 = vld [vmem:[#allocation2 + $0xc8] sm:$0xff]  ;;  %3589 = vmatpush.msrb.mxu2 %v3361_v1  ;;  %v732_v1 = vld [vmem:[#allocation2 + $0xe0] sm:$0xff] }
 0x267   : > { %v1779_v55 = vadd.f32 %v1778_v18, %v1666_v36  ;;  %v1897_v42 = vpop.f32.mrf.mxu0  ;;  %v5773_v4 = vpop.f32.mrf.mxu3 }
 0x269   : > { %2071 = vmatmul.f32.gmra.mxu2 %v729_v40  ;;  %v5770_v61 = vadd.f32 %v1891_v9, %v1779_v55  ;;  %v5777_v40 = vpop.f32.mrf.mxu1 }
 0x26a   : > { %2300 = vmatmul.f32.gmra.mxu0 %v5515_v30 }
 0x26b   : > { %7128 = vst [vmem:[#allocation18_spill] sm:$0xff] %v5770_v61  ;;  %2199 = vmatmul.f32.gmra.mxu3 %v798_v43  ;;  %v5785_v61 = vld [vmem:[#allocation2 + $0x8] sm:$0xff] }
 0x26c   : > { %v1668_v37 = vpop.f32.mrf.mxu2  ;;  %3494 = vmatmul.f32.gmra.mxu1 %v5785_v61 }
 0x26d   : > { %v1669_v13 = vadd.f32 %v1668_v37, %v7129_v41  ;;  %v3410_v37 = vld [vmem:[#allocation10 + $0x278] sm:$0xff]  ;;  %v3377_v41 = vld [vmem:[#allocation10 + $0x170] sm:$0xff] }
 0x26e   : > { %3927 = vmatpush.msrb.mxu1 %v3410_v37  ;;  %3702 = vmatpush.msrb.mxu3 %v3377_v41  ;;  %v3393_v37 = vld [vmem:[#allocation10 + $0x1f0] sm:$0xff] }
 0x26f   : > { %v1782_v18 = vadd.f32 %v5745_v39, %v1669_v13  ;;  %v1900_v36 = vpop.f32.mrf.mxu0  ;;  %v5782_v55 = vpop.f32.mrf.mxu3  ;;  %v731_v39 = vld [vmem:[#allocation2 + $0xd8] sm:$0xff]  ;;  %3815 = vmatpush.msrb.mxu0 %v3393_v37  ;;  %v3376_v37 = vld [vmem:[#allocation10 + $0x168] sm:$0xff] }
 0x270   : > { %v800_v41 = vld [vmem:[#allocation2 + $0x111] sm:$0xff]  ;;  %3703 = vmatpush.msrb.mxu3 %v3376_v37 }
 0x271   : > { %2074 = vmatmul.f32.gmra.mxu2 %v730_v53  ;;  %v5779_v9 = vadd.f32 %v1894_v62, %v1782_v18  ;;  %v4853_v53 = vld [vmem:[#allocation2 + $0xe2] sm:$0xff]  ;;  %v5791_v18 = vpop.f32.mrf.mxu1 }
 0x272   : > { %2303 = vmatmul.f32.gmra.mxu0 %v5526_v59  ;;  %v799_v59 = vld [vmem:[#allocation2 + $0x109] sm:$0xff] }
 0x273   : > { %7130 = vst [vmem:[#allocation19_spill] sm:$0xff] %v5779_v9  ;;  %2202 = vmatmul.f32.gmra.mxu3 %v799_v59  ;;  %v7133_v9 = vld [vmem:[#allocation22_spill] sm:$0xff] }
 0x274   : > { %v1671_v30 = vpop.f32.mrf.mxu2 }
 0x275   : > { %v1672_v31 = vadd.f32 %v1671_v30, %v7131_v33 }
 0x277   : > { %v1785_v62 = vadd.f32 %v5752_v48, %v1672_v31  ;;  %v1903_v43 = vpop.f32.mrf.mxu0  ;;  %v5793_v33 = vpop.f32.mrf.mxu3 }
 0x279   : > { %2077 = vmatmul.f32.gmra.mxu2 %v731_v39  ;;  %v5789_v13 = vadd.f32 %v1897_v42, %v1785_v62  ;;  %v5802_v59 = vpop.f32.mrf.mxu1 }
 0x27a   : > { %2306 = vmatmul.f32.gmra.mxu0 %v4853_v53  ;;  %v7135_v53 = vld [vmem:[#allocation23_spill] sm:$0xff] }
 0x27b   : > { %7132 = vst [vmem:[#allocation20_spill] sm:$0xff] %v5789_v13  ;;  %2205 = vmatmul.f32.gmra.mxu3 %v800_v41  ;;  %v3360_v13 = vld [vmem:[#allocation10 + $0xe8] sm:$0xff] }
 0x27c   : > { %v1674_v30 = vpop.f32.mrf.mxu2  ;;  %3590 = vmatpush.msrb.mxu2 %v3360_v13 }
 0x27d   : > { %v1675_v45 = vadd.f32 %v1674_v30, %v7133_v9  ;;  %v3409_v30 = vld [vmem:[#allocation10 + $0x270] sm:$0xff] }
 0x27e   : > { %3928 = vmatpush.msrb.mxu1 %v3409_v30  ;;  %v802_v30 = vld [vmem:[#allocation2 + $0x129] sm:$0xff] }
 0x27f   : > { %v1788_v48 = vadd.f32 %v5757_v15, %v1675_v45  ;;  %v2262_v31 = vpop.f32.mrf.mxu0  ;;  %v5800_v62 = vpop.f32.mrf.mxu3 }
 0x281   : > { %2080 = vmatmul.f32.gmra.mxu2 %v732_v1  ;;  %v5797_v42 = vadd.f32 %v1900_v36, %v1788_v48  ;;  %v801_v36 = vld [vmem:[#allocation2 + $0x121] sm:$0xff]  ;;  %v5811_v13 = vpop.f32.mrf.mxu1 }
 0x282   : > { %2309 = vmatmul.f32.gmra.mxu0 %v5546_v20  ;;  %v4854_v1 = vld [vmem:[#allocation2 + $0xfa] sm:$0xff] }
 0x283   : > { %7134 = vst [vmem:[#allocation21_spill] sm:$0xff] %v5797_v42  ;;  %2208 = vmatmul.f32.gmra.mxu3 %v801_v36  ;;  %v734_v42 = vld [vmem:[#allocation2 + $0xf8] sm:$0xff]  ;;  %v3408_v36 = vld [vmem:[#allocation10 + $0x268] sm:$0xff] }
 0x284   : > { %v1677_v39 = vpop.f32.mrf.mxu2  ;;  %3929 = vmatpush.msrb.mxu1 %v3408_v36 }
 0x285   : > { %v1678_v9 = vadd.f32 %v1677_v39, %v7135_v53  ;;  %v3392_v53 = vld [vmem:[#allocation10 + $0x1e8] sm:$0xff] }
 0x286   : > { %3816 = vmatpush.msrb.mxu0 %v3392_v53 }
 0x287   : > { %v1791_v45 = vadd.f32 %v5765_v44, %v1678_v9  ;;  %v2265_v15 = vpop.f32.mrf.mxu0  ;;  %v5808_v41 = vpop.f32.mrf.mxu3 }
 0x289   : > { %2083 = vmatmul.f32.gmra.mxu2 %v733_v35  ;;  %v5806_v20 = vadd.f32 %v1903_v43, %v1791_v45 }
 0x28a   : > { %2312 = vmatmul.f32.gmra.mxu0 %v4854_v1  ;;  %v3375_v1 = vld [vmem:[#allocation10 + $0x160] sm:$0xff] }
 0x28b   : > { %7136 = vst [vmem:[#allocation22_spill] sm:$0xff] %v5806_v20  ;;  %2211 = vmatmul.f32.gmra.mxu3 %v802_v30 }
 0x28c   : > { %v2036_v48 = vpop.f32.mrf.mxu2  ;;  %3704 = vmatpush.msrb.mxu3 %v3375_v1 }
 0x28d   : > { %v2037_v39 = vadd.f32 %v2036_v48, %v5564_v27  ;;  %v735_v48 = vld [vmem:[#allocation2 + $0x108] sm:$0xff] }
 0x28f   : > { %v2150_v44 = vadd.f32 %v5773_v4, %v2037_v39  ;;  %v2268_v9 = vpop.f32.mrf.mxu0  ;;  %v5818_v45 = vpop.f32.mrf.mxu3  ;;  %v3359_v4 = vld [vmem:[#allocation10 + $0xe0] sm:$0xff] }
 0x290   : > { %3591 = vmatpush.msrb.mxu2 %v3359_v4  ;;  %v5824_v39 = vpop.f32.mrf.mxu1  ;;  %v804_v4 = vld [vmem:[#allocation2 + $0x141] sm:$0xff] }
 0x291   : > { %v5814_v35 = vadd.f32 %v2262_v31, %v2150_v44  ;;  %2086 = vmatmul.f32.gmra.mxu2 %v734_v42 }
 0x292   : > { %2315 = vmatmul.f32.gmra.mxu0 %v5568_v60  ;;  %v803_v60 = vld [vmem:[#allocation2 + $0x139] sm:$0xff] }
 0x293   : > { %v7070_v43 = vmax.f32 %v5814_v35, 0.0  ;;  %2214 = vmatmul.f32.gmra.mxu3 %v803_v60 }
 0x294   : > { %v2039_v37 = vpop.f32.mrf.mxu2 }
 0x295   : > { %2434 = vst [vmem:[#allocation3 + $0x19] sm:$0xff] %v7070_v43  ;;  %v2040_v27 = vadd.f32 %v2039_v37, %v5575_v50 }
 0x297   : > { %v2153_v31 = vadd.f32 %v5782_v55, %v2040_v27  ;;  %v2271_v42 = vpop.f32.mrf.mxu0  ;;  %v5832_v37 = vpop.f32.mrf.mxu3  ;;  %v736_v27 = vld [vmem:[#allocation2 + $0x110] sm:$0xff] }
 0x299   : > { %v5826_v53 = vadd.f32 %v2265_v15, %v2153_v31  ;;  %2089 = vmatmul.f32.gmra.mxu2 %v735_v48  ;;  %v3391_v15 = vld [vmem:[#allocation10 + $0x1e0] sm:$0xff]  ;;  %v5842_v48 = vpop.f32.mrf.mxu1 }
 0x29a   : > { %2318 = vmatmul.f32.gmra.mxu0 %v5579_v19 }
 0x29b   : > { %v7068_v50 = vmax.f32 %v5826_v53, 0.0  ;;  %3817 = vmatpush.msrb.mxu0 %v3391_v15  ;;  %2217 = vmatmul.f32.gmra.mxu3 %v804_v4  ;;  %v3374_v15 = vld [vmem:[#allocation10 + $0x158] sm:$0xff] }
 0x29c   : > { %v2042_v44 = vpop.f32.mrf.mxu2  ;;  %v5830_v30 = vld [vmem:[#allocation3 + $0x18] sm:$0xff]  ;;  %3705 = vmatpush.msrb.mxu3 %v3374_v15  ;;  %v805_v4 = vld [vmem:[#allocation2 + $0x151] sm:$0xff]  ;;  %v806_v15 = vld [vmem:[#allocation2 + $0x159] sm:$0xff] }
 0x29d   : > { %2435 = vst [vmem:[#allocation3 + $0x21] sm:$0xff] %v7068_v50  ;;  %v2043_v55 = vadd.f32 %v2042_v44, %v5586_v63  ;;  %3497 = vmatmul.f32.gmra.mxu1 %v5830_v30 }
 0x29f   : > { %v2156_v36 = vadd.f32 %v5793_v33, %v2043_v55  ;;  %v2274_v19 = vpop.f32.mrf.mxu0  ;;  %v5847_v44 = vpop.f32.mrf.mxu3  ;;  %v3358_v55 = vld [vmem:[#allocation10 + $0xd8] sm:$0xff] }
 0x2a0   : > { %3592 = vmatpush.msrb.mxu2 %v3358_v55 }
 0x2a1   : > { %v5839_v1 = vadd.f32 %v2268_v9, %v2156_v36  ;;  %2092 = vmatmul.f32.gmra.mxu2 %v736_v27  ;;  %v3407_v9 = vld [vmem:[#allocation10 + $0x260] sm:$0xff] }
 0x2a2   : > { %2321 = vmatmul.f32.gmra.mxu0 %v5590_v11  ;;  %v737_v11 = vld [vmem:[#allocation2 + $0x120] sm:$0xff]  ;;  %3930 = vmatpush.msrb.mxu1 %v3407_v9  ;;  %v5862_v9 = vpop.f32.mrf.mxu1 }
 0x2a3   : > { %v7069_v31 = vmax.f32 %v5839_v1, 0.0  ;;  %2220 = vmatmul.f32.gmra.mxu3 %v805_v4 }
 0x2a4   : > { %v2045_v63 = vpop.f32.mrf.mxu2  ;;  %v5845_v60 = vld [vmem:[#allocation3 + $0x20] sm:$0xff] }
 0x2a5   : > { %2436 = vst [vmem:[#allocation3 + $0x31] sm:$0xff] %v7069_v31  ;;  %v2046_v33 = vadd.f32 %v2045_v63, %v5597_v10  ;;  %3500 = vmatmul.f32.gmra.mxu1 %v5845_v60 }
 0x2a7   : > { %v2159_v27 = vadd.f32 %v5800_v62, %v2046_v33  ;;  %v2277_v36 = vpop.f32.mrf.mxu0  ;;  %v5860_v43 = vpop.f32.mrf.mxu3  ;;  %v738_v33 = vld [vmem:[#allocation2 + $0x128] sm:$0xff] }
 0x2a9   : > { %v5854_v50 = vadd.f32 %v2271_v42, %v2159_v27  ;;  %2095 = vmatmul.f32.gmra.mxu2 %v737_v11  ;;  %v3390_v42 = vld [vmem:[#allocation10 + $0x1d8] sm:$0xff] }
 0x2aa   : > { %2324 = vmatmul.f32.gmra.mxu0 %v5601_v23 }
 0x2ab   : > { %v7071_v10 = vmax.f32 %v5854_v50, 0.0  ;;  %3818 = vmatpush.msrb.mxu0 %v3390_v42  ;;  %2223 = vmatmul.f32.gmra.mxu3 %v806_v15  ;;  %v739_v42 = vld [vmem:[#allocation2 + $0x138] sm:$0xff]  ;;  %v807_v15 = vld [vmem:[#allocation2 + $0x169] sm:$0xff] }
 0x2ac   : > { %v2048_v63 = vpop.f32.mrf.mxu2  ;;  %v5858_v31 = vld [vmem:[#allocation3 + $0x30] sm:$0xff] }
 0x2ad   : > { %2437 = vst [vmem:[#allocation3 + $0x39] sm:$0xff] %v7071_v10  ;;  %v2049_v62 = vadd.f32 %v2048_v63, %v5608_v6  ;;  %3503 = vmatmul.f32.gmra.mxu1 %v5858_v31  ;;  %v3357_v63 = vld [vmem:[#allocation10 + $0xd0] sm:$0xff] }
 0x2ae   : > { %3593 = vmatpush.msrb.mxu2 %v3357_v63 }
 0x2af   : > { %v2162_v23 = vadd.f32 %v5808_v41, %v2049_v62  ;;  %v2280_v55 = vpop.f32.mrf.mxu0  ;;  %v5875_v6 = vpop.f32.mrf.mxu3  ;;  %v3373_v62 = vld [vmem:[#allocation10 + $0x150] sm:$0xff] }
 0x2b0   : > { %3706 = vmatpush.msrb.mxu3 %v3373_v62  ;;  %v808_v62 = vld [vmem:[#allocation2 + $0x171] sm:$0xff] }
 0x2b1   : > { %v5869_v11 = vadd.f32 %v2274_v19, %v2162_v23  ;;  %2098 = vmatmul.f32.gmra.mxu2 %v738_v33  ;;  %v3406_v19 = vld [vmem:[#allocation10 + $0x258] sm:$0xff] }
 0x2b2   : > { %2327 = vmatmul.f32.gmra.mxu0 %v5612_v26  ;;  %3931 = vmatpush.msrb.mxu1 %v3406_v19  ;;  %v5881_v26 = vpop.f32.mrf.mxu1 }
 0x2b3   : > { %v7072_v27 = vmax.f32 %v5869_v11, 0.0  ;;  %2226 = vmatmul.f32.gmra.mxu3 %v807_v15 }
 0x2b4   : > { %v2051_v4 = vpop.f32.mrf.mxu2  ;;  %v5873_v10 = vld [vmem:[#allocation3 + $0x38] sm:$0xff] }
 0x2b5   : > { %2438 = vst [vmem:[#allocation3 + $0x49] sm:$0xff] %v7072_v27  ;;  %v2052_v41 = vadd.f32 %v2051_v4, %v5619_v51  ;;  %3506 = vmatmul.f32.gmra.mxu1 %v5873_v10 }
 0x2b7   : > { %v2165_v33 = vadd.f32 %v5818_v45, %v2052_v41  ;;  %v2283_v23 = vpop.f32.mrf.mxu0  ;;  %v5890_v19 = vpop.f32.mrf.mxu3  ;;  %v740_v41 = vld [vmem:[#allocation2 + $0x140] sm:$0xff] }
 0x2b9   : > { %v5884_v20 = vadd.f32 %v2277_v36, %v2165_v33  ;;  %2101 = vmatmul.f32.gmra.mxu2 %v739_v42  ;;  %v3389_v36 = vld [vmem:[#allocation10 + $0x1d0] sm:$0xff] }
 0x2ba   : > { %2330 = vmatmul.f32.gmra.mxu0 %v5623_v0  ;;  %v5897_v42 = vpop.f32.mrf.mxu1 }
 0x2bb   : > { %v7073_v51 = vmax.f32 %v5884_v20, 0.0  ;;  %3819 = vmatpush.msrb.mxu0 %v3389_v36  ;;  %7137 = vst [vmem:[#allocation23_spill] sm:$0xff] %v5897_v42  ;;  %2229 = vmatmul.f32.gmra.mxu3 %v808_v62  ;;  %v3372_v36 = vld [vmem:[#allocation10 + $0x148] sm:$0xff] }
 0x2bc   : > { %v2054_v4 = vpop.f32.mrf.mxu2  ;;  %v5888_v27 = vld [vmem:[#allocation3 + $0x48] sm:$0xff]  ;;  %3707 = vmatpush.msrb.mxu3 %v3372_v36  ;;  %v809_v62 = vld [vmem:[#allocation2 + $0x181] sm:$0xff]  ;;  %v810_v36 = vld [vmem:[#allocation2 + $0x189] sm:$0xff] }
 0x2bd   : > { %2439 = vst [vmem:[#allocation3 + $0x51] sm:$0xff] %v7073_v51  ;;  %v2055_v45 = vadd.f32 %v2054_v4, %v5630_v3  ;;  %3509 = vmatmul.f32.gmra.mxu1 %v5888_v27 }
 0x2bf   : > { %v2168_v63 = vadd.f32 %v5832_v37, %v2055_v45  ;;  %v2286_v0 = vpop.f32.mrf.mxu0  ;;  %v5905_v51 = vpop.f32.mrf.mxu3  ;;  %v3356_v45 = vld [vmem:[#allocation10 + $0xc8] sm:$0xff] }
 0x2c0   : > { %3594 = vmatpush.msrb.mxu2 %v3356_v45 }
 0x2c1   : > { %v5899_v33 = vadd.f32 %v2280_v55, %v2168_v63  ;;  %2104 = vmatmul.f32.gmra.mxu2 %v740_v41  ;;  %v3405_v55 = vld [vmem:[#allocation10 + $0x250] sm:$0xff] }
 0x2c2   : > { %2333 = vmatmul.f32.gmra.mxu0 %v5634_v34  ;;  %v741_v41 = vld [vmem:[#allocation2 + $0x150] sm:$0xff]  ;;  %3932 = vmatpush.msrb.mxu1 %v3405_v55 }
 0x2c3   : > { %v7074_v15 = vmax.f32 %v5899_v33, 0.0  ;;  %2232 = vmatmul.f32.gmra.mxu3 %v809_v62 }
 0x2c4   : > { %v2057_v3 = vpop.f32.mrf.mxu2  ;;  %v5903_v4 = vld [vmem:[#allocation3 + $0x50] sm:$0xff] }
 0x2c5   : > { %2440 = vst [vmem:[#allocation3 + $0x61] sm:$0xff] %v7074_v15  ;;  %v2058_v37 = vadd.f32 %v2057_v3, %v5641_v49  ;;  %3512 = vmatmul.f32.gmra.mxu1 %v5903_v4  ;;  %v1948_v49 = vadd.f32 %v5713_v8, %v5653_v22  ;;  %v5917_v3 = vpop.f32.mrf.mxu1 }
 0x2c6   : > { %7138 = vst [vmem:[#allocation28_spill] sm:$0xff] %v5917_v3  ;;  %v4855_v3 = vld [vmem:[#allocation2 + $0x172] sm:$0xff] }
 0x2c7   : > { %v2171_v34 = vadd.f32 %v5847_v44, %v2058_v37  ;;  %v2289_v63 = vpop.f32.mrf.mxu0  ;;  %v5922_v44 = vpop.f32.mrf.mxu3  ;;  %v3388_v37 = vld [vmem:[#allocation10 + $0x1c8] sm:$0xff] }
 0x2c8   : > { %3820 = vmatpush.msrb.mxu0 %v3388_v37 }
 0x2c9   : > { %v5912_v42 = vadd.f32 %v2283_v23, %v2171_v34  ;;  %2107 = vmatmul.f32.gmra.mxu2 %v741_v41  ;;  %v1951_v34 = vadd.f32 %v5718_v28, %v5668_v24 }
 0x2ca   : > { %2336 = vmatmul.f32.gmra.mxu0 %v5645_v56  ;;  %v742_v56 = vld [vmem:[#allocation2 + $0x158] sm:$0xff] }
 0x2cb   : > { %v7075_v15 = vmax.f32 %v5912_v42, 0.0  ;;  %2235 = vmatmul.f32.gmra.mxu3 %v810_v36  ;;  %v3387_v36 = vld [vmem:[#allocation10 + $0x1c0] sm:$0xff] }
 0x2cc   : > { %v2060_v55 = vpop.f32.mrf.mxu2  ;;  %v5920_v45 = vld [vmem:[#allocation3 + $0x60] sm:$0xff]  ;;  %3821 = vmatpush.msrb.mxu0 %v3387_v36 }
 0x2cd   : > { %2441 = vst [vmem:[#allocation3 + $0x69] sm:$0xff] %v7075_v15  ;;  %v2061_v23 = vadd.f32 %v2060_v55, %v1948_v49  ;;  %3515 = vmatmul.f32.gmra.mxu1 %v5920_v45  ;;  %v811_v15 = vld [vmem:[#allocation2 + $0x199] sm:$0xff] }
 0x2cf   : > { %v2174_v22 = vadd.f32 %v5860_v43, %v2061_v23  ;;  %v5928_v8 = vpop.f32.mrf.mxu0  ;;  %v5938_v37 = vpop.f32.mrf.mxu3  ;;  %v3404_v23 = vld [vmem:[#allocation10 + $0x248] sm:$0xff] }
 0x2d0   : > { %v5940_v43 = vpop.f32.mrf.mxu1  ;;  %3933 = vmatpush.msrb.mxu1 %v3404_v23  ;;  %v1954_v23 = vadd.f32 %v5725_v25, %v5678_v57  ;;  %v3352_v57 = vld [vmem:[#allocation10 + $0xa8] sm:$0xff] }
 0x2d1   : > { %v5930_v41 = vadd.f32 %v2286_v0, %v2174_v22  ;;  %2110 = vmatmul.f32.gmra.mxu2 %v742_v56  ;;  %7140 = vst [vmem:[#allocation30_spill] sm:$0xff] %v5940_v43  ;;  %v3371_v56 = vld [vmem:[#allocation10 + $0x140] sm:$0xff]  ;;  %v743_v22 = vld [vmem:[#allocation2 + $0x168] sm:$0xff] }
 0x2d2   : > { %2339 = vmatmul.f32.gmra.mxu0 %v5660_v47  ;;  %v3355_v47 = vld [vmem:[#allocation10 + $0xc0] sm:$0xff]  ;;  %3708 = vmatpush.msrb.mxu3 %v3371_v56  ;;  %v3385_v56 = vld [vmem:[#allocation10 + $0x1b0] sm:$0xff]  ;;  %v3368_v25 = vld [vmem:[#allocation10 + $0x128] sm:$0xff] }
 0x2d3   : > { %7139 = vst [vmem:[#allocation29_spill] sm:$0xff] %v5930_v41  ;;  %v7076_v62 = vmax.f32 %v5930_v41, 0.0  ;;  %3595 = vmatpush.msrb.mxu2 %v3355_v47  ;;  %2238 = vmatmul.f32.gmra.mxu3 %v811_v15  ;;  %v3369_v47 = vld [vmem:[#allocation10 + $0x130] sm:$0xff]  ;;  %v3380_v41 = vld [vmem:[#allocation10 + $0x188] sm:$0xff] }
 0x2d4   : > { %v2063_v49 = vpop.f32.mrf.mxu2  ;;  %v5936_v55 = vld [vmem:[#allocation3 + $0x68] sm:$0xff] }
 0x2d5   : > { %2442 = vst [vmem:[#allocation3 + $0x79] sm:$0xff] %v7076_v62  ;;  %v2064_v0 = vadd.f32 %v2063_v49, %v1951_v34  ;;  %3518 = vmatmul.f32.gmra.mxu1 %v5936_v55  ;;  %v3354_v34 = vld [vmem:[#allocation10 + $0xb8] sm:$0xff] }
 0x2d6   : > { %v3370_v49 = vld [vmem:[#allocation10 + $0x138] sm:$0xff]  ;;  %3596 = vmatpush.msrb.mxu2 %v3354_v34 }
 0x2d7   : > { %v2177_v24 = vadd.f32 %v5875_v6, %v2064_v0  ;;  %v5946_v28 = vpop.f32.mrf.mxu0  ;;  %v3386_v62 = vld [vmem:[#allocation10 + $0x1b8] sm:$0xff]  ;;  %3709 = vmatpush.msrb.mxu3 %v3370_v49  ;;  %v3353_v0 = vld [vmem:[#allocation10 + $0xb0] sm:$0xff]  ;;  %v5955_v15 = vpop.f32.mrf.mxu3 }
 0x2d8   : > { %3822 = vmatpush.msrb.mxu0 %v3386_v62  ;;  %3597 = vmatpush.msrb.mxu2 %v3353_v0  ;;  %v744_v62 = vld [vmem:[#allocation2 + $0x170] sm:$0xff]  ;;  %v5960_v36 = vpop.f32.mrf.mxu1  ;;  %v3351_v0 = vld [vmem:[#allocation10 + $0xa0] sm:$0xff] }
 0x2d9   : > { %v5948_v43 = vadd.f32 %v2289_v63, %v2177_v24  ;;  %2113 = vmatmul.f32.gmra.mxu2 %v743_v22  ;;  %3710 = vmatpush.msrb.mxu3 %v3369_v47  ;;  %v3384_v22 = vld [vmem:[#allocation10 + $0x1a8] sm:$0xff]  ;;  %7142 = vst [vmem:[#allocation32_spill] sm:$0xff] %v5960_v36 }
 0x2da   : > { %2342 = vmatmul.f32.gmra.mxu0 %v4855_v3  ;;  %3598 = vmatpush.msrb.mxu2 %v3352_v57  ;;  %v3366_v57 = vld [vmem:[#allocation10 + $0x118] sm:$0xff] }
 0x2db   : > { %7141 = vst [vmem:[#allocation31_spill] sm:$0xff] %v5948_v43  ;;  %v7078_v6 = vmax.f32 %v5948_v43, 0.0  ;;  %3823 = vmatpush.msrb.mxu0 %v3385_v56  ;;  %3711 = vmatpush.msrb.mxu3 %v3368_v25  ;;  %v3367_v43 = vld [vmem:[#allocation10 + $0x120] sm:$0xff]  ;;  %v3350_v56 = vld [vmem:[#allocation10 + $0x98] sm:$0xff] }
 0x2dc   : > { %v2066_v63 = vpop.f32.mrf.mxu2  ;;  %v5953_v24 = vld [vmem:[#allocation3 + $0x78] sm:$0xff]  ;;  %3599 = vmatpush.msrb.mxu2 %v3351_v0 }
 0x2dd   : > { %2443 = vst [vmem:[#allocation3 + $0x81] sm:$0xff] %v7078_v6  ;;  %v2067_v3 = vadd.f32 %v2066_v63, %v1954_v23  ;;  %3521 = vmatmul.f32.gmra.mxu1 %v5953_v24  ;;  %3824 = vmatpush.msrb.mxu0 %v3384_v22  ;;  %v3383_v23 = vld [vmem:[#allocation10 + $0x1a0] sm:$0xff]  ;;  %v3349_v22 = vld [vmem:[#allocation10 + $0x90] sm:$0xff] }
 0x2de   : > { %v812_v63 = vld [vmem:[#allocation2 + $0x1a1] sm:$0xff]  ;;  %3712 = vmatpush.msrb.mxu3 %v3367_v43  ;;  %3600 = vmatpush.msrb.mxu2 %v3350_v56  ;;  %v3365_v43 = vld [vmem:[#allocation10 + $0x110] sm:$0xff] }
 0x2df   : > { %v2180_v34 = vadd.f32 %v5890_v19, %v2067_v3  ;;  %v5963_v49 = vpop.f32.mrf.mxu0  ;;  %v4856_v6 = vld [vmem:[#allocation2 + $0x182] sm:$0xff]  ;;  %2241 = vmatmul.f32.gmra.mxu3 %v812_v63  ;;  %v3382_v19 = vld [vmem:[#allocation10 + $0x198] sm:$0xff]  ;;  %v1957_v3 = vadd.f32 %v5730_v58, %v5684_v14  ;;  %3825 = vmatpush.msrb.mxu0 %v3383_v23 }
 0x2e0   : > { %3713 = vmatpush.msrb.mxu3 %v3366_v57  ;;  %v3403_v14 = vld [vmem:[#allocation10 + $0x240] sm:$0xff]  ;;  %v3348_v58 = vld [vmem:[#allocation10 + $0x88] sm:$0xff]  ;;  %3601 = vmatpush.msrb.mxu2 %v3349_v22 }
 0x2e1   : > { %v5966_v47 = vadd.f32 %v5928_v8, %v2180_v34  ;;  %2116 = vmatmul.f32.gmra.mxu2 %v744_v62  ;;  %v5973_v8 = vpop.f32.mrf.mxu3  ;;  %v3381_v62 = vld [vmem:[#allocation10 + $0x190] sm:$0xff]  ;;  %3826 = vmatpush.msrb.mxu0 %v3382_v19  ;;  %v745_v34 = vld [vmem:[#allocation2 + $0x180] sm:$0xff]  ;;  %v3364_v23 = vld [vmem:[#allocation10 + $0x108] sm:$0xff] }
 0x2e2   : > { %2345 = vmatmul.f32.gmra.mxu0 %v4856_v6  ;;  %3934 = vmatpush.msrb.mxu1 %v3403_v14  ;;  %v3347_v57 = vld [vmem:[#allocation10 + $0x80] sm:$0xff]  ;;  %v2594_v19 = vld [vmem:[#allocation3 + $0x2] sm:$0xff] }
 0x2e3   : > { %7143 = vst [vmem:[#allocation33_spill] sm:$0xff] %v5966_v47  ;;  %v7081_v25 = vmax.f32 %v5966_v47, 0.0  ;;  %3714 = vmatpush.msrb.mxu3 %v3365_v43  ;;  %3827 = vmatpush.msrb.mxu0 %v3381_v62  ;;  %v3363_v47 = vld [vmem:[#allocation10 + $0x100] sm:$0xff] }
 0x2e4   : > { %v2069_v0 = vpop.f32.mrf.mxu2  ;;  %v5971_v36 = vld [vmem:[#allocation3 + $0x80] sm:$0xff]  ;;  %3602 = vmatpush.msrb.mxu2 %v3348_v58  ;;  %v3379_v22 = vld [vmem:[#allocation10 + $0x180] sm:$0xff]  ;;  %v746_v58 = vld [vmem:[#allocation2 + $0x188] sm:$0xff] }
 0x2e5   : > { %2444 = vst [vmem:[#allocation3 + $0x91] sm:$0xff] %v7081_v25  ;;  %v2070_v6 = vadd.f32 %v2069_v0, %v1957_v3  ;;  %3524 = vmatmul.f32.gmra.mxu1 %v5971_v36  ;;  %v5979_v25 = vpop.f32.mrf.mxu1  ;;  %3715 = vmatpush.msrb.mxu3 %v3364_v23  ;;  %v4857_v0 = vld [vmem:[#allocation2 + $0x18a] sm:$0xff]  ;;  %v1963_v23 = vadd.f32 %v5741_v46, %v5697_v17 }
 0x2e6   : > { %3603 = vmatpush.msrb.mxu2 %v3347_v57  ;;  %3828 = vmatpush.msrb.mxu0 %v3380_v41 }
 0x2e7   : > { %v2183_v63 = vadd.f32 %v5905_v51, %v2070_v6  ;;  %v2301_v56 = vpop.f32.mrf.mxu0  ;;  %v1960_v51 = vadd.f32 %v5736_v5, %v5690_v52  ;;  %3716 = vmatpush.msrb.mxu3 %v3363_v47  ;;  %v2595_v47 = vld [vmem:[#allocation3 + $0xa] sm:$0xff] }
 0x2e8   : > { %3717 = vmatmul.f32.vlgmr.msrb.gmra.mxu3 %v2594_v19  ;;  %3829 = vmatpush.msrb.mxu0 %v3379_v22  ;;  %v3402_v22 = vld [vmem:[#allocation10 + $0x238] sm:$0xff] }
 0x2e9   : > { %v5982_v3 = vadd.f32 %v5946_v28, %v2183_v63  ;;  %2119 = vmatmul.f32.gmra.mxu2 %v745_v34  ;;  %v5989_v28 = vpop.f32.mrf.mxu3  ;;  %v875_v34 = vld [vmem:[#allocation2 + $0x19a] sm:$0xff]  ;;  %3935 = vmatpush.msrb.mxu1 %v3402_v22  ;;  %v1969_v22 = vadd.f32 %v5759_v7, %v5707_v29 }
 0x2ea   : > { %2348 = vmatmul.f32.gmra.mxu0 %v4857_v0 }
 0x2eb   : > { %v7097_v43 = vmax.f32 %v5982_v3, 0.0 }
 0x2ec   : > { %v2072_v62 = vpop.f32.mrf.mxu2  ;;  %v5987_v6 = vld [vmem:[#allocation3 + $0x90] sm:$0xff] }
 0x2ed   : > { %2445 = vst [vmem:[#allocation3 + $0x99] sm:$0xff] %v7097_v43  ;;  %v2073_v14 = vadd.f32 %v2072_v62, %v1960_v51  ;;  %3527 = vmatmul.f32.gmra.mxu1 %v5987_v6  ;;  %v6000_v63 = vpop.f32.mrf.mxu1  ;;  %v747_v51 = vld [vmem:[#allocation2 + $0x198] sm:$0xff]  ;;  %v876_v62 = vld [vmem:[#allocation2 + $0x1a2] sm:$0xff] }
 0x2ef   : > { %v2186_v52 = vadd.f32 %v5922_v44, %v2073_v14  ;;  %v2304_v5 = vpop.f32.mrf.mxu0 }
 0x2f0   : > { %3720 = vmatmul.f32.gmra.mxu3 %v2595_v47 }
 0x2f1   : > { %v5996_v41 = vadd.f32 %v5963_v49, %v2186_v52  ;;  %2122 = vmatmul.f32.gmra.mxu2 %v746_v58  ;;  %v6005_v44 = vpop.f32.mrf.mxu3  ;;  %v1966_v58 = vadd.f32 %v5750_v21, %v5703_v38 }
 0x2f2   : > { %2351 = vmatmul.f32.gmra.mxu0 %v875_v34  ;;  %v2596_v34 = vld [vmem:[#allocation3 + $0x1a] sm:$0xff] }
 0x2f3   : > { %v7095_v57 = vmax.f32 %v5996_v41, 0.0 }
 0x2f4   : > { %v2075_v19 = vpop.f32.mrf.mxu2  ;;  %v6003_v0 = vld [vmem:[#allocation3 + $0x98] sm:$0xff] }
 0x2f5   : > { %2446 = vst [vmem:[#allocation3 + $0xa9] sm:$0xff] %v7095_v57  ;;  %v2076_v49 = vadd.f32 %v2075_v19, %v1963_v23  ;;  %3530 = vmatmul.f32.gmra.mxu1 %v6003_v0 }
 0x2f7   : > { %v2189_v17 = vadd.f32 %v5938_v37, %v2076_v49  ;;  %v2307_v46 = vpop.f32.mrf.mxu0 }
 0x2f8   : > { %3723 = vmatmul.f32.gmra.mxu3 %v2596_v34 }
 0x2f9   : > { %v6011_v14 = vadd.f32 %v2301_v56, %v2189_v17  ;;  %2125 = vmatmul.f32.gmra.mxu2 %v747_v51  ;;  %v6018_v19 = vpop.f32.mrf.mxu3  ;;  %v6023_v56 = vpop.f32.mrf.mxu1  ;;  %v2597_v17 = vld [vmem:[#allocation3 + $0x22] sm:$0xff] }
 0x2fa   : > { %2354 = vmatmul.f32.gmra.mxu0 %v876_v62 }
 0x2fb   : > { %v7093_v52 = vmax.f32 %v6011_v14, 0.0 }
 0x2fc   : > { %v2078_v47 = vpop.f32.mrf.mxu2  ;;  %v6016_v23 = vld [vmem:[#allocation3 + $0xa8] sm:$0xff] }
 0x2fd   : > { %2447 = vst [vmem:[#allocation3 + $0xb1] sm:$0xff] %v7093_v52  ;;  %v2079_v37 = vadd.f32 %v2078_v47, %v1966_v58  ;;  %3533 = vmatmul.f32.gmra.mxu1 %v6016_v23 }
 0x2ff   : > { %v2192_v49 = vadd.f32 %v5955_v15, %v2079_v37  ;;  %v2310_v38 = vpop.f32.mrf.mxu0  ;;  %v1972_v37 = vadd.f32 %v5768_v2, %v5710_v32 }
 0x300   : > { %3726 = vmatmul.f32.gmra.mxu3 %v2597_v17 }
 0x301   : > { %v6026_v21 = vadd.f32 %v2304_v5, %v2192_v49  ;;  %2128 = vmatmul.f32.gmra.mxu2 %v5785_v61  ;;  %v6035_v34 = vpop.f32.mrf.mxu3  ;;  %v3401_v61 = vld [vmem:[#allocation10 + $0x230] sm:$0xff]  ;;  %v6040_v5 = vpop.f32.mrf.mxu1 }
 0x302   : > { %3830 = vmatmul.f32.vlgmr.msrb.gmra.mxu0 %v5830_v30  ;;  %v2530_v30 = vld [vmem:[#allocation3 + $0x1] sm:$0xff]  ;;  %3936 = vmatpush.msrb.mxu1 %v3401_v61  ;;  %v1975_v61 = vadd.f32 %v5777_v40, %v5715_v54 }
 0x303   : > { %v7082_v51 = vmax.f32 %v6026_v21, 0.0 }
 0x304   : > { %v2081_v62 = vpop.f32.mrf.mxu2  ;;  %v6033_v58 = vld [vmem:[#allocation3 + $0xb0] sm:$0xff] }
 0x305   : > { %2448 = vst [vmem:[#allocation3 + $0xc1] sm:$0xff] %v7082_v51  ;;  %v2082_v15 = vadd.f32 %v2081_v62, %v1969_v22  ;;  %3536 = vmatmul.f32.gmra.mxu1 %v6033_v58  ;;  %v2598_v22 = vld [vmem:[#allocation3 + $0x32] sm:$0xff] }
 0x307   : > { %v2195_v29 = vadd.f32 %v5973_v8, %v2082_v15  ;;  %v2313_v7 = vpop.f32.mrf.mxu0 }
 0x308   : > { %3729 = vmatmul.f32.gmra.mxu3 %v2598_v22 }
 0x309   : > { %v6043_v47 = vadd.f32 %v2307_v46, %v2195_v29  ;;  %3604 = vmatmul.f32.vlgmr.msrb.gmra.mxu2 %v2530_v30  ;;  %v6051_v51 = vpop.f32.mrf.mxu3  ;;  %v2531_v46 = vld [vmem:[#allocation3 + $0x9] sm:$0xff]  ;;  %v6057_v32 = vpop.f32.mrf.mxu1  ;;  %v2599_v29 = vld [vmem:[#allocation3 + $0x3a] sm:$0xff] }
 0x30a   : > { %3833 = vmatmul.f32.gmra.mxu0 %v5845_v60 }
 0x30b   : > { %v7092_v49 = vmax.f32 %v6043_v47, 0.0 }
 0x30c   : > { %v2084_v17 = vpop.f32.mrf.mxu2  ;;  %v6049_v62 = vld [vmem:[#allocation3 + $0xc0] sm:$0xff] }
 0x30d   : > { %2449 = vst [vmem:[#allocation3 + $0xc9] sm:$0xff] %v7092_v49  ;;  %v2085_v8 = vadd.f32 %v2084_v17, %v1972_v37  ;;  %3539 = vmatmul.f32.gmra.mxu1 %v6049_v62 }
 0x30f   : > { %v2198_v60 = vadd.f32 %v5989_v28, %v2085_v8  ;;  %v2316_v15 = vpop.f32.mrf.mxu0  ;;  %v7144_v8 = vmax.f32 %v5814_v35, 0.0 }
 0x310   : > { %3732 = vmatmul.f32.gmra.mxu3 %v2599_v29  ;;  %v2600_v29 = vld [vmem:[#allocation3 + $0x4a] sm:$0xff] }
 0x311   : > { %v6059_v2 = vadd.f32 %v2310_v38, %v2198_v60  ;;  %3607 = vmatmul.f32.gmra.mxu2 %v2531_v46  ;;  %v6067_v17 = vpop.f32.mrf.mxu3  ;;  %v3400_v38 = vld [vmem:[#allocation10 + $0x228] sm:$0xff]  ;;  %v1978_v60 = vadd.f32 %v5791_v18, %v5720_v12  ;;  %v7145_v12 = vmax.f32 %v5826_v53, 0.0 }
 0x312   : > { %3836 = vmatmul.f32.gmra.mxu0 %v5858_v31  ;;  %3937 = vmatpush.msrb.mxu1 %v3400_v38 }
 0x313   : > { %v7090_v30 = vmax.f32 %v6059_v2, 0.0 }
 0x314   : > { %v2087_v37 = vpop.f32.mrf.mxu2  ;;  %v6065_v22 = vld [vmem:[#allocation3 + $0xc8] sm:$0xff] }
 0x315   : > { %2450 = vst [vmem:[#allocation3 + $0xd9] sm:$0xff] %v7090_v30  ;;  %v2088_v28 = vadd.f32 %v2087_v37, %v1975_v61  ;;  %3542 = vmatmul.f32.gmra.mxu1 %v6065_v22  ;;  %v7162_v30 = vld [vmem:[#allocation28_spill] sm:$0xff] }
 0x317   : > { %v2201_v31 = vadd.f32 %v6005_v44, %v2088_v28  ;;  %v2319_v54 = vpop.f32.mrf.mxu0 }
 0x318   : > { %3735 = vmatmul.f32.gmra.mxu3 %v2600_v29 }
 0x319   : > { %v6073_v40 = vadd.f32 %v2313_v7, %v2201_v31  ;;  %3610 = vmatmul.f32.gmra.mxu2 %v7144_v8  ;;  %v6085_v44 = vpop.f32.mrf.mxu3  ;;  %v1981_v31 = vadd.f32 %v5802_v59, %v5723_v16 }
 0x31a   : > { %v6077_v46 = vpop.f32.mrf.mxu1  ;;  %3839 = vmatmul.f32.gmra.mxu0 %v5873_v10 }
 0x31b   : > { %v7089_v61 = vmax.f32 %v6073_v40, 0.0 }
 0x31c   : > { %v2090_v37 = vpop.f32.mrf.mxu2  ;;  %v6083_v38 = vld [vmem:[#allocation3 + $0xd8] sm:$0xff] }
 0x31d   : > { %2451 = vst [vmem:[#allocation3 + $0xe1] sm:$0xff] %v7089_v61  ;;  %v2091_v35 = vadd.f32 %v2090_v37, %v1978_v60  ;;  %3545 = vmatmul.f32.gmra.mxu1 %v6083_v38  ;;  %v2601_v60 = vld [vmem:[#allocation3 + $0x52] sm:$0xff] }
 0x31f   : > { %v2204_v10 = vadd.f32 %v6018_v19, %v2091_v35  ;;  %v2322_v7 = vpop.f32.mrf.mxu0  ;;  %v7146_v35 = vmax.f32 %v5839_v1, 0.0 }
 0x320   : > { %3738 = vmatmul.f32.gmra.mxu3 %v2601_v60 }
 0x321   : > { %v6091_v28 = vadd.f32 %v2316_v15, %v2204_v10  ;;  %3613 = vmatmul.f32.gmra.mxu2 %v7145_v12  ;;  %v6103_v19 = vpop.f32.mrf.mxu3  ;;  %v3399_v15 = vld [vmem:[#allocation10 + $0x220] sm:$0xff]  ;;  %v7147_v12 = vld [vmem:[#allocation24_spill] sm:$0xff] }
 0x322   : > { %v6095_v18 = vpop.f32.mrf.mxu1  ;;  %3842 = vmatmul.f32.gmra.mxu0 %v5888_v27  ;;  %3938 = vmatpush.msrb.mxu1 %v3399_v15  ;;  %v1984_v60 = vadd.f32 %v5811_v13, %v7147_v12  ;;  %v7148_v13 = vmax.f32 %v5854_v50, 0.0 }
 0x323   : > { %v7083_v8 = vmax.f32 %v6091_v28, 0.0 }
 0x324   : > { %v2093_v29 = vpop.f32.mrf.mxu2  ;;  %v6101_v37 = vld [vmem:[#allocation3 + $0xe0] sm:$0xff] }
 0x325   : > { %2452 = vst [vmem:[#allocation3 + $0xf1] sm:$0xff] %v7083_v8  ;;  %v2094_v53 = vadd.f32 %v2093_v29, %v1981_v31  ;;  %3548 = vmatmul.f32.gmra.mxu1 %v6101_v37  ;;  %v2602_v29 = vld [vmem:[#allocation3 + $0x62] sm:$0xff] }
 0x327   : > { %v2207_v27 = vadd.f32 %v6035_v34, %v2094_v53  ;;  %v2325_v16 = vpop.f32.mrf.mxu0 }
 0x328   : > { %3741 = vmatmul.f32.gmra.mxu3 %v2602_v29 }
 0x329   : > { %v6109_v59 = vadd.f32 %v2319_v54, %v2207_v27  ;;  %3616 = vmatmul.f32.gmra.mxu2 %v7146_v35  ;;  %v6121_v34 = vpop.f32.mrf.mxu3  ;;  %v7149_v35 = vld [vmem:[#allocation25_spill] sm:$0xff] }
 0x32a   : > { %v6113_v10 = vpop.f32.mrf.mxu1  ;;  %3845 = vmatmul.f32.gmra.mxu0 %v5903_v4  ;;  %v1987_v12 = vadd.f32 %v5824_v39, %v7149_v35  ;;  %v7151_v35 = vld [vmem:[#allocation26_spill] sm:$0xff] }
 0x32b   : > { %v7084_v31 = vmax.f32 %v6109_v59, 0.0 }
 0x32c   : > { %v2096_v8 = vpop.f32.mrf.mxu2  ;;  %v6119_v15 = vld [vmem:[#allocation3 + $0xf0] sm:$0xff] }
 0x32d   : > { %2453 = vst [vmem:[#allocation3 + $0xf9] sm:$0xff] %v7084_v31  ;;  %v2097_v1 = vadd.f32 %v2096_v8, %v1984_v60  ;;  %3551 = vmatmul.f32.gmra.mxu1 %v6119_v15  ;;  %v2603_v8 = vld [vmem:[#allocation3 + $0x6a] sm:$0xff] }
 0x32f   : > { %v2210_v4 = vadd.f32 %v6051_v51, %v2097_v1  ;;  %v2328_v54 = vpop.f32.mrf.mxu0 }
 0x330   : > { %3744 = vmatmul.f32.gmra.mxu3 %v2603_v8  ;;  %v1990_v8 = vadd.f32 %v5842_v48, %v7151_v35  ;;  %v7152_v48 = vmax.f32 %v5884_v20, 0.0 }
 0x331   : > { %v6127_v53 = vadd.f32 %v2322_v7, %v2210_v4  ;;  %3619 = vmatmul.f32.gmra.mxu2 %v7148_v13  ;;  %v6139_v51 = vpop.f32.mrf.mxu3  ;;  %v3398_v7 = vld [vmem:[#allocation10 + $0x218] sm:$0xff]  ;;  %v7150_v4 = vmax.f32 %v5869_v11, 0.0 }
 0x332   : > { %v6131_v27 = vpop.f32.mrf.mxu1  ;;  %3848 = vmatmul.f32.gmra.mxu0 %v5920_v45  ;;  %3939 = vmatpush.msrb.mxu1 %v3398_v7 }
 0x333   : > { %v7085_v29 = vmax.f32 %v6127_v53, 0.0 }
 0x334   : > { %v2099_v60 = vpop.f32.mrf.mxu2  ;;  %v6137_v31 = vld [vmem:[#allocation3 + $0xf8] sm:$0xff] }
 0x335   : > { %2454 = vst [vmem:[#allocation3 + $0x109] sm:$0xff] %v7085_v29  ;;  %v2100_v50 = vadd.f32 %v2099_v60, %v1987_v12  ;;  %3554 = vmatmul.f32.gmra.mxu1 %v6137_v31  ;;  %v2604_v60 = vld [vmem:[#allocation3 + $0x7a] sm:$0xff] }
 0x337   : > { %v2213_v45 = vadd.f32 %v6067_v17, %v2100_v50  ;;  %v2331_v39 = vpop.f32.mrf.mxu0 }
 0x338   : > { %3747 = vmatmul.f32.gmra.mxu3 %v2604_v60 }
 0x339   : > { %v6145_v1 = vadd.f32 %v2325_v16, %v2213_v45  ;;  %3622 = vmatmul.f32.gmra.mxu2 %v7150_v4  ;;  %v6157_v17 = vpop.f32.mrf.mxu3  ;;  %v7153_v4 = vld [vmem:[#allocation27_spill] sm:$0xff] }
 0x33a   : > { %v6149_v13 = vpop.f32.mrf.mxu1  ;;  %3851 = vmatmul.f32.gmra.mxu0 %v5936_v55  ;;  %v1993_v35 = vadd.f32 %v5862_v9, %v7153_v4  ;;  %v7155_v4 = vld [vmem:[#allocation15_spill] sm:$0xff] }
 0x33b   : > { %v7086_v12 = vmax.f32 %v6145_v1, 0.0 }
 0x33c   : > { %v2102_v29 = vpop.f32.mrf.mxu2  ;;  %v6155_v7 = vld [vmem:[#allocation3 + $0x108] sm:$0xff] }
 0x33d   : > { %2455 = vst [vmem:[#allocation3 + $0x111] sm:$0xff] %v7086_v12  ;;  %v2103_v11 = vadd.f32 %v2102_v29, %v1990_v8  ;;  %3557 = vmatmul.f32.gmra.mxu1 %v6155_v7  ;;  %v2605_v29 = vld [vmem:[#allocation3 + $0x82] sm:$0xff] }
 0x33f   : > { %v2216_v55 = vadd.f32 %v6085_v44, %v2103_v11  ;;  %v2334_v16 = vpop.f32.mrf.mxu0 }
 0x340   : > { %3750 = vmatmul.f32.gmra.mxu3 %v2605_v29  ;;  %v1996_v29 = vadd.f32 %v5881_v26, %v7155_v4  ;;  %v7156_v26 = vmax.f32 %v5912_v42, 0.0  ;;  %v7158_v4 = vld [vmem:[#allocation23_spill] sm:$0xff] }
 0x341   : > { %v6163_v50 = vadd.f32 %v2328_v54, %v2216_v55  ;;  %3625 = vmatmul.f32.gmra.mxu2 %v7152_v48  ;;  %v6175_v44 = vpop.f32.mrf.mxu3  ;;  %v3397_v54 = vld [vmem:[#allocation10 + $0x210] sm:$0xff]  ;;  %v7154_v55 = vmax.f32 %v5899_v33, 0.0 }
 0x342   : > { %v6167_v45 = vpop.f32.mrf.mxu1  ;;  %3854 = vmatmul.f32.gmra.mxu0 %v5953_v24  ;;  %3940 = vmatpush.msrb.mxu1 %v3397_v54 }
 0x343   : > { %v7087_v60 = vmax.f32 %v6163_v50, 0.0 }
 0x344   : > { %v2105_v8 = vpop.f32.mrf.mxu2  ;;  %v6173_v12 = vld [vmem:[#allocation3 + $0x110] sm:$0xff] }
 0x345   : > { %2456 = vst [vmem:[#allocation3 + $0x121] sm:$0xff] %v7087_v60  ;;  %v2106_v20 = vadd.f32 %v2105_v8, %v1993_v35  ;;  %3560 = vmatmul.f32.gmra.mxu1 %v6173_v12  ;;  %v2606_v8 = vld [vmem:[#allocation3 + $0x92] sm:$0xff] }
 0x347   : > { %v2219_v24 = vadd.f32 %v6103_v19, %v2106_v20  ;;  %v2337_v9 = vpop.f32.mrf.mxu0 }
 0x348   : > { %3753 = vmatmul.f32.gmra.mxu3 %v2606_v8 }
 0x349   : > { %v6181_v11 = vadd.f32 %v2331_v39, %v2219_v24  ;;  %3628 = vmatmul.f32.gmra.mxu2 %v7154_v55  ;;  %v6193_v19 = vpop.f32.mrf.mxu3  ;;  %v7157_v55 = vld [vmem:[#allocation16_spill] sm:$0xff] }
 0x34a   : > { %v6185_v48 = vpop.f32.mrf.mxu1  ;;  %3857 = vmatmul.f32.gmra.mxu0 %v5971_v36  ;;  %v1999_v8 = vadd.f32 %v7158_v4, %v7157_v55 }
 0x34b   : > { %v7088_v35 = vmax.f32 %v6181_v11, 0.0 }
 0x34c   : > { %v2108_v60 = vpop.f32.mrf.mxu2  ;;  %v6191_v54 = vld [vmem:[#allocation3 + $0x120] sm:$0xff] }
 0x34d   : > { %2457 = vst [vmem:[#allocation3 + $0x129] sm:$0xff] %v7088_v35  ;;  %v2109_v33 = vadd.f32 %v2108_v60, %v1996_v29  ;;  %3563 = vmatmul.f32.gmra.mxu1 %v6191_v54  ;;  %v2607_v60 = vld [vmem:[#allocation3 + $0x9a] sm:$0xff] }
 0x34f   : > { %v2222_v36 = vadd.f32 %v6121_v34, %v2109_v33  ;;  %v2340_v39 = vpop.f32.mrf.mxu0 }
 0x350   : > { %3756 = vmatmul.f32.gmra.mxu3 %v2607_v60  ;;  %v7161_v60 = vld [vmem:[#allocation17_spill] sm:$0xff] }
 0x351   : > { %v6199_v20 = vadd.f32 %v2334_v16, %v2222_v36  ;;  %3631 = vmatmul.f32.gmra.mxu2 %v7156_v26  ;;  %v6211_v34 = vpop.f32.mrf.mxu3  ;;  %v3396_v16 = vld [vmem:[#allocation10 + $0x208] sm:$0xff]  ;;  %v7159_v26 = vld [vmem:[#allocation29_spill] sm:$0xff] }
 0x352   : > { %v6203_v24 = vpop.f32.mrf.mxu1  ;;  %3860 = vmatmul.f32.gmra.mxu0 %v5987_v6  ;;  %3941 = vmatpush.msrb.mxu1 %v3396_v16  ;;  %v7160_v55 = vmax.f32 %v7159_v26, 0.0 }
 0x353   : > { %v7091_v35 = vmax.f32 %v6199_v20, 0.0 }
 0x354   : > { %v2111_v29 = vpop.f32.mrf.mxu2  ;;  %v6209_v61 = vld [vmem:[#allocation3 + $0x128] sm:$0xff] }
 0x355   : > { %2458 = vst [vmem:[#allocation3 + $0x139] sm:$0xff] %v7091_v35  ;;  %v2112_v42 = vadd.f32 %v2111_v29, %v1999_v8  ;;  %3566 = vmatmul.f32.gmra.mxu1 %v6209_v61  ;;  %v2002_v35 = vadd.f32 %v7162_v30, %v7161_v60  ;;  %v2608_v29 = vld [vmem:[#allocation3 + $0xaa] sm:$0xff] }
 0x356   : > { %v7164_v30 = vld [vmem:[#allocation31_spill] sm:$0xff]  ;;  %v7167_v60 = vld [vmem:[#allocation18_spill] sm:$0xff] }
 0x357   : > { %v2225_v6 = vadd.f32 %v6139_v51, %v2112_v42  ;;  %v2343_v33 = vpop.f32.mrf.mxu0  ;;  %v7165_v26 = vmax.f32 %v7164_v30, 0.0 }
 0x358   : > { %3759 = vmatmul.f32.gmra.mxu3 %v2608_v29  ;;  %v7168_v29 = vld [vmem:[#allocation30_spill] sm:$0xff] }
 0x359   : > { %v6217_v36 = vadd.f32 %v2337_v9, %v2225_v6  ;;  %3634 = vmatmul.f32.gmra.mxu2 %v7160_v55  ;;  %v6229_v51 = vpop.f32.mrf.mxu3  ;;  %v2005_v52 = vadd.f32 %v7168_v29, %v7167_v60  ;;  %v7169_v29 = vld [vmem:[#allocation33_spill] sm:$0xff] }
 0x35a   : > { %v6221_v4 = vpop.f32.mrf.mxu1  ;;  %3863 = vmatmul.f32.gmra.mxu0 %v6003_v0 }
 0x35b   : > { %v7094_v8 = vmax.f32 %v6217_v36, 0.0 }
 0x35c   : > { %v2114_v49 = vpop.f32.mrf.mxu2  ;;  %v6227_v16 = vld [vmem:[#allocation3 + $0x138] sm:$0xff] }
 0x35d   : > { %2459 = vst [vmem:[#allocation3 + $0x141] sm:$0xff] %v7094_v8  ;;  %v2115_v9 = vadd.f32 %v2114_v49, %v2002_v35  ;;  %3569 = vmatmul.f32.gmra.mxu1 %v6227_v16  ;;  %v2609_v49 = vld [vmem:[#allocation3 + $0xb2] sm:$0xff] }
 0x35f   : > { %v2228_v0 = vadd.f32 %v6157_v17, %v2115_v9  ;;  %v2346_v42 = vpop.f32.mrf.mxu0  ;;  %v3426_v9 = vld [vmem:[#allocation10 + $0x2f8] sm:$0xff] }
 0x360   : > { %3762 = vmatmul.f32.gmra.mxu3 %v2609_v49  ;;  %4040 = vmatpush.msra.mxu2 %v3426_v9  ;;  %v7170_v49 = vmax.f32 %v7169_v29, 0.0 }
 0x361   : > { %v6235_v6 = vadd.f32 %v2340_v39, %v2228_v0  ;;  %3637 = vmatmul.f32.gmra.mxu2 %v7165_v26  ;;  %v3395_v39 = vld [vmem:[#allocation10 + $0x200] sm:$0xff]  ;;  %v3442_v0 = vld [vmem:[#allocation10 + $0x378] sm:$0xff] }
 0x362   : > { %v6239_v55 = vpop.f32.mrf.mxu1  ;;  %3866 = vmatmul.f32.gmra.mxu0 %v6016_v23  ;;  %v6250_v23 = vpop.f32.mrf.mxu3  ;;  %3942 = vmatpush.msrb.mxu1 %v3395_v39  ;;  %v2610_v39 = vld [vmem:[#allocation3 + $0xc2] sm:$0xff] }
 0x363   : > { %7163 = vst [vmem:[#allocation24_spill] sm:$0xff] %v6235_v6  ;;  %v7096_v8 = vmax.f32 %v6235_v6, 0.0  ;;  %4153 = vmatpush.msra.mxu3 %v3442_v0 }
 0x364   : > { %7166 = vst [vmem:[#allocation25_spill] sm:$0xff] %v6239_v55  ;;  %v2117_v35 = vpop.f32.mrf.mxu2  ;;  %v6245_v57 = vld [vmem:[#allocation3 + $0x140] sm:$0xff] }
 0x365   : > { %2460 = vst [vmem:[#allocation3 + $0x151] sm:$0xff] %v7096_v8  ;;  %v2118_v17 = vadd.f32 %v2117_v35, %v2005_v52  ;;  %3572 = vmatmul.f32.gmra.mxu1 %v6245_v57  ;;  %v7171_v52 = vld [vmem:[#allocation19_spill] sm:$0xff]  ;;  %v7172_v35 = vld [vmem:[#allocation32_spill] sm:$0xff] }
 0x366   : > { %v2008_v43 = vadd.f32 %v7172_v35, %v7171_v52  ;;  %v3425_v52 = vld [vmem:[#allocation10 + $0x2f0] sm:$0xff] }
 0x367   : > { %v2231_v30 = vadd.f32 %v6175_v44, %v2118_v17  ;;  %v2349_v26 = vpop.f32.mrf.mxu0  ;;  %4041 = vmatpush.msra.mxu2 %v3425_v52 }
 0x368   : > { %3765 = vmatmul.f32.gmra.mxu3 %v2610_v39  ;;  %v7174_v39 = vld [vmem:[#allocation20_spill] sm:$0xff] }
 0x369   : > { %v6253_v60 = vadd.f32 %v2343_v33, %v2231_v30  ;;  %3640 = vmatmul.f32.gmra.mxu2 %v7170_v49  ;;  %v3458_v33 = vld [vmem:[#allocation10 + $0x3f8] sm:$0xff]  ;;  %v7173_v49 = vmax.f32 %v5982_v3, 0.0 }
 0x36a   : > { %v6257_v8 = vpop.f32.mrf.mxu1  ;;  %3869 = vmatmul.f32.gmra.mxu0 %v6033_v58  ;;  %v3474_v30 = vld [vmem:[#allocation10 + $0x478] sm:$0xff] }
 0x36b   : > { %v7101_v6 = vmax.f32 %v6253_v60, 0.0  ;;  %4266 = vmatpush.msra.mxu0 %v3458_v33  ;;  %v6269_v0 = vpop.f32.mrf.mxu3  ;;  %4379 = vmatpush.msra.mxu1 %v3474_v30 }
 0x36c   : > { %v2120_v9 = vpop.f32.mrf.mxu2  ;;  %v6263_v55 = vld [vmem:[#allocation3 + $0x150] sm:$0xff] }
 0x36d   : > { %2461 = vst [vmem:[#allocation3 + $0x159] sm:$0xff] %v7101_v6  ;;  %v2121_v44 = vadd.f32 %v2120_v9, %v2008_v43  ;;  %3575 = vmatmul.f32.gmra.mxu1 %v6263_v55  ;;  %v3441_v43 = vld [vmem:[#allocation10 + $0x370] sm:$0xff] }
 0x36e   : > { %4154 = vmatpush.msra.mxu3 %v3441_v43  ;;  %v3457_v43 = vld [vmem:[#allocation10 + $0x3f0] sm:$0xff] }
 0x36f   : > { %v2234_v58 = vadd.f32 %v6193_v19, %v2121_v44  ;;  %v2352_v17 = vpop.f32.mrf.mxu0  ;;  %v2011_v19 = vadd.f32 %v5979_v25, %v7174_v39  ;;  %v2611_v44 = vld [vmem:[#allocation3 + $0xca] sm:$0xff]  ;;  %v7176_v39 = vld [vmem:[#allocation21_spill] sm:$0xff]  ;;  %4267 = vmatpush.msra.mxu0 %v3457_v43  ;;  %v7177_v43 = vmax.f32 %v6011_v14, 0.0 }
 0x370   : > { %3768 = vmatmul.f32.gmra.mxu3 %v2611_v44 }
 0x371   : > { %v6271_v29 = vadd.f32 %v2346_v42, %v2234_v58  ;;  %3643 = vmatmul.f32.gmra.mxu2 %v7173_v49  ;;  %v7175_v49 = vmax.f32 %v5996_v41, 0.0 }
 0x372   : > { %v6275_v35 = vpop.f32.mrf.mxu1  ;;  %3872 = vmatmul.f32.gmra.mxu0 %v6049_v62 }
 0x373   : > { %v7099_v9 = vmax.f32 %v6271_v29, 0.0  ;;  %v6287_v30 = vpop.f32.mrf.mxu3 }
 0x374   : > { %v2123_v33 = vpop.f32.mrf.mxu2  ;;  %v6281_v42 = vld [vmem:[#allocation3 + $0x158] sm:$0xff] }
 0x375   : > { %2462 = vst [vmem:[#allocation3 + $0x169] sm:$0xff] %v7099_v9  ;;  %v2124_v3 = vadd.f32 %v2123_v33, %v2011_v19  ;;  %3578 = vmatmul.f32.gmra.mxu1 %v6281_v42  ;;  %v2014_v19 = vadd.f32 %v6000_v63, %v7176_v39  ;;  %v2612_v33 = vld [vmem:[#allocation3 + $0xda] sm:$0xff] }
 0x376   : > { %v3473_v63 = vld [vmem:[#allocation10 + $0x470] sm:$0xff]  ;;  %v3424_v39 = vld [vmem:[#allocation10 + $0x2e8] sm:$0xff] }
 0x377   : > { %v2237_v62 = vadd.f32 %v6211_v34, %v2124_v3  ;;  %v2355_v58 = vpop.f32.mrf.mxu0  ;;  %4380 = vmatpush.msra.mxu1 %v3473_v63  ;;  %4042 = vmatpush.msra.mxu2 %v3424_v39 }
 0x378   : > { %3771 = vmatmul.f32.gmra.mxu3 %v2612_v33  ;;  %v7178_v33 = vld [vmem:[#allocation22_spill] sm:$0xff] }
 0x379   : > { %v6289_v25 = vadd.f32 %v2349_v26, %v2237_v62  ;;  %3646 = vmatmul.f32.gmra.mxu2 %v7175_v49 }
 0x37a   : > { %v6293_v52 = vpop.f32.mrf.mxu1  ;;  %3875 = vmatmul.f32.gmra.mxu0 %v6065_v22 }
 0x37b   : > { %v7100_v44 = vmax.f32 %v6289_v25, 0.0  ;;  %v6305_v62 = vpop.f32.mrf.mxu3 }
 0x37c   : > { %v2126_v34 = vpop.f32.mrf.mxu2  ;;  %v6299_v3 = vld [vmem:[#allocation3 + $0x168] sm:$0xff] }
 0x37d   : > { %2463 = vst [vmem:[#allocation3 + $0x171] sm:$0xff] %v7100_v44  ;;  %v2127_v41 = vadd.f32 %v2126_v34, %v2014_v19  ;;  %3581 = vmatmul.f32.gmra.mxu1 %v6299_v3  ;;  %v3440_v19 = vld [vmem:[#allocation10 + $0x368] sm:$0xff]  ;;  %v2017_v34 = vadd.f32 %v6023_v56, %v7178_v33 }
 0x37e   : > { %4155 = vmatpush.msra.mxu3 %v3440_v19  ;;  %v2614_v19 = vld [vmem:[#allocation3 + $0xf2] sm:$0xff] }
 0x37f   : > { %v2240_v22 = vadd.f32 %v6229_v51, %v2127_v41  ;;  %v3831_v26 = vpop.f32.mrf.mxu0  ;;  %v2613_v41 = vld [vmem:[#allocation3 + $0xe2] sm:$0xff]  ;;  %v2722_v33 = vld [vmem:[#allocation3 + $0x19] sm:$0xff] }
 0x380   : > { %3774 = vmatmul.f32.gmra.mxu3 %v2613_v41  ;;  %v3423_v41 = vld [vmem:[#allocation10 + $0x2e0] sm:$0xff] }
 0x381   : > { %v2353_v49 = vadd.f32 %v2352_v17, %v2240_v22  ;;  %3649 = vmatmul.f32.gmra.mxu2 %v7177_v43  ;;  %v7179_v43 = vmax.f32 %v6026_v21, 0.0 }
 0x382   : > { %v6309_v9 = vpop.f32.mrf.mxu1  ;;  %3878 = vmatmul.f32.gmra.mxu0 %v6083_v38  ;;  %4043 = vmatpush.msra.mxu2 %v3423_v41  ;;  %v3422_v41 = vld [vmem:[#allocation10 + $0x2d8] sm:$0xff] }
 0x383   : > { %v2431_v51 = vmax.f32 %v2353_v49, 0.0  ;;  %v6318_v38 = vpop.f32.mrf.mxu3  ;;  %v3456_v49 = vld [vmem:[#allocation10 + $0x3e8] sm:$0xff] }
 0x384   : > { %v2129_v44 = vpop.f32.mrf.mxu2  ;;  %v6314_v6 = vld [vmem:[#allocation3 + $0x170] sm:$0xff]  ;;  %4268 = vmatpush.msra.mxu0 %v3456_v49  ;;  %4044 = vmatpush.msra.mxu2 %v3422_v41 }
 0x385   : > { %2464 = vst [vmem:[#allocation3 + $0x181] sm:$0xff] %v2431_v51  ;;  %v2130_v14 = vadd.f32 %v2129_v44, %v2017_v34  ;;  %3584 = vmatmul.f32.gmra.mxu1 %v6314_v6  ;;  %v3472_v51 = vld [vmem:[#allocation10 + $0x468] sm:$0xff] }
 0x386   : > { %4381 = vmatpush.msra.mxu1 %v3472_v51 }
 0x387   : > { %v2243_v17 = vadd.f32 %v6250_v23, %v2130_v14  ;;  %v3834_v22 = vpop.f32.mrf.mxu0 }
 0x388   : > { %3777 = vmatmul.f32.gmra.mxu3 %v2614_v19 }
 0x389   : > { %v2356_v63 = vadd.f32 %v2355_v58, %v2243_v17  ;;  %3652 = vmatmul.f32.gmra.mxu2 %v7179_v43  ;;  %v2723_v43 = vld [vmem:[#allocation3 + $0x21] sm:$0xff] }
 0x38a   : > { %v6322_v56 = vpop.f32.mrf.mxu1  ;;  %3881 = vmatmul.f32.gmra.mxu0 %v6101_v37  ;;  %v7180_v37 = vmax.f32 %v6043_v47, 0.0 }
 0x38b   : > { %v2432_v39 = vmax.f32 %v2356_v63, 0.0  ;;  %v6327_v21 = vpop.f32.mrf.mxu3  ;;  %v2615_v63 = vld [vmem:[#allocation3 + $0xfa] sm:$0xff] }
 0x38c   : > { %v3605_v44 = vpop.f32.mrf.mxu2 }
 0x38d   : > { %2465 = vst [vmem:[#allocation3 + $0x189] sm:$0xff] %v2432_v39  ;;  %v3606_v23 = vadd.f32 %v3605_v44, %v6040_v5  ;;  %3943 = vmatmul.f32.vlgmr.msrb.gmra.mxu1 %v2722_v33  ;;  %v3439_v5 = vld [vmem:[#allocation10 + $0x360] sm:$0xff] }
 0x38e   : > { %4156 = vmatpush.msra.mxu3 %v3439_v5  ;;  %v3455_v33 = vld [vmem:[#allocation10 + $0x3e0] sm:$0xff] }
 0x38f   : > { %v3719_v58 = vadd.f32 %v6269_v0, %v3606_v23  ;;  %v3837_v34 = vpop.f32.mrf.mxu0  ;;  %v2616_v23 = vld [vmem:[#allocation3 + $0x10a] sm:$0xff]  ;;  %4269 = vmatpush.msra.mxu0 %v3455_v33 }
 0x390   : > { %3780 = vmatmul.f32.gmra.mxu3 %v2615_v63 }
 0x391   : > { %3655 = vmatmul.f32.gmra.mxu2 %v7180_v37  ;;  %v6331_v14 = vadd.f32 %v3831_v26, %v3719_v58  ;;  %v7181_v26 = vmax.f32 %v6059_v2, 0.0  ;;  %v3471_v37 = vld [vmem:[#allocation10 + $0x460] sm:$0xff] }
 0x392   : > { %v6333_v17 = vpop.f32.mrf.mxu1  ;;  %3884 = vmatmul.f32.gmra.mxu0 %v6119_v15  ;;  %4382 = vmatpush.msra.mxu1 %v3471_v37  ;;  %v3470_v37 = vld [vmem:[#allocation10 + $0x458] sm:$0xff] }
 0x393   : > { %v6338_v19 = vpop.f32.mrf.mxu3 }
 0x394   : > { %v3608_v0 = vpop.f32.mrf.mxu2  ;;  %4383 = vmatpush.msra.mxu1 %v3470_v37  ;;  %v3469_v37 = vld [vmem:[#allocation10 + $0x450] sm:$0xff] }
 0x395   : > { %v3609_v49 = vadd.f32 %v3608_v0, %v6057_v32  ;;  %3946 = vmatmul.f32.gmra.mxu1 %v2723_v43  ;;  %v6347_v32 = vld [vmem:[#allocation3 + $0x31] sm:$0xff]  ;;  %v6361_v43 = vld [vmem:[#allocation3 + $0x39] sm:$0xff] }
 0x396   : > { %v2617_v0 = vld [vmem:[#allocation3 + $0x112] sm:$0xff]  ;;  %4384 = vmatpush.msra.mxu1 %v3469_v37 }
 0x397   : > { %v3722_v47 = vadd.f32 %v6287_v30, %v3609_v49  ;;  %v3840_v39 = vpop.f32.mrf.mxu0  ;;  %v3468_v37 = vld [vmem:[#allocation10 + $0x448] sm:$0xff] }
 0x398   : > { %3783 = vmatmul.f32.gmra.mxu3 %v2616_v23  ;;  %v3454_v23 = vld [vmem:[#allocation10 + $0x3d8] sm:$0xff]  ;;  %4385 = vmatpush.msra.mxu1 %v3468_v37  ;;  %v6461_v37 = vld [vmem:[#allocation3 + $0x91] sm:$0xff] }
 0x399   : > { %3658 = vmatmul.f32.gmra.mxu2 %v7181_v26  ;;  %v6342_v44 = vadd.f32 %v3834_v22, %v3722_v47  ;;  %v7183_v26 = vmax.f32 %v6091_v28, 0.0  ;;  %4270 = vmatpush.msra.mxu0 %v3454_v23 }
 0x39a   : > { %v6344_v15 = vpop.f32.mrf.mxu1  ;;  %3887 = vmatmul.f32.gmra.mxu0 %v6137_v31  ;;  %v7182_v31 = vmax.f32 %v6073_v40, 0.0 }
 0x39b   : > { %v6352_v22 = vpop.f32.mrf.mxu3 }
 0x39c   : > { %v3611_v58 = vpop.f32.mrf.mxu2 }
 0x39d   : > { %v3612_v30 = vadd.f32 %v3611_v58, %v6077_v46  ;;  %3949 = vmatmul.f32.gmra.mxu1 %v6347_v32  ;;  %v3438_v46 = vld [vmem:[#allocation10 + $0x358] sm:$0xff] }
 0x39e   : > { %4157 = vmatpush.msra.mxu3 %v3438_v46  ;;  %v2618_v58 = vld [vmem:[#allocation3 + $0x122] sm:$0xff] }
 0x39f   : > { %v3725_v2 = vadd.f32 %v6305_v62, %v3612_v30  ;;  %v3843_v51 = vpop.f32.mrf.mxu0  ;;  %v6375_v30 = vld [vmem:[#allocation3 + $0x49] sm:$0xff] }
 0x3a0   : > { %3786 = vmatmul.f32.gmra.mxu3 %v2617_v0  ;;  %v2619_v0 = vld [vmem:[#allocation3 + $0x12a] sm:$0xff] }
 0x3a1   : > { %3661 = vmatmul.f32.gmra.mxu2 %v7182_v31  ;;  %v6356_v5 = vadd.f32 %v3837_v34, %v3725_v2  ;;  %v3421_v31 = vld [vmem:[#allocation10 + $0x2d0] sm:$0xff] }
 0x3a2   : > { %v6358_v63 = vpop.f32.mrf.mxu1  ;;  %3890 = vmatmul.f32.gmra.mxu0 %v6155_v7  ;;  %4045 = vmatpush.msra.mxu2 %v3421_v31 }
 0x3a3   : > { %v6366_v47 = vpop.f32.mrf.mxu3 }
 0x3a4   : > { %v3614_v62 = vpop.f32.mrf.mxu2 }
 0x3a5   : > { %v3615_v49 = vadd.f32 %v3614_v62, %v6095_v18  ;;  %3952 = vmatmul.f32.gmra.mxu1 %v6361_v43  ;;  %v6389_v62 = vld [vmem:[#allocation3 + $0x51] sm:$0xff] }
 0x3a7   : > { %v3728_v40 = vadd.f32 %v6318_v38, %v3615_v49  ;;  %v3846_v34 = vpop.f32.mrf.mxu0 }
 0x3a8   : > { %3789 = vmatmul.f32.gmra.mxu3 %v2618_v58  ;;  %v3453_v58 = vld [vmem:[#allocation10 + $0x3d0] sm:$0xff] }
 0x3a9   : > { %3664 = vmatmul.f32.gmra.mxu2 %v7183_v26  ;;  %v6370_v7 = vadd.f32 %v3840_v39, %v3728_v40  ;;  %v7185_v26 = vmax.f32 %v6127_v53, 0.0  ;;  %4271 = vmatpush.msra.mxu0 %v3453_v58 }
 0x3aa   : > { %v6372_v33 = vpop.f32.mrf.mxu1  ;;  %3893 = vmatmul.f32.gmra.mxu0 %v6173_v12  ;;  %v7184_v12 = vmax.f32 %v6109_v59, 0.0 }
 0x3ab   : > { %v6380_v39 = vpop.f32.mrf.mxu3 }
 0x3ac   : > { %v3617_v18 = vpop.f32.mrf.mxu2 }
 0x3ad   : > { %v3618_v38 = vadd.f32 %v3617_v18, %v6113_v10  ;;  %3955 = vmatmul.f32.gmra.mxu1 %v6375_v30  ;;  %v3437_v10 = vld [vmem:[#allocation10 + $0x350] sm:$0xff] }
 0x3ae   : > { %4158 = vmatpush.msra.mxu3 %v3437_v10  ;;  %v2620_v18 = vld [vmem:[#allocation3 + $0x13a] sm:$0xff] }
 0x3af   : > { %v3731_v28 = vadd.f32 %v6327_v21, %v3618_v38  ;;  %v3849_v2 = vpop.f32.mrf.mxu0  ;;  %v6403_v38 = vld [vmem:[#allocation3 + $0x61] sm:$0xff] }
 0x3b0   : > { %3792 = vmatmul.f32.gmra.mxu3 %v2619_v0  ;;  %v2621_v0 = vld [vmem:[#allocation3 + $0x142] sm:$0xff] }
 0x3b1   : > { %3667 = vmatmul.f32.gmra.mxu2 %v7184_v12  ;;  %v6384_v41 = vadd.f32 %v3843_v51, %v3731_v28  ;;  %v3420_v12 = vld [vmem:[#allocation10 + $0x2c8] sm:$0xff] }
 0x3b2   : > { %v6386_v46 = vpop.f32.mrf.mxu1  ;;  %3896 = vmatmul.f32.gmra.mxu0 %v6191_v54  ;;  %4046 = vmatpush.msra.mxu2 %v3420_v12 }
 0x3b3   : > { %v6394_v40 = vpop.f32.mrf.mxu3 }
 0x3b4   : > { %v3620_v21 = vpop.f32.mrf.mxu2 }
 0x3b5   : > { %v3621_v49 = vadd.f32 %v3620_v21, %v6131_v27  ;;  %3958 = vmatmul.f32.gmra.mxu1 %v6389_v62  ;;  %v6417_v21 = vld [vmem:[#allocation3 + $0x69] sm:$0xff] }
 0x3b7   : > { %v3734_v59 = vadd.f32 %v6338_v19, %v3621_v49  ;;  %v3852_v51 = vpop.f32.mrf.mxu0 }
 0x3b8   : > { %3795 = vmatmul.f32.gmra.mxu3 %v2620_v18  ;;  %v3452_v18 = vld [vmem:[#allocation10 + $0x3c8] sm:$0xff] }
 0x3b9   : > { %3670 = vmatmul.f32.gmra.mxu2 %v7185_v26  ;;  %v6398_v54 = vadd.f32 %v3846_v34, %v3734_v59  ;;  %v7187_v26 = vmax.f32 %v6163_v50, 0.0  ;;  %4272 = vmatpush.msra.mxu0 %v3452_v18 }
 0x3ba   : > { %v6400_v23 = vpop.f32.mrf.mxu1  ;;  %3899 = vmatmul.f32.gmra.mxu0 %v6209_v61  ;;  %v7186_v61 = vmax.f32 %v6145_v1, 0.0 }
 0x3bb   : > { %v6408_v34 = vpop.f32.mrf.mxu3 }
 0x3bc   : > { %v3623_v27 = vpop.f32.mrf.mxu2 }
 0x3bd   : > { %v3624_v19 = vadd.f32 %v3623_v27, %v6149_v13  ;;  %3961 = vmatmul.f32.gmra.mxu1 %v6403_v38  ;;  %v3436_v13 = vld [vmem:[#allocation10 + $0x348] sm:$0xff] }
 0x3be   : > { %4159 = vmatpush.msra.mxu3 %v3436_v13  ;;  %v2622_v27 = vld [vmem:[#allocation3 + $0x152] sm:$0xff] }
 0x3bf   : > { %v3737_v53 = vadd.f32 %v6352_v22, %v3624_v19  ;;  %v3855_v28 = vpop.f32.mrf.mxu0  ;;  %v6431_v19 = vld [vmem:[#allocation3 + $0x79] sm:$0xff] }
 0x3c0   : > { %3798 = vmatmul.f32.gmra.mxu3 %v2621_v0  ;;  %v2623_v0 = vld [vmem:[#allocation3 + $0x15a] sm:$0xff] }
 0x3c1   : > { %3673 = vmatmul.f32.gmra.mxu2 %v7186_v61  ;;  %v6412_v31 = vadd.f32 %v3849_v2, %v3737_v53  ;;  %v3419_v61 = vld [vmem:[#allocation10 + $0x2c0] sm:$0xff] }
 0x3c2   : > { %v6414_v10 = vpop.f32.mrf.mxu1  ;;  %3902 = vmatmul.f32.gmra.mxu0 %v6227_v16  ;;  %4047 = vmatpush.msra.mxu2 %v3419_v61  ;;  %v3449_v61 = vld [vmem:[#allocation10 + $0x3b0] sm:$0xff] }
 0x3c3   : > { %v6422_v59 = vpop.f32.mrf.mxu3 }
 0x3c4   : > { %v3626_v22 = vpop.f32.mrf.mxu2 }
 0x3c5   : > { %v3627_v49 = vadd.f32 %v3626_v22, %v6167_v45  ;;  %3964 = vmatmul.f32.gmra.mxu1 %v6417_v21  ;;  %v6445_v22 = vld [vmem:[#allocation3 + $0x81] sm:$0xff] }
 0x3c7   : > { %v3740_v1 = vadd.f32 %v6366_v47, %v3627_v49  ;;  %v3858_v2 = vpop.f32.mrf.mxu0 }
 0x3c8   : > { %3801 = vmatmul.f32.gmra.mxu3 %v2622_v27 }
 0x3c9   : > { %3676 = vmatmul.f32.gmra.mxu2 %v7187_v26  ;;  %v6426_v16 = vadd.f32 %v3852_v51, %v3740_v1  ;;  %v3451_v26 = vld [vmem:[#allocation10 + $0x3c0] sm:$0xff] }
 0x3ca   : > { %v6428_v58 = vpop.f32.mrf.mxu1  ;;  %3905 = vmatmul.f32.gmra.mxu0 %v6245_v57  ;;  %v7188_v57 = vmax.f32 %v6181_v11, 0.0 }
 0x3cb   : > { %v6436_v51 = vpop.f32.mrf.mxu3  ;;  %4273 = vmatpush.msra.mxu0 %v3451_v26  ;;  %v3415_v26 = vld [vmem:[#allocation10 + $0x2a0] sm:$0xff] }
 0x3cc   : > { %v3629_v45 = vpop.f32.mrf.mxu2 }
 0x3cd   : > { %v3630_v47 = vadd.f32 %v3629_v45, %v6185_v48  ;;  %3967 = vmatmul.f32.gmra.mxu1 %v6431_v19  ;;  %v3435_v48 = vld [vmem:[#allocation10 + $0x340] sm:$0xff]  ;;  %v3434_v45 = vld [vmem:[#allocation10 + $0x338] sm:$0xff] }
 0x3ce   : > { %4160 = vmatpush.msra.mxu3 %v3435_v48 }
 0x3cf   : > { %v3743_v50 = vadd.f32 %v6380_v39, %v3630_v47  ;;  %v3861_v53 = vpop.f32.mrf.mxu0  ;;  %v3450_v47 = vld [vmem:[#allocation10 + $0x3b8] sm:$0xff] }
 0x3d0   : > { %3804 = vmatmul.f32.gmra.mxu3 %v2623_v0  ;;  %4274 = vmatpush.msra.mxu0 %v3450_v47  ;;  %v3447_v47 = vld [vmem:[#allocation10 + $0x3a0] sm:$0xff] }
 0x3d1   : > { %3679 = vmatmul.f32.gmra.mxu2 %v7188_v57  ;;  %v6440_v12 = vadd.f32 %v3855_v28, %v3743_v50  ;;  %v2624_v50 = vld [vmem:[#allocation3 + $0x16a] sm:$0xff]  ;;  %4161 = vmatpush.msra.mxu3 %v3434_v45  ;;  %v3433_v57 = vld [vmem:[#allocation10 + $0x330] sm:$0xff] }
 0x3d2   : > { %v6442_v13 = vpop.f32.mrf.mxu1  ;;  %3908 = vmatmul.f32.gmra.mxu0 %v6263_v55  ;;  %v7189_v55 = vmax.f32 %v6199_v20, 0.0 }
 0x3d3   : > { %v6452_v1 = vpop.f32.mrf.mxu3  ;;  %4162 = vmatpush.msra.mxu3 %v3433_v57  ;;  %4275 = vmatpush.msra.mxu0 %v3449_v61  ;;  %v6477_v57 = vld [vmem:[#allocation3 + $0x99] sm:$0xff] }
 0x3d4   : > { %v3632_v39 = vpop.f32.mrf.mxu2  ;;  %v7192_v61 = vld [vmem:[#allocation25_spill] sm:$0xff] }
 0x3d5   : > { %v3633_v49 = vadd.f32 %v3632_v39, %v6203_v24  ;;  %3970 = vmatmul.f32.gmra.mxu1 %v6445_v22  ;;  %v3418_v24 = vld [vmem:[#allocation10 + $0x2b8] sm:$0xff]  ;;  %v3467_v39 = vld [vmem:[#allocation10 + $0x440] sm:$0xff] }
 0x3d6   : > { %4048 = vmatpush.msra.mxu2 %v3418_v24  ;;  %4386 = vmatpush.msra.mxu1 %v3467_v39  ;;  %v7190_v24 = vmax.f32 %v6217_v36, 0.0  ;;  %v3446_v36 = vld [vmem:[#allocation10 + $0x398] sm:$0xff]  ;;  %v3445_v39 = vld [vmem:[#allocation10 + $0x390] sm:$0xff] }
 0x3d7   : > { %v3746_v11 = vadd.f32 %v6394_v40, %v3633_v49  ;;  %v6450_v28 = vpop.f32.mrf.mxu0  ;;  %v3416_v49 = vld [vmem:[#allocation10 + $0x2a8] sm:$0xff] }
 0x3d8   : > { %3807 = vmatmul.f32.gmra.mxu3 %v2624_v50  ;;  %v3414_v50 = vld [vmem:[#allocation10 + $0x298] sm:$0xff] }
 0x3d9   : > { %3682 = vmatmul.f32.gmra.mxu2 %v7189_v55  ;;  %v6456_v18 = vadd.f32 %v3858_v2, %v3746_v11  ;;  %v3417_v2 = vld [vmem:[#allocation10 + $0x2b0] sm:$0xff]  ;;  %v3432_v11 = vld [vmem:[#allocation10 + $0x328] sm:$0xff]  ;;  %v3431_v55 = vld [vmem:[#allocation10 + $0x320] sm:$0xff] }
 0x3da   : > { %v6458_v27 = vpop.f32.mrf.mxu1  ;;  %3911 = vmatmul.f32.gmra.mxu0 %v6281_v42  ;;  %4049 = vmatpush.msra.mxu2 %v3417_v2 }
 0x3db   : > { %v6468_v0 = vpop.f32.mrf.mxu3  ;;  %4163 = vmatpush.msra.mxu3 %v3432_v11 }
 0x3dc   : > { %v3635_v40 = vpop.f32.mrf.mxu2  ;;  %4050 = vmatpush.msra.mxu2 %v3416_v49 }
 0x3dd   : > { %v3636_v20 = vadd.f32 %v3635_v40, %v6221_v4  ;;  %3973 = vmatmul.f32.gmra.mxu1 %v6461_v37  ;;  %v3448_v4 = vld [vmem:[#allocation10 + $0x3a8] sm:$0xff]  ;;  %4164 = vmatpush.msra.mxu3 %v3431_v55 }
 0x3de   : > { %4051 = vmatpush.msra.mxu2 %v3415_v26  ;;  %4276 = vmatpush.msra.mxu0 %v3448_v4  ;;  %v2625_v40 = vld [vmem:[#allocation3 + $0x172] sm:$0xff] }
 0x3df   : > { %v3749_v42 = vadd.f32 %v6408_v34, %v3636_v20  ;;  %v6466_v48 = vpop.f32.mrf.mxu0  ;;  %v3430_v20 = vld [vmem:[#allocation10 + $0x318] sm:$0xff]  ;;  %v3412_v26 = vld [vmem:[#allocation10 + $0x288] sm:$0xff] }
 0x3e0   : > { %3810 = vmatmul.f32.gmra.mxu3 %v2625_v40  ;;  %4052 = vmatpush.msra.mxu2 %v3414_v50  ;;  %v3428_v55 = vld [vmem:[#allocation10 + $0x308] sm:$0xff]  ;;  %v3411_v50 = vld [vmem:[#allocation10 + $0x280] sm:$0xff] }
 0x3e1   : > { %3685 = vmatmul.f32.gmra.mxu2 %v7190_v24  ;;  %v6472_v45 = vadd.f32 %v3861_v53, %v3749_v42  ;;  %4277 = vmatpush.msra.mxu0 %v3447_v47  ;;  %v3413_v42 = vld [vmem:[#allocation10 + $0x290] sm:$0xff]  ;;  %v3444_v24 = vld [vmem:[#allocation10 + $0x388] sm:$0xff]  ;;  %v3427_v47 = vld [vmem:[#allocation10 + $0x300] sm:$0xff] }
 0x3e2   : > { %v6474_v34 = vpop.f32.mrf.mxu1  ;;  %3914 = vmatmul.f32.gmra.mxu0 %v6299_v3  ;;  %v3429_v3 = vld [vmem:[#allocation10 + $0x310] sm:$0xff]  ;;  %4165 = vmatpush.msra.mxu3 %v3430_v20  ;;  %v7193_v40 = vld [vmem:[#allocation24_spill] sm:$0xff] }
 0x3e3   : > { %7191 = vst [vmem:[#allocation26_spill] sm:$0xff] %v6472_v45  ;;  %4053 = vmatpush.msra.mxu2 %v3413_v42  ;;  %4278 = vmatpush.msra.mxu0 %v3446_v36  ;;  %v6482_v4 = vpop.f32.mrf.mxu3  ;;  %v6634_v45 = vld [vmem:[#allocation3 + $0x82] sm:$0xff] }
 0x3e4   : > { %v3638_v2 = vpop.f32.mrf.mxu2  ;;  %4166 = vmatpush.msra.mxu3 %v3429_v3  ;;  %v2851_v3 = vld [vmem:[#allocation3 + $0x30] sm:$0xff] }
 0x3e5   : > { %v3639_v53 = vadd.f32 %v3638_v2, %v7192_v61  ;;  %3976 = vmatmul.f32.gmra.mxu1 %v6477_v57  ;;  %4054 = vmatpush.msra.mxu2 %v3412_v26  ;;  %v7194_v2 = vmax.f32 %v7193_v40, 0.0  ;;  %v7196_v26 = vmax.f32 %v6253_v60, 0.0  ;;  %v6504_v40 = vld [vmem:[#allocation3 + $0xb1] sm:$0xff] }
 0x3e6   : > { %4279 = vmatpush.msra.mxu0 %v3445_v39  ;;  %4167 = vmatpush.msra.mxu3 %v3428_v55  ;;  %v2688_v55 = vld [vmem:[#allocation3 + $0x180] sm:$0xff] }
 0x3e7   : > { %v3752_v49 = vadd.f32 %v6422_v59, %v3639_v53  ;;  %v3870_v11 = vpop.f32.mrf.mxu0  ;;  %v3443_v59 = vld [vmem:[#allocation10 + $0x380] sm:$0xff]  ;;  %4055 = vmatpush.msra.mxu2 %v3411_v50 }
 0x3e8   : > { %4280 = vmatpush.msra.mxu0 %v3444_v24  ;;  %v6492_v53 = vld [vmem:[#allocation3 + $0xa9] sm:$0xff]  ;;  %4168 = vmatpush.msra.mxu3 %v3427_v47 }
 0x3e9   : > { %3688 = vmatmul.f32.gmra.mxu2 %v7194_v2  ;;  %v6487_v20 = vadd.f32 %v6450_v28, %v3752_v49  ;;  %4169 = vmatmul.f32.vlgmr.msra.gmra.mxu3 %v2851_v3 }
 0x3ea   : > { %v6489_v61 = vpop.f32.mrf.mxu1  ;;  %3917 = vmatmul.f32.gmra.mxu0 %v6314_v6  ;;  %v3466_v6 = vld [vmem:[#allocation10 + $0x438] sm:$0xff] }
 0x3eb   : > { %7195 = vst [vmem:[#allocation27_spill] sm:$0xff] %v6487_v20  ;;  %4281 = vmatpush.msra.mxu0 %v3443_v59  ;;  %v3766_v49 = vpop.f32.mrf.mxu3  ;;  %4387 = vmatpush.msra.mxu1 %v3466_v6  ;;  %v6515_v6 = vld [vmem:[#allocation3 + $0xc1] sm:$0xff]  ;;  %v3460_v20 = vld [vmem:[#allocation10 + $0x408] sm:$0xff] }
 0x3ec   : > { %v3641_v36 = vpop.f32.mrf.mxu2 }
 0x3ed   : > { %v3642_v42 = vadd.f32 %v3641_v36, %v6257_v8  ;;  %3979 = vmatmul.f32.gmra.mxu1 %v6492_v53  ;;  %v7198_v36 = vmax.f32 %v6271_v29, 0.0 }
 0x3ef   : > { %v3755_v28 = vadd.f32 %v6436_v51, %v3642_v42  ;;  %v3873_v39 = vpop.f32.mrf.mxu0  ;;  %v2852_v51 = vld [vmem:[#allocation3 + $0x38] sm:$0xff] }
 0x3f1   : > { %3691 = vmatmul.f32.gmra.mxu2 %v7196_v26  ;;  %v6500_v24 = vadd.f32 %v6466_v48, %v3755_v28  ;;  %4172 = vmatmul.f32.gmra.mxu3 %v2852_v51  ;;  %v2689_v48 = vld [vmem:[#allocation3 + $0x188] sm:$0xff] }
 0x3f2   : > { %v6502_v50 = vpop.f32.mrf.mxu1  ;;  %3920 = vmatmul.f32.gmra.mxu0 %v2688_v55  ;;  %v2853_v26 = vld [vmem:[#allocation3 + $0x48] sm:$0xff] }
 0x3f3   : > { %7197 = vst [vmem:[#allocation15_spill] sm:$0xff] %v6500_v24  ;;  %v3769_v59 = vpop.f32.mrf.mxu3  ;;  %v6610_v24 = vld [vmem:[#allocation3 + $0x6a] sm:$0xff] }
 0x3f4   : > { %v3644_v8 = vpop.f32.mrf.mxu2 }
 0x3f5   : > { %v3645_v2 = vadd.f32 %v3644_v8, %v6275_v35  ;;  %3982 = vmatmul.f32.gmra.mxu1 %v6504_v40  ;;  %v3465_v8 = vld [vmem:[#allocation10 + $0x430] sm:$0xff] }
 0x3f6   : > { %4388 = vmatpush.msra.mxu1 %v3465_v8  ;;  %v2855_v8 = vld [vmem:[#allocation3 + $0x60] sm:$0xff] }
 0x3f7   : > { %v3758_v47 = vadd.f32 %v6452_v1, %v3645_v2  ;;  %v3876_v60 = vpop.f32.mrf.mxu0 }
 0x3f9   : > { %3694 = vmatmul.f32.gmra.mxu2 %v7198_v36  ;;  %v6511_v42 = vadd.f32 %v3870_v11, %v3758_v47  ;;  %4175 = vmatmul.f32.gmra.mxu3 %v2853_v26  ;;  %v7200_v11 = vmax.f32 %v6289_v25, 0.0  ;;  %v6527_v47 = vld [vmem:[#allocation3 + $0xc9] sm:$0xff] }
 0x3fa   : > { %v6513_v3 = vpop.f32.mrf.mxu1  ;;  %3923 = vmatmul.f32.gmra.mxu0 %v2689_v48 }
 0x3fb   : > { %7199 = vst [vmem:[#allocation16_spill] sm:$0xff] %v6511_v42  ;;  %v3772_v29 = vpop.f32.mrf.mxu3  ;;  %v6606_v42 = vld [vmem:[#allocation3 + $0x121] sm:$0xff] }
 0x3fc   : > { %v3647_v28 = vpop.f32.mrf.mxu2 }
 0x3fd   : > { %v3648_v35 = vadd.f32 %v3647_v28, %v6293_v52  ;;  %3985 = vmatmul.f32.gmra.mxu1 %v6515_v6 }
 0x3ff   : > { %v3761_v1 = vadd.f32 %v6468_v0, %v3648_v35  ;;  %v3879_v55 = vpop.f32.mrf.mxu0  ;;  %v2854_v0 = vld [vmem:[#allocation3 + $0x50] sm:$0xff]  ;;  %v2786_v35 = vld [vmem:[#allocation3 + $0x1a] sm:$0xff] }
 0x401   : > { %3697 = vmatmul.f32.gmra.mxu2 %v7200_v11  ;;  %v6522_v2 = vadd.f32 %v3873_v39, %v3761_v1  ;;  %4178 = vmatmul.f32.gmra.mxu3 %v2854_v0  ;;  %v6537_v1 = vld [vmem:[#allocation3 + $0xd9] sm:$0xff]  ;;  %v2787_v0 = vld [vmem:[#allocation3 + $0x22] sm:$0xff] }
 0x402   : > { %v6524_v51 = vpop.f32.mrf.mxu1  ;;  %4282 = vmatmul.f32.vlgmr.msra.gmra.mxu0 %v6347_v32 }
 0x403   : > { %7201 = vst [vmem:[#allocation23_spill] sm:$0xff] %v6522_v2  ;;  %v3775_v25 = vpop.f32.mrf.mxu3  ;;  %v6586_v2 = vld [vmem:[#allocation3 + $0x52] sm:$0xff] }
 0x404   : > { %v3650_v52 = vpop.f32.mrf.mxu2 }
 0x405   : > { %v3651_v36 = vadd.f32 %v3650_v52, %v6309_v9  ;;  %3988 = vmatmul.f32.gmra.mxu1 %v6527_v47 }
 0x407   : > { %v3764_v48 = vadd.f32 %v6482_v4, %v3651_v36  ;;  %v3882_v28 = vpop.f32.mrf.mxu0  ;;  %v3464_v36 = vld [vmem:[#allocation10 + $0x428] sm:$0xff] }
 0x408   : > { %4389 = vmatpush.msra.mxu1 %v3464_v36  ;;  %v6550_v36 = vld [vmem:[#allocation3 + $0x32] sm:$0xff] }
 0x409   : > { %4056 = vmatmul.f32.vlgmr.msra.gmra.mxu2 %v2786_v35  ;;  %v6532_v39 = vadd.f32 %v3876_v60, %v3764_v48  ;;  %4181 = vmatmul.f32.gmra.mxu3 %v2855_v8  ;;  %v6546_v35 = vld [vmem:[#allocation3 + $0xe1] sm:$0xff] }
 0x40a   : > { %v6534_v26 = vpop.f32.mrf.mxu1  ;;  %4285 = vmatmul.f32.gmra.mxu0 %v6361_v43 }
 0x40b   : > { %7202 = vst [vmem:[#allocation29_spill] sm:$0xff] %v6532_v39  ;;  %v3778_v52 = vpop.f32.mrf.mxu3  ;;  %v6562_v39 = vld [vmem:[#allocation3 + $0x3a] sm:$0xff] }
 0x40c   : > { %v3653_v32 = vpop.f32.mrf.mxu2 }
 0x40d   : > { %v3654_v9 = vadd.f32 %v3653_v32, %v6322_v56  ;;  %3991 = vmatmul.f32.gmra.mxu1 %v6537_v1 }
 0x40f   : > { %v3767_v4 = vadd.f32 %v3766_v49, %v3654_v9  ;;  %v3885_v11 = vpop.f32.mrf.mxu0  ;;  %v2856_v49 = vld [vmem:[#allocation3 + $0x68] sm:$0xff] }
 0x411   : > { %4059 = vmatmul.f32.gmra.mxu2 %v2787_v0  ;;  %v6541_v60 = vadd.f32 %v3879_v55, %v3767_v4  ;;  %4184 = vmatmul.f32.gmra.mxu3 %v2856_v49  ;;  %v6558_v0 = vld [vmem:[#allocation3 + $0xf1] sm:$0xff] }
 0x412   : > { %v6543_v48 = vpop.f32.mrf.mxu1  ;;  %4288 = vmatmul.f32.gmra.mxu0 %v6375_v30 }
 0x413   : > { %7203 = vst [vmem:[#allocation17_spill] sm:$0xff] %v6541_v60  ;;  %v3781_v8 = vpop.f32.mrf.mxu3  ;;  %v3463_v60 = vld [vmem:[#allocation10 + $0x420] sm:$0xff] }
 0x414   : > { %v3656_v43 = vpop.f32.mrf.mxu2  ;;  %4390 = vmatpush.msra.mxu1 %v3463_v60 }
 0x415   : > { %v3657_v56 = vadd.f32 %v3656_v43, %v6333_v17  ;;  %3994 = vmatmul.f32.gmra.mxu1 %v6546_v35 }
 0x417   : > { %v3770_v32 = vadd.f32 %v3769_v59, %v3657_v56  ;;  %v3888_v9 = vpop.f32.mrf.mxu0  ;;  %v2857_v59 = vld [vmem:[#allocation3 + $0x78] sm:$0xff] }
 0x419   : > { %4062 = vmatmul.f32.gmra.mxu2 %v6550_v36  ;;  %v6553_v55 = vadd.f32 %v3882_v28, %v3770_v32  ;;  %4187 = vmatmul.f32.gmra.mxu3 %v2857_v59  ;;  %v6570_v32 = vld [vmem:[#allocation3 + $0xf9] sm:$0xff] }
 0x41a   : > { %v6555_v4 = vpop.f32.mrf.mxu1  ;;  %4291 = vmatmul.f32.gmra.mxu0 %v6389_v62 }
 0x41b   : > { %7204 = vst [vmem:[#allocation28_spill] sm:$0xff] %v6553_v55  ;;  %v3784_v49 = vpop.f32.mrf.mxu3  ;;  %v6574_v55 = vld [vmem:[#allocation3 + $0x4a] sm:$0xff] }
 0x41c   : > { %v3659_v30 = vpop.f32.mrf.mxu2 }
 0x41d   : > { %v3660_v17 = vadd.f32 %v3659_v30, %v6344_v15  ;;  %3997 = vmatmul.f32.gmra.mxu1 %v6558_v0 }
 0x41f   : > { %v3773_v43 = vadd.f32 %v3772_v29, %v3660_v17  ;;  %v3891_v56 = vpop.f32.mrf.mxu0  ;;  %v2858_v29 = vld [vmem:[#allocation3 + $0x80] sm:$0xff] }
 0x421   : > { %4065 = vmatmul.f32.gmra.mxu2 %v6562_v39  ;;  %v6565_v28 = vadd.f32 %v3885_v11, %v3773_v43  ;;  %4190 = vmatmul.f32.gmra.mxu3 %v2858_v29  ;;  %v3462_v29 = vld [vmem:[#allocation10 + $0x418] sm:$0xff] }
 0x422   : > { %v6567_v62 = vpop.f32.mrf.mxu1  ;;  %4294 = vmatmul.f32.gmra.mxu0 %v6403_v38  ;;  %4391 = vmatpush.msra.mxu1 %v3462_v29  ;;  %v6598_v29 = vld [vmem:[#allocation3 + $0x62] sm:$0xff] }
 0x423   : > { %7205 = vst [vmem:[#allocation31_spill] sm:$0xff] %v6565_v28  ;;  %v3787_v60 = vpop.f32.mrf.mxu3  ;;  %v6582_v28 = vld [vmem:[#allocation3 + $0x109] sm:$0xff] }
 0x424   : > { %v3662_v15 = vpop.f32.mrf.mxu2 }
 0x425   : > { %v3663_v30 = vadd.f32 %v3662_v15, %v6358_v63  ;;  %4000 = vmatmul.f32.gmra.mxu1 %v6570_v32 }
 0x427   : > { %v3776_v17 = vadd.f32 %v3775_v25, %v3663_v30  ;;  %v3894_v59 = vpop.f32.mrf.mxu0  ;;  %v2859_v25 = vld [vmem:[#allocation3 + $0x90] sm:$0xff] }
 0x429   : > { %4068 = vmatmul.f32.gmra.mxu2 %v6574_v55  ;;  %v6577_v11 = vadd.f32 %v3888_v9, %v3776_v17  ;;  %4193 = vmatmul.f32.gmra.mxu3 %v2859_v25 }
 0x42a   : > { %v6579_v43 = vpop.f32.mrf.mxu1  ;;  %4297 = vmatmul.f32.gmra.mxu0 %v6417_v21 }
 0x42b   : > { %7206 = vst [vmem:[#allocation18_spill] sm:$0xff] %v6577_v11  ;;  %v3790_v9 = vpop.f32.mrf.mxu3 }
 0x42c   : > { %v3665_v38 = vpop.f32.mrf.mxu2 }
 0x42d   : > { %v3666_v63 = vadd.f32 %v3665_v38, %v6372_v33  ;;  %4003 = vmatmul.f32.gmra.mxu1 %v6582_v28  ;;  %v6594_v38 = vld [vmem:[#allocation3 + $0x111] sm:$0xff] }
 0x42f   : > { %v3779_v15 = vadd.f32 %v3778_v52, %v3666_v63  ;;  %v3897_v30 = vpop.f32.mrf.mxu0  ;;  %v2860_v52 = vld [vmem:[#allocation3 + $0x98] sm:$0xff] }
 0x431   : > { %4071 = vmatmul.f32.gmra.mxu2 %v6586_v2  ;;  %v6589_v17 = vadd.f32 %v3891_v56, %v3779_v15  ;;  %4196 = vmatmul.f32.gmra.mxu3 %v2860_v52  ;;  %v3461_v52 = vld [vmem:[#allocation10 + $0x410] sm:$0xff] }
 0x432   : > { %v6591_v21 = vpop.f32.mrf.mxu1  ;;  %4300 = vmatmul.f32.gmra.mxu0 %v6431_v19  ;;  %4392 = vmatpush.msra.mxu1 %v3461_v52 }
 0x433   : > { %7207 = vst [vmem:[#allocation30_spill] sm:$0xff] %v6589_v17  ;;  %v3793_v19 = vpop.f32.mrf.mxu3 }
 0x434   : > { %v3668_v33 = vpop.f32.mrf.mxu2  ;;  %4393 = vmatpush.msra.mxu1 %v3460_v20  ;;  %v6646_v20 = vld [vmem:[#allocation3 + $0x92] sm:$0xff] }
 0x435   : > { %v3669_v25 = vadd.f32 %v3668_v33, %v6386_v46  ;;  %4006 = vmatmul.f32.gmra.mxu1 %v6594_v38 }
 0x437   : > { %v3782_v63 = vadd.f32 %v3781_v8, %v3669_v25  ;;  %v3900_v11 = vpop.f32.mrf.mxu0  ;;  %v2861_v8 = vld [vmem:[#allocation3 + $0xa8] sm:$0xff] }
 0x439   : > { %4074 = vmatmul.f32.gmra.mxu2 %v6598_v29  ;;  %v6601_v56 = vadd.f32 %v3894_v59, %v3782_v63  ;;  %4199 = vmatmul.f32.gmra.mxu3 %v2861_v8 }
 0x43a   : > { %v6603_v15 = vpop.f32.mrf.mxu1  ;;  %4303 = vmatmul.f32.gmra.mxu0 %v6445_v22 }
 0x43b   : > { %7208 = vst [vmem:[#allocation33_spill] sm:$0xff] %v6601_v56  ;;  %v6622_v56 = vld [vmem:[#allocation3 + $0x7a] sm:$0xff] }
 0x43c   : > { %v3671_v17 = vpop.f32.mrf.mxu2 }
 0x43d   : > { %v3672_v46 = vadd.f32 %v3671_v17, %v6400_v23  ;;  %4009 = vmatmul.f32.gmra.mxu1 %v6606_v42  ;;  %v6618_v23 = vld [vmem:[#allocation3 + $0x129] sm:$0xff]  ;;  %v3796_v17 = vpop.f32.mrf.mxu3 }
 0x43f   : > { %v3785_v33 = vadd.f32 %v3784_v49, %v3672_v46  ;;  %v3903_v25 = vpop.f32.mrf.mxu0  ;;  %v2862_v49 = vld [vmem:[#allocation3 + $0xb0] sm:$0xff] }
 0x441   : > { %4077 = vmatmul.f32.gmra.mxu2 %v6610_v24  ;;  %v6613_v59 = vadd.f32 %v3897_v30, %v3785_v33  ;;  %4202 = vmatmul.f32.gmra.mxu3 %v2862_v49 }
 0x442   : > { %v6615_v22 = vpop.f32.mrf.mxu1  ;;  %4306 = vmatmul.f32.gmra.mxu0 %v6461_v37 }
 0x443   : > { %7209 = vst [vmem:[#allocation19_spill] sm:$0xff] %v6613_v59  ;;  %v6630_v59 = vld [vmem:[#allocation3 + $0x139] sm:$0xff] }
 0x444   : > { %v3674_v63 = vpop.f32.mrf.mxu2 }
 0x445   : > { %v3675_v8 = vadd.f32 %v3674_v63, %v6414_v10  ;;  %4012 = vmatmul.f32.gmra.mxu1 %v6618_v23  ;;  %v2863_v63 = vld [vmem:[#allocation3 + $0xc0] sm:$0xff] }
 0x447   : > { %v3788_v46 = vadd.f32 %v3787_v60, %v3675_v8  ;;  %v3906_v52 = vpop.f32.mrf.mxu0  ;;  %v3799_v60 = vpop.f32.mrf.mxu3 }
 0x449   : > { %4080 = vmatmul.f32.gmra.mxu2 %v6622_v56  ;;  %v6625_v30 = vadd.f32 %v3900_v11, %v3788_v46  ;;  %4205 = vmatmul.f32.gmra.mxu3 %v2863_v63  ;;  %v6642_v46 = vld [vmem:[#allocation3 + $0x141] sm:$0xff] }
 0x44a   : > { %v6627_v33 = vpop.f32.mrf.mxu1  ;;  %4309 = vmatmul.f32.gmra.mxu0 %v6477_v57 }
 0x44b   : > { %7210 = vst [vmem:[#allocation32_spill] sm:$0xff] %v6625_v30 }
 0x44c   : > { %v3677_v37 = vpop.f32.mrf.mxu2 }
 0x44d   : > { %v3678_v10 = vadd.f32 %v3677_v37, %v6428_v58  ;;  %4015 = vmatmul.f32.gmra.mxu1 %v6630_v59 }
 0x44f   : > { %v3791_v8 = vadd.f32 %v3790_v9, %v3678_v10  ;;  %v3909_v49 = vpop.f32.mrf.mxu0  ;;  %v2864_v9 = vld [vmem:[#allocation3 + $0xc8] sm:$0xff]  ;;  %v3802_v30 = vpop.f32.mrf.mxu3 }
 0x451   : > { %4083 = vmatmul.f32.gmra.mxu2 %v6634_v45  ;;  %v6637_v11 = vadd.f32 %v3903_v25, %v3791_v8  ;;  %4208 = vmatmul.f32.gmra.mxu3 %v2864_v9  ;;  %v3459_v9 = vld [vmem:[#allocation10 + $0x400] sm:$0xff] }
 0x452   : > { %v6639_v57 = vpop.f32.mrf.mxu1  ;;  %4312 = vmatmul.f32.gmra.mxu0 %v6492_v53  ;;  %4394 = vmatpush.msra.mxu1 %v3459_v9 }
 0x453   : > { %7211 = vst [vmem:[#allocation20_spill] sm:$0xff] %v6637_v11  ;;  %v6654_v11 = vld [vmem:[#allocation3 + $0x151] sm:$0xff] }
 0x454   : > { %7212 = vst [vmem:[#allocation21_spill] sm:$0xff] %v6639_v57  ;;  %v3680_v58 = vpop.f32.mrf.mxu2  ;;  %v6658_v57 = vld [vmem:[#allocation3 + $0x9a] sm:$0xff] }
 0x455   : > { %v3681_v37 = vadd.f32 %v3680_v58, %v6442_v13  ;;  %4018 = vmatmul.f32.gmra.mxu1 %v6642_v46 }
 0x457   : > { %v3794_v10 = vadd.f32 %v3793_v19, %v3681_v37  ;;  %v3912_v63 = vpop.f32.mrf.mxu0  ;;  %v2865_v19 = vld [vmem:[#allocation3 + $0xd8] sm:$0xff] }
 0x459   : > { %4086 = vmatmul.f32.gmra.mxu2 %v6646_v20  ;;  %v6649_v25 = vadd.f32 %v3906_v52, %v3794_v10  ;;  %4211 = vmatmul.f32.gmra.mxu3 %v2865_v19  ;;  %v3805_v10 = vpop.f32.mrf.mxu3 }
 0x45a   : > { %v6651_v8 = vpop.f32.mrf.mxu1  ;;  %4315 = vmatmul.f32.gmra.mxu0 %v6504_v40 }
 0x45b   : > { %7213 = vst [vmem:[#allocation22_spill] sm:$0xff] %v6649_v25  ;;  %v6670_v25 = vld [vmem:[#allocation3 + $0xaa] sm:$0xff] }
 0x45c   : > { %v3683_v53 = vpop.f32.mrf.mxu2 }
 0x45d   : > { %v3684_v13 = vadd.f32 %v3683_v53, %v6458_v27  ;;  %4021 = vmatmul.f32.gmra.mxu1 %v6654_v11  ;;  %v6666_v53 = vld [vmem:[#allocation3 + $0x159] sm:$0xff] }
 0x45f   : > { %v3797_v58 = vadd.f32 %v3796_v17, %v3684_v13  ;;  %v3915_v37 = vpop.f32.mrf.mxu0  ;;  %v2866_v17 = vld [vmem:[#allocation3 + $0xe0] sm:$0xff] }
 0x461   : > { %4089 = vmatmul.f32.gmra.mxu2 %v6658_v57  ;;  %v6661_v52 = vadd.f32 %v3909_v49, %v3797_v58  ;;  %4214 = vmatmul.f32.gmra.mxu3 %v2866_v17 }
 0x462   : > { %v6663_v40 = vpop.f32.mrf.mxu1  ;;  %4318 = vmatmul.f32.gmra.mxu0 %v6515_v6 }
 0x463   : > { %7214 = vst [vmem:[#allocation25_spill] sm:$0xff] %v6661_v52  ;;  %v6678_v52 = vld [vmem:[#allocation3 + $0x169] sm:$0xff] }
 0x464   : > { %7215 = vst [vmem:[#allocation24_spill] sm:$0xff] %v6663_v40  ;;  %v3686_v27 = vpop.f32.mrf.mxu2  ;;  %v6682_v40 = vld [vmem:[#allocation3 + $0xb2] sm:$0xff] }
 0x465   : > { %v3687_v19 = vadd.f32 %v3686_v27, %v6474_v34  ;;  %4024 = vmatmul.f32.gmra.mxu1 %v6666_v53  ;;  %v3808_v34 = vpop.f32.mrf.mxu3 }
 0x467   : > { %v3800_v13 = vadd.f32 %v3799_v60, %v3687_v19  ;;  %v3918_v9 = vpop.f32.mrf.mxu0  ;;  %v2867_v60 = vld [vmem:[#allocation3 + $0xf0] sm:$0xff] }
 0x469   : > { %4092 = vmatmul.f32.gmra.mxu2 %v6670_v25  ;;  %v6673_v49 = vadd.f32 %v3912_v63, %v3800_v13  ;;  %4217 = vmatmul.f32.gmra.mxu3 %v2867_v60  ;;  %v6694_v60 = vld [vmem:[#allocation3 + $0xc2] sm:$0xff] }
 0x46a   : > { %v6675_v58 = vpop.f32.mrf.mxu1  ;;  %4321 = vmatmul.f32.gmra.mxu0 %v6527_v47 }
 0x46b   : > { %7216 = vst [vmem:[#allocation34_spill] sm:$0xff] %v6673_v49  ;;  %v6690_v49 = vld [vmem:[#allocation3 + $0x171] sm:$0xff] }
 0x46c   : > { %7217 = vst [vmem:[#allocation35_spill] sm:$0xff] %v6675_v58  ;;  %v3689_v6 = vpop.f32.mrf.mxu2 }
 0x46d   : > { %v3690_v27 = vadd.f32 %v3689_v6, %v6489_v61  ;;  %4027 = vmatmul.f32.gmra.mxu1 %v6678_v52  ;;  %v2868_v6 = vld [vmem:[#allocation3 + $0xf8] sm:$0xff] }
 0x46f   : > { %v3803_v19 = vadd.f32 %v3802_v30, %v3690_v27  ;;  %v3921_v17 = vpop.f32.mrf.mxu0  ;;  %v3811_v30 = vpop.f32.mrf.mxu3 }
 0x471   : > { %4095 = vmatmul.f32.gmra.mxu2 %v6682_v40  ;;  %v6685_v63 = vadd.f32 %v3915_v37, %v3803_v19  ;;  %4220 = vmatmul.f32.gmra.mxu3 %v2868_v6 }
 0x472   : > { %v6687_v13 = vpop.f32.mrf.mxu1  ;;  %4324 = vmatmul.f32.gmra.mxu0 %v6537_v1 }
 0x473   : > { %7218 = vst [vmem:[#allocation36_spill] sm:$0xff] %v6685_v63  ;;  %v6702_v63 = vld [vmem:[#allocation3 + $0x181] sm:$0xff] }
 0x474   : > { %v3692_v47 = vpop.f32.mrf.mxu2 }
 0x475   : > { %v3693_v61 = vadd.f32 %v3692_v47, %v6502_v50  ;;  %4030 = vmatmul.f32.gmra.mxu1 %v6690_v49  ;;  %v2869_v47 = vld [vmem:[#allocation3 + $0x108] sm:$0xff] }
 0x477   : > { %v3806_v27 = vadd.f32 %v3805_v10, %v3693_v61  ;;  %v3924_v58 = vpop.f32.mrf.mxu0  ;;  %v6706_v61 = vld [vmem:[#allocation3 + $0xca] sm:$0xff]  ;;  %v4170_v6 = vpop.f32.mrf.mxu3 }
 0x479   : > { %4098 = vmatmul.f32.gmra.mxu2 %v6694_v60  ;;  %v6697_v37 = vadd.f32 %v3918_v9, %v3806_v27  ;;  %4223 = vmatmul.f32.gmra.mxu3 %v2869_v47 }
 0x47a   : > { %v6699_v19 = vpop.f32.mrf.mxu1  ;;  %4327 = vmatmul.f32.gmra.mxu0 %v6546_v35 }
 0x47b   : > { %7219 = vst [vmem:[#allocation37_spill] sm:$0xff] %v6697_v37 }
 0x47c   : > { %7220 = vst [vmem:[#allocation38_spill] sm:$0xff] %v6699_v19  ;;  %v3695_v1 = vpop.f32.mrf.mxu2  ;;  %v6714_v19 = vld [vmem:[#allocation3 + $0x189] sm:$0xff] }
 0x47d   : > { %v3696_v50 = vadd.f32 %v3695_v1, %v6513_v3  ;;  %4033 = vmatmul.f32.gmra.mxu1 %v6702_v63 }
 0x47f   : > { %v3809_v10 = vadd.f32 %v3808_v34, %v3696_v50  ;;  %v4283_v35 = vpop.f32.mrf.mxu0  ;;  %v2870_v34 = vld [vmem:[#allocation3 + $0x110] sm:$0xff]  ;;  %v6718_v50 = vld [vmem:[#allocation3 + $0xda] sm:$0xff] }
 0x481   : > { %4101 = vmatmul.f32.gmra.mxu2 %v6706_v61  ;;  %v6709_v9 = vadd.f32 %v3921_v17, %v3809_v10  ;;  %4226 = vmatmul.f32.gmra.mxu3 %v2870_v34  ;;  %v3945_v10 = vadd.f32 %v6534_v26, %v6331_v14  ;;  %v6729_v34 = vld [vmem:[#allocation3 + $0xe2] sm:$0xff]  ;;  %v3948_v14 = vadd.f32 %v6543_v48, %v6342_v44 }
 0x482   : > { %v6711_v27 = vpop.f32.mrf.mxu1  ;;  %4330 = vmatmul.f32.gmra.mxu0 %v6558_v0  ;;  %v4173_v0 = vpop.f32.mrf.mxu3  ;;  %v3951_v44 = vadd.f32 %v6555_v4, %v6356_v5  ;;  %v3954_v5 = vadd.f32 %v6567_v62, %v6370_v7  ;;  %v3957_v7 = vadd.f32 %v6579_v43, %v6384_v41  ;;  %v2875_v62 = vld [vmem:[#allocation3 + $0x150] sm:$0xff]  ;;  %v3960_v41 = vadd.f32 %v6591_v21, %v6398_v54 }
 0x483   : > { %7221 = vst [vmem:[#allocation39_spill] sm:$0xff] %v6709_v9  ;;  %v3963_v54 = vadd.f32 %v6603_v15, %v6412_v31  ;;  %v3966_v31 = vadd.f32 %v6615_v22, %v6426_v16  ;;  %v2879_v16 = vld [vmem:[#allocation3 + $0x180] sm:$0xff] }
 0x484   : > { %v3698_v37 = vpop.f32.mrf.mxu2 }
 0x485   : > { %v3699_v3 = vadd.f32 %v3698_v37, %v6524_v51  ;;  %4036 = vmatmul.f32.gmra.mxu1 %v6714_v19 }
 0x487   : > { %v3812_v1 = vadd.f32 %v3811_v30, %v3699_v3  ;;  %v4286_v37 = vpop.f32.mrf.mxu0  ;;  %v2871_v30 = vld [vmem:[#allocation3 + $0x120] sm:$0xff] }
 0x489   : > { %4104 = vmatmul.f32.gmra.mxu2 %v6718_v50  ;;  %v6721_v17 = vadd.f32 %v3924_v58, %v3812_v1  ;;  %4229 = vmatmul.f32.gmra.mxu3 %v2871_v30 }
 0x48a   : > { %v6723_v47 = vpop.f32.mrf.mxu1  ;;  %4333 = vmatmul.f32.gmra.mxu0 %v6570_v32  ;;  %v4176_v32 = vpop.f32.mrf.mxu3 }
 0x48c   : > { %v4057_v51 = vpop.f32.mrf.mxu2 }
 0x48d   : > { %v4058_v9 = vadd.f32 %v4057_v51, %v3945_v10  ;;  %4395 = vmatmul.f32.vlgmr.msra.gmra.mxu1 %v6550_v36  ;;  %v2872_v36 = vld [vmem:[#allocation3 + $0x128] sm:$0xff]  ;;  %v6740_v51 = vld [vmem:[#allocation3 + $0xf2] sm:$0xff] }
 0x48f   : > { %v4171_v3 = vadd.f32 %v4170_v6, %v4058_v9  ;;  %v4289_v6 = vpop.f32.mrf.mxu0 }
 0x491   : > { %4107 = vmatmul.f32.gmra.mxu2 %v6729_v34  ;;  %v6732_v58 = vadd.f32 %v4283_v35, %v4171_v3  ;;  %4232 = vmatmul.f32.gmra.mxu3 %v2872_v36  ;;  %v6762_v36 = vld [vmem:[#allocation3 + $0x10a] sm:$0xff] }
 0x492   : > { %v6734_v1 = vpop.f32.mrf.mxu1  ;;  %4336 = vmatmul.f32.gmra.mxu0 %v6582_v28  ;;  %v4179_v3 = vpop.f32.mrf.mxu3 }
 0x494   : > { %v4060_v26 = vpop.f32.mrf.mxu2 }
 0x495   : > { %v4061_v10 = vadd.f32 %v4060_v26, %v3948_v14  ;;  %4398 = vmatmul.f32.gmra.mxu1 %v6562_v39  ;;  %v2873_v39 = vld [vmem:[#allocation3 + $0x138] sm:$0xff] }
 0x496   : > { %v6751_v26 = vld [vmem:[#allocation3 + $0xfa] sm:$0xff] }
 0x497   : > { %v4174_v9 = vadd.f32 %v4173_v0, %v4061_v10  ;;  %v4292_v14 = vpop.f32.mrf.mxu0 }
 0x499   : > { %4110 = vmatmul.f32.gmra.mxu2 %v6740_v51  ;;  %v6743_v35 = vadd.f32 %v4286_v37, %v4174_v9  ;;  %4235 = vmatmul.f32.gmra.mxu3 %v2873_v39  ;;  %v6773_v39 = vld [vmem:[#allocation3 + $0x112] sm:$0xff] }
 0x49a   : > { %v6745_v30 = vpop.f32.mrf.mxu1  ;;  %4339 = vmatmul.f32.gmra.mxu0 %v6594_v38  ;;  %v2874_v38 = vld [vmem:[#allocation3 + $0x140] sm:$0xff]  ;;  %v4182_v9 = vpop.f32.mrf.mxu3 }
 0x49c   : > { %v4063_v48 = vpop.f32.mrf.mxu2 }
 0x49d   : > { %v4064_v28 = vadd.f32 %v4063_v48, %v3951_v44  ;;  %4401 = vmatmul.f32.gmra.mxu1 %v6574_v55 }
 0x49f   : > { %v4177_v0 = vadd.f32 %v4176_v32, %v4064_v28  ;;  %v4295_v44 = vpop.f32.mrf.mxu0 }
 0x4a1   : > { %4113 = vmatmul.f32.gmra.mxu2 %v6751_v26  ;;  %v6754_v37 = vadd.f32 %v4289_v6, %v4177_v0  ;;  %4238 = vmatmul.f32.gmra.mxu3 %v2874_v38 }
 0x4a2   : > { %v6756_v10 = vpop.f32.mrf.mxu1  ;;  %4342 = vmatmul.f32.gmra.mxu0 %v6606_v42 }
 0x4a4   : > { %v4066_v4 = vpop.f32.mrf.mxu2 }
 0x4a5   : > { %v4067_v55 = vadd.f32 %v4066_v4, %v3954_v5  ;;  %4404 = vmatmul.f32.gmra.mxu1 %v6586_v2  ;;  %v2876_v5 = vld [vmem:[#allocation3 + $0x158] sm:$0xff] }
 0x4a7   : > { %v4180_v32 = vadd.f32 %v4179_v3, %v4067_v55  ;;  %v4298_v43 = vpop.f32.mrf.mxu0  ;;  %v6784_v55 = vld [vmem:[#allocation3 + $0x122] sm:$0xff] }
 0x4a9   : > { %4116 = vmatmul.f32.gmra.mxu2 %v6762_v36  ;;  %v6765_v6 = vadd.f32 %v4292_v14, %v4180_v32  ;;  %4241 = vmatmul.f32.gmra.mxu3 %v2875_v62  ;;  %v4185_v14 = vpop.f32.mrf.mxu3 }
 0x4aa   : > { %v6767_v48 = vpop.f32.mrf.mxu1  ;;  %4345 = vmatmul.f32.gmra.mxu0 %v6618_v23 }
 0x4ac   : > { %v4069_v42 = vpop.f32.mrf.mxu2 }
 0x4ad   : > { %v4070_v2 = vadd.f32 %v4069_v42, %v3957_v7  ;;  %4407 = vmatmul.f32.gmra.mxu1 %v6598_v29  ;;  %v6795_v42 = vld [vmem:[#allocation3 + $0x12a] sm:$0xff] }
 0x4af   : > { %v4183_v28 = vadd.f32 %v4182_v9, %v4070_v2 }
 0x4b1   : > { %4119 = vmatmul.f32.gmra.mxu2 %v6773_v39  ;;  %v6776_v3 = vadd.f32 %v4295_v44, %v4183_v28  ;;  %4244 = vmatmul.f32.gmra.mxu3 %v2876_v5  ;;  %v4301_v44 = vpop.f32.mrf.mxu0  ;;  %v6822_v5 = vld [vmem:[#allocation3 + $0x152] sm:$0xff] }
 0x4b2   : > { %v6778_v0 = vpop.f32.mrf.mxu1  ;;  %4348 = vmatmul.f32.gmra.mxu0 %v6630_v59  ;;  %v4188_v59 = vpop.f32.mrf.mxu3 }
 0x4b4   : > { %v4072_v23 = vpop.f32.mrf.mxu2 }
 0x4b5   : > { %v4073_v29 = vadd.f32 %v4072_v23, %v3960_v41  ;;  %4410 = vmatmul.f32.gmra.mxu1 %v6610_v24  ;;  %v2877_v24 = vld [vmem:[#allocation3 + $0x168] sm:$0xff] }
 0x4b7   : > { %v4186_v4 = vadd.f32 %v4185_v14, %v4073_v29 }
 0x4b9   : > { %4122 = vmatmul.f32.gmra.mxu2 %v6784_v55  ;;  %v6787_v38 = vadd.f32 %v4298_v43, %v4186_v4  ;;  %4247 = vmatmul.f32.gmra.mxu3 %v2877_v24  ;;  %v4304_v41 = vpop.f32.mrf.mxu0  ;;  %v6806_v43 = vld [vmem:[#allocation3 + $0x13a] sm:$0xff] }
 0x4ba   : > { %v6789_v32 = vpop.f32.mrf.mxu1  ;;  %4351 = vmatmul.f32.gmra.mxu0 %v6642_v46  ;;  %v4191_v28 = vpop.f32.mrf.mxu3  ;;  %v6829_v4 = vld [vmem:[#allocation3 + $0x15a] sm:$0xff] }
 0x4bc   : > { %v4075_v21 = vpop.f32.mrf.mxu2 }
 0x4bd   : > { %v4076_v9 = vadd.f32 %v4075_v21, %v3963_v54  ;;  %4413 = vmatmul.f32.gmra.mxu1 %v6622_v56  ;;  %v2878_v56 = vld [vmem:[#allocation3 + $0x170] sm:$0xff] }
 0x4be   : > { %v6836_v54 = vld [vmem:[#allocation3 + $0x16a] sm:$0xff]  ;;  %v6843_v21 = vld [vmem:[#allocation3 + $0x172] sm:$0xff] }
 0x4bf   : > { %v4189_v7 = vadd.f32 %v4188_v59, %v4076_v9  ;;  %v6849_v59 = vld [vmem:[#allocation3 + $0x182] sm:$0xff] }
 0x4c1   : > { %4125 = vmatmul.f32.gmra.mxu2 %v6795_v42  ;;  %v6798_v2 = vadd.f32 %v4301_v44, %v4189_v7  ;;  %4250 = vmatmul.f32.gmra.mxu3 %v2878_v56  ;;  %v4524_v44 = vld [vmem:[%s5159_s5] sm:$0xff] }
 0x4c2   : > { %v6800_v62 = vpop.f32.mrf.mxu1  ;;  %4354 = vmatmul.f32.gmra.mxu0 %v6654_v11  ;;  %v2880_v11 = vld [vmem:[#allocation3 + $0x188] sm:$0xff] }
 0x4c4   : > { %v4078_v15 = vpop.f32.mrf.mxu2 }
 0x4c5   : > { %v4079_v46 = vadd.f32 %v4078_v15, %v3966_v31  ;;  %4416 = vmatmul.f32.gmra.mxu1 %v6634_v45  ;;  %v6815_v45 = vld [vmem:[#allocation3 + $0x142] sm:$0xff] }
 0x4c7   : > { %v4192_v14 = vadd.f32 %v4191_v28, %v4079_v46 }
 0x4c9   : > { %4128 = vmatmul.f32.gmra.mxu2 %v6806_v43  ;;  %v6809_v23 = vadd.f32 %v4304_v41, %v4192_v14  ;;  %4253 = vmatmul.f32.gmra.mxu3 %v2879_v16 }
 0x4ca   : > { %v6811_v29 = vpop.f32.mrf.mxu1  ;;  %4357 = vmatmul.f32.gmra.mxu0 %v6666_v53 }
 0x4cc   : > { %v4081_v15 = vpop.f32.mrf.mxu2 }
 0x4cd   : > { %4419 = vmatmul.f32.gmra.mxu1 %v6646_v20  ;;  %v2881_v20 = vld [vmem:[#allocation3 + $0x198] sm:$0xff] }
 0x4d1   : > { %4131 = vmatmul.f32.gmra.mxu2 %v6815_v45  ;;  %4256 = vmatmul.f32.gmra.mxu3 %v2880_v11  ;;  %v4526_v11 = vld [vmem:[%s5159_s5 + $0x10] sm:$0xff] }
 0x4d2   : > { %v6818_v22 = vpop.f32.mrf.mxu1  ;;  %4360 = vmatmul.f32.gmra.mxu0 %v6678_v52 }
 0x4d4   : > { %v4084_v14 = vpop.f32.mrf.mxu2 }
 0x4d5   : > { %4422 = vmatmul.f32.gmra.mxu1 %v6658_v57  ;;  %v4858_v57 = vld [vmem:[#allocation2 + $0x8] sm:$0xff] }
 0x4d9   : > { %4134 = vmatmul.f32.gmra.mxu2 %v6822_v5  ;;  %4259 = vmatmul.f32.gmra.mxu3 %v2881_v20 }
 0x4da   : > { %v6825_v53 = vpop.f32.mrf.mxu1  ;;  %4363 = vmatmul.f32.gmra.mxu0 %v6690_v49 }
 0x4dd   : > { %4425 = vmatmul.f32.gmra.mxu1 %v6670_v25  ;;  %v2945_v25 = vld [vmem:[#allocation3 + $0x199] sm:$0xff] }
 0x4e1   : > { %4137 = vmatmul.f32.gmra.mxu2 %v6829_v4  ;;  %4262 = vmatmul.f32.gmra.mxu3 %v4858_v57 }
 0x4e2   : > { %v6832_v52 = vpop.f32.mrf.mxu1  ;;  %4366 = vmatmul.f32.gmra.mxu0 %v6702_v63 }
 0x4e5   : > { %4428 = vmatmul.f32.gmra.mxu1 %v6682_v40  ;;  %v2946_v40 = vld [vmem:[#allocation3 + $0x1a1] sm:$0xff] }
 0x4e9   : > { %4140 = vmatmul.f32.gmra.mxu2 %v6836_v54 }
 0x4ea   : > { %v6839_v49 = vpop.f32.mrf.mxu1  ;;  %4369 = vmatmul.f32.gmra.mxu0 %v6714_v19 }
 0x4ed   : > { %4431 = vmatmul.f32.gmra.mxu1 %v6694_v60  ;;  %v6855_v60 = vld [vmem:[#allocation3 + $0x18a] sm:$0xff] }
 0x4f1   : > { %4143 = vmatmul.f32.gmra.mxu2 %v6843_v21 }
 0x4f2   : > { %v6846_v63 = vpop.f32.mrf.mxu1  ;;  %4372 = vmatmul.f32.gmra.mxu0 %v2945_v25 }
 0x4f5   : > { %4434 = vmatmul.f32.gmra.mxu1 %v6706_v61 }
 0x4f9   : > { %4146 = vmatmul.f32.gmra.mxu2 %v6849_v59 }
 0x4fa   : > { %v6852_v19 = vpop.f32.mrf.mxu1  ;;  %4375 = vmatmul.f32.gmra.mxu0 %v2946_v40 }
 0x4fd   : > { %4437 = vmatmul.f32.gmra.mxu1 %v6718_v50 }
 0x501   : > { %4149 = vmatmul.f32.gmra.mxu2 %v6855_v60 }
 0x502   : > { %v6858_v9 = vpop.f32.mrf.mxu1 }
 0x505   : > { %4440 = vmatmul.f32.gmra.mxu1 %v6729_v34  ;;  %v4525_v34 = vld [vmem:[%s5159_s5 + $0x8] sm:$0xff] }
 0x50a   : > { %v4396_v61 = vpop.f32.mrf.mxu1 }
 0x50b   : > { %v4397_v24 = vadd.f32 %v4396_v61, %v6732_v58  ;;  %v4194_v58 = vpop.f32.mrf.mxu3  ;;  %v4087_v61 = vpop.f32.mrf.mxu2 }
 0x50d   : > { %v4492_v7 = vmul.f32 0.1, %v4397_v24  ;;  %4443 = vmatmul.f32.gmra.mxu1 %v6740_v51  ;;  %v6872_v51 = vpop.f32.mrf.mxu0  ;;  %v4527_v24 = vld [vmem:[%s5159_s5 + $0x18] sm:$0xff] }
 0x50f   : > { %v4556_v31 = vadd.f32 %v4524_v44, %v4492_v7 }
 0x511   : > { %4588 = vst [vmem:[%s6866_s18] sm:$0xff] %v4556_v31 }
 0x512   : > { %v4399_v50 = vpop.f32.mrf.mxu1 }
 0x513   : > { %v4400_v46 = vadd.f32 %v4399_v50, %v6743_v35  ;;  %v4197_v57 = vpop.f32.mrf.mxu3  ;;  %v4528_v50 = vld [vmem:[%s5159_s5 + $0x20] sm:$0xff] }
 0x515   : > { %v4493_v56 = vmul.f32 0.1, %v4400_v46  ;;  %4446 = vmatmul.f32.gmra.mxu1 %v6751_v26  ;;  %v6879_v25 = vpop.f32.mrf.mxu0 }
 0x517   : > { %v4557_v28 = vadd.f32 %v4525_v34, %v4493_v56 }
 0x519   : > { %4589 = vst [vmem:[%s6866_s18 + $0x8] sm:$0xff] %v4557_v28 }
 0x51a   : > { %v4402_v41 = vpop.f32.mrf.mxu1 }
 0x51b   : > { %v4403_v16 = vadd.f32 %v4402_v41, %v6754_v37  ;;  %v4200_v7 = vpop.f32.mrf.mxu3 }
 0x51d   : > { %v4494_v20 = vmul.f32 0.1, %v4403_v16  ;;  %4449 = vmatmul.f32.gmra.mxu1 %v6762_v36  ;;  %v6887_v46 = vpop.f32.mrf.mxu0  ;;  %v4529_v16 = vld [vmem:[%s5159_s5 + $0x28] sm:$0xff] }
 0x51f   : > { %v4558_v35 = vadd.f32 %v4526_v11, %v4494_v20 }
 0x521   : > { %4590 = vst [vmem:[%s6866_s18 + $0x10] sm:$0xff] %v4558_v35 }
 0x522   : > { %v4405_v26 = vpop.f32.mrf.mxu1 }
 0x523   : > { %v4406_v40 = vadd.f32 %v4405_v26, %v6765_v6  ;;  %v4090_v6 = vpop.f32.mrf.mxu2  ;;  %v6892_v41 = vpop.f32.mrf.mxu3 }
 0x525   : > { %v4495_v44 = vmul.f32 0.1, %v4406_v40  ;;  %4452 = vmatmul.f32.gmra.mxu1 %v6773_v39  ;;  %v4530_v40 = vld [vmem:[%s5159_s5 + $0x30] sm:$0xff] }
 0x527   : > { %v4559_v37 = vadd.f32 %v4527_v24, %v4495_v44  ;;  %v3969_v44 = vadd.f32 %v6627_v33, %v6440_v12 }
 0x529   : > { %4591 = vst [vmem:[%s6866_s18 + $0x18] sm:$0xff] %v4559_v37  ;;  %v4082_v37 = vadd.f32 %v4081_v15, %v3969_v44 }
 0x52a   : > { %v4408_v36 = vpop.f32.mrf.mxu1 }
 0x52b   : > { %v4409_v31 = vadd.f32 %v4408_v36, %v6776_v3  ;;  %v6896_v3 = vpop.f32.mrf.mxu0  ;;  %v6898_v35 = vpop.f32.mrf.mxu2 }
 0x52d   : > { %v4496_v34 = vmul.f32 0.1, %v4409_v31  ;;  %4455 = vmatmul.f32.gmra.mxu1 %v6784_v55 }
 0x52f   : > { %v4560_v56 = vadd.f32 %v4528_v50, %v4496_v34  ;;  %v4531_v34 = vld [vmem:[%s5159_s5 + $0x38] sm:$0xff] }
 0x531   : > { %4592 = vst [vmem:[%s6866_s18 + $0x20] sm:$0xff] %v4560_v56  ;;  %v4195_v56 = vadd.f32 %v4194_v58, %v4082_v37  ;;  %v4532_v58 = vld [vmem:[%s5159_s5 + $0x40] sm:$0xff] }
 0x532   : > { %v4411_v28 = vpop.f32.mrf.mxu1 }
 0x533   : > { %v4412_v39 = vadd.f32 %v4411_v28, %v6787_v38  ;;  %v6904_v38 = vpop.f32.mrf.mxu3  ;;  %v6908_v36 = vpop.f32.mrf.mxu0  ;;  %v7222_v28 = vld [vmem:[#allocation21_spill] sm:$0xff] }
 0x534   : > { %v6911_v31 = vpop.f32.mrf.mxu2  ;;  %v3972_v12 = vadd.f32 %v7222_v28, %v6456_v18 }
 0x535   : > { %v4497_v11 = vmul.f32 0.1, %v4412_v39  ;;  %4458 = vmatmul.f32.gmra.mxu1 %v6795_v42 }
 0x536   : > { %v4085_v39 = vadd.f32 %v4084_v14, %v3972_v12 }
 0x537   : > { %v4561_v20 = vadd.f32 %v4529_v16, %v4497_v11  ;;  %v4308_v16 = vadd.f32 %v6872_v51, %v4195_v56  ;;  %v7224_v56 = vld [vmem:[#allocation27_spill] sm:$0xff] }
 0x539   : > { %4593 = vst [vmem:[%s6866_s18 + $0x28] sm:$0xff] %v4561_v20 }
 0x53a   : > { %v4414_v55 = vpop.f32.mrf.mxu1 }
 0x53b   : > { %v4415_v26 = vadd.f32 %v4414_v55, %v6798_v2  ;;  %v4209_v15 = vpop.f32.mrf.mxu3  ;;  %v6920_v20 = vpop.f32.mrf.mxu0 }
 0x53c   : > { %v4099_v55 = vpop.f32.mrf.mxu2 }
 0x53d   : > { %v4498_v24 = vmul.f32 0.1, %v4415_v26  ;;  %4461 = vmatmul.f32.gmra.mxu1 %v6806_v43  ;;  %v4198_v26 = vadd.f32 %v4197_v57, %v4085_v39 }
 0x53f   : > { %v4562_v42 = vadd.f32 %v4530_v40, %v4498_v24  ;;  %v4311_v51 = vadd.f32 %v6879_v25, %v4198_v26 }
 0x541   : > { %4594 = vst [vmem:[%s6866_s18 + $0x30] sm:$0xff] %v4562_v42 }
 0x542   : > { %v4417_v50 = vpop.f32.mrf.mxu1 }
 0x543   : > { %v4418_v2 = vadd.f32 %v4417_v50, %v6809_v23  ;;  %v4212_v44 = vpop.f32.mrf.mxu3  ;;  %v4533_v50 = vld [vmem:[%s5159_s5 + $0x48] sm:$0xff] }
 0x545   : > { %v4499_v43 = vmul.f32 0.1, %v4418_v2  ;;  %4464 = vmatmul.f32.gmra.mxu1 %v6815_v45  ;;  %v7223_v45 = vld [vmem:[#allocation26_spill] sm:$0xff] }
 0x546   : > { %v3975_v18 = vadd.f32 %v6651_v8, %v7223_v45 }
 0x547   : > { %v4563_v33 = vadd.f32 %v4531_v34, %v4499_v43  ;;  %v4325_v34 = vpop.f32.mrf.mxu0  ;;  %v7225_v43 = vld [vmem:[#allocation24_spill] sm:$0xff] }
 0x548   : > { %v4088_v14 = vadd.f32 %v4087_v61, %v3975_v18  ;;  %v3978_v8 = vadd.f32 %v7225_v43, %v7224_v56 }
 0x549   : > { %4595 = vst [vmem:[%s6866_s18 + $0x38] sm:$0xff] %v4563_v33 }
 0x54a   : > { %v4420_v11 = vpop.f32.mrf.mxu1  ;;  %v4201_v2 = vadd.f32 %v4200_v7, %v4088_v14  ;;  %v4091_v61 = vadd.f32 %v4090_v6, %v3978_v8  ;;  %v4535_v14 = vld [vmem:[%s5159_s5 + $0x58] sm:$0xff] }
 0x54b   : > { %v4421_v23 = vadd.f32 %v4420_v11, %v4308_v16  ;;  %v4215_v39 = vpop.f32.mrf.mxu3  ;;  %v4534_v16 = vld [vmem:[%s5159_s5 + $0x50] sm:$0xff] }
 0x54c   : > { %v4314_v25 = vadd.f32 %v6887_v46, %v4201_v2  ;;  %v4204_v7 = vadd.f32 %v6892_v41, %v4091_v61  ;;  %v7230_v61 = vld [vmem:[#allocation38_spill] sm:$0xff] }
 0x54d   : > { %v4500_v40 = vmul.f32 0.1, %v4421_v23  ;;  %4467 = vmatmul.f32.gmra.mxu1 %v6822_v5  ;;  %v4102_v5 = vpop.f32.mrf.mxu2  ;;  %v7227_v23 = vld [vmem:[#allocation35_spill] sm:$0xff] }
 0x54e   : > { %v4317_v46 = vadd.f32 %v6896_v3, %v4204_v7 }
 0x54f   : > { %v4564_v24 = vadd.f32 %v4532_v58, %v4500_v40  ;;  %v4328_v26 = vpop.f32.mrf.mxu0 }
 0x551   : > { %4596 = vst [vmem:[%s6866_s18 + $0x40] sm:$0xff] %v4564_v24 }
 0x552   : > { %v4423_v42 = vpop.f32.mrf.mxu1 }
 0x553   : > { %v4424_v37 = vadd.f32 %v4423_v42, %v4311_v51  ;;  %v7228_v42 = vld [vmem:[#allocation16_spill] sm:$0xff] }
 0x555   : > { %v4501_v57 = vmul.f32 0.1, %v4424_v37  ;;  %4470 = vmatmul.f32.gmra.mxu1 %v6829_v4  ;;  %v7226_v4 = vld [vmem:[#allocation15_spill] sm:$0xff]  ;;  %v4105_v6 = vpop.f32.mrf.mxu2  ;;  %v3984_v37 = vadd.f32 %v6687_v13, %v7228_v42 }
 0x556   : > { %v3981_v58 = vadd.f32 %v7227_v23, %v7226_v4  ;;  %v4537_v4 = vld [vmem:[%s5159_s5 + $0x68] sm:$0xff] }
 0x557   : > { %v4565_v28 = vadd.f32 %v4533_v50, %v4501_v57  ;;  %v4331_v2 = vpop.f32.mrf.mxu0 }
 0x558   : > { %v4094_v45 = vadd.f32 %v6898_v35, %v3981_v58  ;;  %v4097_v35 = vadd.f32 %v6911_v31, %v3984_v37 }
 0x559   : > { %4597 = vst [vmem:[%s6866_s18 + $0x48] sm:$0xff] %v4565_v28 }
 0x55a   : > { %v4426_v12 = vpop.f32.mrf.mxu1  ;;  %v4207_v41 = vadd.f32 %v6904_v38, %v4094_v45  ;;  %v4536_v38 = vld [vmem:[%s5159_s5 + $0x60] sm:$0xff]  ;;  %v4210_v8 = vadd.f32 %v4209_v15, %v4097_v35  ;;  %v3010_v35 = vld [vmem:[#allocation3 + $0x1a2] sm:$0xff] }
 0x55b   : > { %v4427_v33 = vadd.f32 %v4426_v12, %v4314_v25 }
 0x55c   : > { %v4320_v3 = vadd.f32 %v6908_v36, %v4207_v41 }
 0x55d   : > { %v4502_v11 = vmul.f32 0.1, %v4427_v33  ;;  %4473 = vmatmul.f32.gmra.mxu1 %v6836_v54  ;;  %v4218_v54 = vpop.f32.mrf.mxu3  ;;  %v4108_v57 = vpop.f32.mrf.mxu2  ;;  %v4323_v33 = vadd.f32 %v6920_v20, %v4210_v8  ;;  %v7233_v8 = vld [vmem:[#allocation28_spill] sm:$0xff] }
 0x55f   : > { %v4566_v40 = vadd.f32 %v4534_v16, %v4502_v11  ;;  %v4334_v16 = vpop.f32.mrf.mxu0 }
 0x561   : > { %4598 = vst [vmem:[%s6866_s18 + $0x50] sm:$0xff] %v4566_v40 }
 0x562   : > { %v4429_v18 = vpop.f32.mrf.mxu1 }
 0x563   : > { %v4430_v24 = vadd.f32 %v4429_v18, %v4317_v46  ;;  %v3009_v18 = vld [vmem:[#allocation3 + $0x19a] sm:$0xff] }
 0x565   : > { %v4503_v51 = vmul.f32 0.1, %v4430_v24  ;;  %4476 = vmatmul.f32.gmra.mxu1 %v6843_v21  ;;  %v7229_v21 = vld [vmem:[#allocation23_spill] sm:$0xff]  ;;  %v4221_v12 = vpop.f32.mrf.mxu3  ;;  %v4111_v11 = vpop.f32.mrf.mxu2 }
 0x566   : > { %v3987_v13 = vadd.f32 %v7230_v61, %v7229_v21 }
 0x567   : > { %v4567_v50 = vadd.f32 %v4535_v14, %v4503_v51  ;;  %v4538_v14 = vld [vmem:[%s5159_s5 + $0x70] sm:$0xff]  ;;  %v4337_v51 = vpop.f32.mrf.mxu0 }
 0x568   : > { %v4100_v31 = vadd.f32 %v4099_v55, %v3987_v13 }
 0x569   : > { %4599 = vst [vmem:[%s6866_s18 + $0x58] sm:$0xff] %v4567_v50 }
 0x56a   : > { %v4432_v56 = vpop.f32.mrf.mxu1  ;;  %v4213_v15 = vadd.f32 %v4212_v44, %v4100_v31  ;;  %v4540_v31 = vld [vmem:[%s5159_s5 + $0x80] sm:$0xff] }
 0x56b   : > { %v4433_v43 = vadd.f32 %v4432_v56, %v4320_v3 }
 0x56c   : > { %v4326_v55 = vadd.f32 %v4325_v34, %v4213_v15 }
 0x56d   : > { %v4504_v28 = vmul.f32 0.1, %v4433_v43  ;;  %4479 = vmatmul.f32.gmra.mxu1 %v6849_v59  ;;  %v7231_v59 = vld [vmem:[#allocation29_spill] sm:$0xff]  ;;  %v4224_v46 = vpop.f32.mrf.mxu3  ;;  %v4114_v42 = vpop.f32.mrf.mxu2  ;;  %v4539_v43 = vld [vmem:[%s5159_s5 + $0x78] sm:$0xff] }
 0x56e   : > { %v3990_v58 = vadd.f32 %v6711_v27, %v7231_v59 }
 0x56f   : > { %v4568_v25 = vadd.f32 %v4536_v38, %v4504_v28  ;;  %v3996_v28 = vadd.f32 %v6734_v1, %v7233_v8  ;;  %v4340_v21 = vpop.f32.mrf.mxu0 }
 0x570   : > { %v4103_v45 = vadd.f32 %v4102_v5, %v3990_v58 }
 0x571   : > { %4600 = vst [vmem:[%s6866_s18 + $0x60] sm:$0xff] %v4568_v25 }
 0x572   : > { %v4435_v36 = vpop.f32.mrf.mxu1  ;;  %v4216_v41 = vadd.f32 %v4215_v39, %v4103_v45 }
 0x573   : > { %v4436_v7 = vadd.f32 %v4435_v36, %v4323_v33 }
 0x574   : > { %v4329_v5 = vadd.f32 %v4328_v26, %v4216_v41 }
 0x575   : > { %v4505_v23 = vmul.f32 0.1, %v4436_v7  ;;  %4482 = vmatmul.f32.gmra.mxu1 %v6855_v60  ;;  %v7232_v60 = vld [vmem:[#allocation17_spill] sm:$0xff]  ;;  %v4227_v56 = vpop.f32.mrf.mxu3  ;;  %v4117_v61 = vpop.f32.mrf.mxu2 }
 0x576   : > { %v3993_v37 = vadd.f32 %v6723_v47, %v7232_v60  ;;  %v4542_v60 = vld [vmem:[%s5159_s5 + $0x90] sm:$0xff] }
 0x577   : > { %v4569_v40 = vadd.f32 %v4537_v4, %v4505_v23  ;;  %v4343_v23 = vpop.f32.mrf.mxu0 }
 0x578   : > { %v4106_v50 = vadd.f32 %v4105_v6, %v3993_v37  ;;  %v4109_v6 = vadd.f32 %v4108_v57, %v3996_v28  ;;  %v7237_v28 = vld [vmem:[#allocation33_spill] sm:$0xff] }
 0x579   : > { %4601 = vst [vmem:[%s6866_s18 + $0x68] sm:$0xff] %v4569_v40  ;;  %v4541_v40 = vld [vmem:[%s5159_s5 + $0x88] sm:$0xff] }
 0x57a   : > { %v4438_v20 = vpop.f32.mrf.mxu1  ;;  %v4219_v38 = vadd.f32 %v4218_v54, %v4106_v50  ;;  %v4222_v33 = vadd.f32 %v4221_v12, %v4109_v6  ;;  %v7234_v54 = vld [vmem:[#allocation31_spill] sm:$0xff]  ;;  %v7236_v50 = vld [vmem:[#allocation30_spill] sm:$0xff] }
 0x57b   : > { %v4439_v24 = vadd.f32 %v4438_v20, %v4326_v55  ;;  %v3999_v4 = vadd.f32 %v6745_v30, %v7234_v54  ;;  %v7235_v20 = vld [vmem:[#allocation18_spill] sm:$0xff] }
 0x57c   : > { %v4332_v13 = vadd.f32 %v4331_v2, %v4219_v38  ;;  %v4335_v59 = vadd.f32 %v4334_v16, %v4222_v33  ;;  %v4002_v12 = vadd.f32 %v6756_v10, %v7235_v20  ;;  %v7238_v33 = vld [vmem:[#allocation19_spill] sm:$0xff] }
 0x57d   : > { %v4506_v44 = vmul.f32 0.1, %v4439_v24  ;;  %4485 = vmatmul.f32.gmra.mxu1 %v3009_v18  ;;  %v4230_v7 = vpop.f32.mrf.mxu3  ;;  %v4112_v1 = vadd.f32 %v4111_v11, %v3999_v4  ;;  %v4120_v58 = vpop.f32.mrf.mxu2 }
 0x57e   : > { %v4115_v30 = vadd.f32 %v4114_v42, %v4002_v12 }
 0x57f   : > { %v4570_v27 = vadd.f32 %v4538_v14, %v4506_v44  ;;  %v4225_v45 = vadd.f32 %v4224_v46, %v4112_v1  ;;  %v4346_v41 = vpop.f32.mrf.mxu0  ;;  %v4005_v46 = vadd.f32 %v6767_v48, %v7236_v50 }
 0x580   : > { %v4228_v37 = vadd.f32 %v4227_v56, %v4115_v30  ;;  %v4008_v56 = vadd.f32 %v6778_v0, %v7237_v28 }
 0x581   : > { %4602 = vst [vmem:[%s6866_s18 + $0x70] sm:$0xff] %v4570_v27  ;;  %v4338_v14 = vadd.f32 %v4337_v51, %v4225_v45  ;;  %v4118_v10 = vadd.f32 %v4117_v61, %v4005_v46 }
 0x582   : > { %v4441_v34 = vpop.f32.mrf.mxu1  ;;  %v4121_v48 = vadd.f32 %v4120_v58, %v4008_v56  ;;  %v4548_v56 = vld [vmem:[%s5159_s5 + $0xc0] sm:$0xff] }
 0x583   : > { %v4442_v3 = vadd.f32 %v4441_v34, %v4329_v5  ;;  %v4341_v34 = vadd.f32 %v4340_v21, %v4228_v37 }
 0x585   : > { %v4507_v39 = vmul.f32 0.1, %v4442_v3  ;;  %4488 = vmatmul.f32.gmra.mxu1 %v3010_v35  ;;  %v4233_v24 = vpop.f32.mrf.mxu3  ;;  %v4123_v44 = vpop.f32.mrf.mxu2  ;;  %v4543_v3 = vld [vmem:[%s5159_s5 + $0x98] sm:$0xff] }
 0x587   : > { %v4571_v47 = vadd.f32 %v4539_v43, %v4507_v39  ;;  %v4231_v43 = vadd.f32 %v4230_v7, %v4118_v10  ;;  %v4349_v38 = vpop.f32.mrf.mxu0 }
 0x589   : > { %4603 = vst [vmem:[%s6866_s18 + $0x78] sm:$0xff] %v4571_v47  ;;  %v4344_v6 = vadd.f32 %v4343_v23, %v4231_v43 }
 0x58a   : > { %v4444_v26 = vpop.f32.mrf.mxu1 }
 0x58b   : > { %v4445_v25 = vadd.f32 %v4444_v26, %v4332_v13  ;;  %v4544_v26 = vld [vmem:[%s5159_s5 + $0xa0] sm:$0xff] }
 0x58d   : > { %v4508_v36 = vmul.f32 0.1, %v4445_v25  ;;  %v4236_v35 = vpop.f32.mrf.mxu3  ;;  %v4126_v8 = vpop.f32.mrf.mxu2  ;;  %v4234_v25 = vadd.f32 %v4233_v24, %v4121_v48 }
 0x58f   : > { %v4572_v15 = vadd.f32 %v4540_v31, %v4508_v36  ;;  %v4011_v36 = vadd.f32 %v6789_v32, %v7238_v33  ;;  %v4352_v7 = vpop.f32.mrf.mxu0 }
 0x591   : > { %4604 = vst [vmem:[%s6866_s18 + $0x80] sm:$0xff] %v4572_v15  ;;  %v4124_v0 = vadd.f32 %v4123_v44, %v4011_v36  ;;  %v4347_v15 = vadd.f32 %v4346_v41, %v4234_v25 }
 0x592   : > { %v4447_v57 = vpop.f32.mrf.mxu1 }
 0x593   : > { %v4448_v2 = vadd.f32 %v4447_v57, %v4335_v59  ;;  %v4545_v59 = vld [vmem:[%s5159_s5 + $0xa8] sm:$0xff]  ;;  %v4237_v58 = vadd.f32 %v4236_v35, %v4124_v0  ;;  %v7243_v0 = vld [vmem:[#allocation34_spill] sm:$0xff] }
 0x595   : > { %v4509_v55 = vmul.f32 0.1, %v4448_v2  ;;  %v4239_v13 = vpop.f32.mrf.mxu3  ;;  %v4129_v4 = vpop.f32.mrf.mxu2  ;;  %v4350_v12 = vadd.f32 %v4349_v38, %v4237_v58 }
 0x597   : > { %v4573_v18 = vadd.f32 %v4541_v40, %v4509_v55  ;;  %v7239_v40 = vld [vmem:[#allocation32_spill] sm:$0xff]  ;;  %v4355_v20 = vpop.f32.mrf.mxu0 }
 0x598   : > { %v4014_v45 = vadd.f32 %v6800_v62, %v7239_v40  ;;  %v4550_v40 = vld [vmem:[%s5159_s5 + $0xd0] sm:$0xff] }
 0x599   : > { %4605 = vst [vmem:[%s6866_s18 + $0x88] sm:$0xff] %v4573_v18 }
 0x59a   : > { %v4450_v11 = vpop.f32.mrf.mxu1  ;;  %v4127_v32 = vadd.f32 %v4126_v8, %v4014_v45 }
 0x59b   : > { %v4451_v16 = vadd.f32 %v4450_v11, %v4338_v14  ;;  %v4546_v14 = vld [vmem:[%s5159_s5 + $0xb0] sm:$0xff] }
 0x59c   : > { %v4240_v11 = vadd.f32 %v4239_v13, %v4127_v32 }
 0x59d   : > { %v4510_v27 = vmul.f32 0.1, %v4451_v16  ;;  %v4242_v2 = vpop.f32.mrf.mxu3  ;;  %v4132_v18 = vpop.f32.mrf.mxu2  ;;  %v7240_v16 = vld [vmem:[#allocation20_spill] sm:$0xff] }
 0x59e   : > { %v4017_v44 = vadd.f32 %v6811_v29, %v7240_v16  ;;  %v4551_v16 = vld [vmem:[%s5159_s5 + $0xd8] sm:$0xff] }
 0x59f   : > { %v4574_v5 = vadd.f32 %v4542_v60, %v4510_v27  ;;  %v4353_v27 = vadd.f32 %v4352_v7, %v4240_v11  ;;  %v4358_v46 = vpop.f32.mrf.mxu0  ;;  %v4549_v7 = vld [vmem:[%s5159_s5 + $0xc8] sm:$0xff] }
 0x5a0   : > { %v4130_v62 = vadd.f32 %v4129_v4, %v4017_v44 }
 0x5a1   : > { %4606 = vst [vmem:[%s6866_s18 + $0x90] sm:$0xff] %v4574_v5 }
 0x5a2   : > { %v4453_v42 = vpop.f32.mrf.mxu1  ;;  %v4243_v35 = vadd.f32 %v4242_v2, %v4130_v62 }
 0x5a3   : > { %v4454_v51 = vadd.f32 %v4453_v42, %v4341_v34  ;;  %v4547_v34 = vld [vmem:[%s5159_s5 + $0xb8] sm:$0xff] }
 0x5a4   : > { %v4356_v38 = vadd.f32 %v4355_v20, %v4243_v35  ;;  %v7244_v20 = vld [vmem:[#allocation36_spill] sm:$0xff] }
 0x5a5   : > { %v4511_v39 = vmul.f32 0.1, %v4454_v51  ;;  %v4245_v37 = vpop.f32.mrf.mxu3  ;;  %v4135_v10 = vpop.f32.mrf.mxu2  ;;  %v7241_v51 = vld [vmem:[#allocation22_spill] sm:$0xff] }
 0x5a7   : > { %v4575_v47 = vadd.f32 %v4543_v3, %v4511_v39  ;;  %v4020_v3 = vadd.f32 %v6818_v22, %v7241_v51  ;;  %v4361_v48 = vpop.f32.mrf.mxu0 }
 0x5a9   : > { %4607 = vst [vmem:[%s6866_s18 + $0x98] sm:$0xff] %v4575_v47  ;;  %v4133_v29 = vadd.f32 %v4132_v18, %v4020_v3 }
 0x5aa   : > { %v4456_v61 = vpop.f32.mrf.mxu1 }
 0x5ab   : > { %v4457_v21 = vadd.f32 %v4456_v61, %v4344_v6  ;;  %v4246_v47 = vadd.f32 %v4245_v37, %v4133_v29  ;;  %v7245_v37 = vld [vmem:[#allocation37_spill] sm:$0xff] }
 0x5ac   : > { %v4032_v62 = vadd.f32 %v6846_v63, %v7245_v37 }
 0x5ad   : > { %v4512_v31 = vmul.f32 0.1, %v4457_v21  ;;  %v4248_v39 = vpop.f32.mrf.mxu3  ;;  %v4138_v61 = vpop.f32.mrf.mxu2  ;;  %v7242_v21 = vld [vmem:[#allocation25_spill] sm:$0xff]  ;;  %v4359_v25 = vadd.f32 %v4358_v46, %v4246_v47 }
 0x5ae   : > { %v4023_v13 = vadd.f32 %v6825_v53, %v7242_v21 }
 0x5af   : > { %v4576_v54 = vadd.f32 %v4544_v26, %v4512_v31 }
 0x5b0   : > { %v4136_v22 = vadd.f32 %v4135_v10, %v4023_v13  ;;  %v4038_v13 = vadd.f32 %v6858_v9, %v6721_v17 }
 0x5b1   : > { %4608 = vst [vmem:[%s6866_s18 + $0xa0] sm:$0xff] %v4576_v54 }
 0x5b2   : > { %v4459_v1 = vpop.f32.mrf.mxu1  ;;  %v4249_v54 = vadd.f32 %v4248_v39, %v4136_v22 }
 0x5b3   : > { %v4460_v23 = vadd.f32 %v4459_v1, %v4347_v15  ;;  %v4026_v15 = vadd.f32 %v6832_v52, %v7243_v0  ;;  %v4364_v1 = vpop.f32.mrf.mxu0 }
 0x5b4   : > { %v4362_v58 = vadd.f32 %v4361_v48, %v4249_v54  ;;  %v4553_v48 = vld [vmem:[%s5159_s5 + $0xe8] sm:$0xff] }
 0x5b5   : > { %v4513_v57 = vmul.f32 0.1, %v4460_v23  ;;  %v4251_v36 = vpop.f32.mrf.mxu3  ;;  %v4139_v53 = vadd.f32 %v4138_v61, %v4026_v15 }
 0x5b7   : > { %v4577_v55 = vadd.f32 %v4545_v59, %v4513_v57  ;;  %v4141_v59 = vpop.f32.mrf.mxu2  ;;  %v4252_v45 = vadd.f32 %v4251_v36, %v4139_v53  ;;  %v4554_v36 = vld [vmem:[%s5159_s5 + $0xf0] sm:$0xff] }
 0x5b9   : > { %4609 = vst [vmem:[%s6866_s18 + $0xa8] sm:$0xff] %v4577_v55 }
 0x5ba   : > { %v4462_v24 = vpop.f32.mrf.mxu1 }
 0x5bb   : > { %v4463_v30 = vadd.f32 %v4462_v24, %v4350_v12  ;;  %v4029_v12 = vadd.f32 %v6839_v49, %v7244_v20  ;;  %v4367_v52 = vpop.f32.mrf.mxu0 }
 0x5bd   : > { %v4514_v41 = vmul.f32 0.1, %v4463_v30  ;;  %v4254_v32 = vpop.f32.mrf.mxu3  ;;  %v4142_v24 = vadd.f32 %v4141_v59, %v4029_v12  ;;  %v4365_v30 = vadd.f32 %v4364_v1, %v4252_v45  ;;  %v4555_v1 = vld [vmem:[%s5159_s5 + $0xf8] sm:$0xff] }
 0x5bf   : > { %v4578_v60 = vadd.f32 %v4546_v14, %v4514_v41  ;;  %v4144_v14 = vpop.f32.mrf.mxu2  ;;  %v4255_v44 = vadd.f32 %v4254_v32, %v4142_v24 }
 0x5c0   : > { %v4145_v49 = vadd.f32 %v4144_v14, %v4032_v62 }
 0x5c1   : > { %4610 = vst [vmem:[%s6866_s18 + $0xb0] sm:$0xff] %v4578_v60  ;;  %v4368_v46 = vadd.f32 %v4367_v52, %v4255_v44 }
 0x5c2   : > { %v4465_v50 = vpop.f32.mrf.mxu1 }
 0x5c3   : > { %v4466_v5 = vadd.f32 %v4465_v50, %v4353_v27 }
 0x5c5   : > { %v4515_v42 = vmul.f32 0.1, %v4466_v5  ;;  %v4257_v50 = vpop.f32.mrf.mxu3 }
 0x5c6   : > { %v4258_v51 = vadd.f32 %v4257_v50, %v4145_v49 }
 0x5c7   : > { %v4579_v43 = vadd.f32 %v4547_v34, %v4515_v42  ;;  %v4370_v34 = vpop.f32.mrf.mxu0  ;;  %v4147_v35 = vpop.f32.mrf.mxu2  ;;  %v4552_v42 = vld [vmem:[%s5159_s5 + $0xe0] sm:$0xff] }
 0x5c9   : > { %4611 = vst [vmem:[%s6866_s18 + $0xb8] sm:$0xff] %v4579_v43  ;;  %v7246_v43 = vld [vmem:[#allocation39_spill] sm:$0xff] }
 0x5ca   : > { %v4468_v8 = vpop.f32.mrf.mxu1  ;;  %v4035_v29 = vadd.f32 %v6852_v19, %v7246_v43 }
 0x5cb   : > { %v4469_v28 = vadd.f32 %v4468_v8, %v4356_v38  ;;  %v4371_v8 = vadd.f32 %v4370_v34, %v4258_v51 }
 0x5cc   : > { %v4148_v39 = vadd.f32 %v4147_v35, %v4035_v29 }
 0x5cd   : > { %v4516_v6 = vmul.f32 0.1, %v4469_v28  ;;  %v4260_v63 = vpop.f32.mrf.mxu3 }
 0x5cf   : > { %v4580_v26 = vadd.f32 %v4548_v56, %v4516_v6  ;;  %v4373_v47 = vpop.f32.mrf.mxu0  ;;  %v4261_v6 = vadd.f32 %v4260_v63, %v4148_v39  ;;  %v4150_v21 = vpop.f32.mrf.mxu2 }
 0x5d0   : > { %v4151_v22 = vadd.f32 %v4150_v21, %v4038_v13 }
 0x5d1   : > { %4612 = vst [vmem:[%s6866_s18 + $0xc0] sm:$0xff] %v4580_v26  ;;  %v4374_v26 = vadd.f32 %v4373_v47, %v4261_v6 }
 0x5d2   : > { %v4471_v31 = vpop.f32.mrf.mxu1 }
 0x5d3   : > { %v4472_v33 = vadd.f32 %v4471_v31, %v4359_v25 }
 0x5d5   : > { %v4517_v4 = vmul.f32 0.1, %v4472_v33  ;;  %v4263_v25 = vpop.f32.mrf.mxu3 }
 0x5d7   : > { %v4581_v23 = vadd.f32 %v4549_v7, %v4517_v4  ;;  %v4264_v7 = vadd.f32 %v4263_v25, %v4151_v22  ;;  %v4376_v4 = vpop.f32.mrf.mxu0 }
 0x5d9   : > { %4613 = vst [vmem:[%s6866_s18 + $0xc8] sm:$0xff] %v4581_v23  ;;  %v4377_v17 = vadd.f32 %v4376_v4, %v4264_v7 }
 0x5da   : > { %v4474_v57 = vpop.f32.mrf.mxu1 }
 0x5db   : > { %v4475_v2 = vadd.f32 %v4474_v57, %v4362_v58 }
 0x5dd   : > { %v4518_v55 = vmul.f32 0.1, %v4475_v2 }
 0x5df   : > { %v4582_v18 = vadd.f32 %v4550_v40, %v4518_v55 }
 0x5e1   : > { %4614 = vst [vmem:[%s6866_s18 + $0xd0] sm:$0xff] %v4582_v18 }
 0x5e2   : > { %v4477_v11 = vpop.f32.mrf.mxu1 }
 0x5e3   : > { %v4478_v41 = vadd.f32 %v4477_v11, %v4365_v30 }
 0x5e5   : > { %v4519_v60 = vmul.f32 0.1, %v4478_v41 }
 0x5e7   : > { %v4583_v27 = vadd.f32 %v4551_v16, %v4519_v60 }
 0x5e9   : > { %4615 = vst [vmem:[%s6866_s18 + $0xd8] sm:$0xff] %v4583_v27 }
 0x5ea   : > { %v4480_v5 = vpop.f32.mrf.mxu1 }
 0x5eb   : > { %v4481_v10 = vadd.f32 %v4480_v5, %v4368_v46 }
 0x5ed   : > { %v4520_v3 = vmul.f32 0.1, %v4481_v10 }
 0x5ef   : > { %v4584_v38 = vadd.f32 %v4552_v42, %v4520_v3 }
 0x5f1   : > { %4616 = vst [vmem:[%s6866_s18 + $0xe0] sm:$0xff] %v4584_v38 }
 0x5f2   : > { %v4483_v28 = vpop.f32.mrf.mxu1 }
 0x5f3   : > { %v4484_v56 = vadd.f32 %v4483_v28, %v4371_v8 }
 0x5f5   : > { %v4521_v61 = vmul.f32 0.1, %v4484_v56 }
 0x5f7   : > { %v4585_v19 = vadd.f32 %v4553_v48, %v4521_v61 }
 0x5f9   : > { %4617 = vst [vmem:[%s6866_s18 + $0xe8] sm:$0xff] %v4585_v19 }
 0x5fa   : > { %v4486_v31 = vpop.f32.mrf.mxu1 }
 0x5fb   : > { %v4487_v33 = vadd.f32 %v4486_v31, %v4374_v26 }
 0x5fd   : > { %v4522_v54 = vmul.f32 0.1, %v4487_v33 }
 0x5ff   : > { %v4586_v0 = vadd.f32 %v4554_v36, %v4522_v54 }
 0x601   : > { %4618 = vst [vmem:[%s6866_s18 + $0xf0] sm:$0xff] %v4586_v0 }
 0x602   : > { %v4489_v9 = vpop.f32.mrf.mxu1 }
 0x603   : > { %v4490_v15 = vadd.f32 %v4489_v9, %v4377_v17 }
 0x605   : > { %v4523_v23 = vmul.f32 0.1, %v4490_v15 }
 0x607   : > { %v4587_v59 = vadd.f32 %v4555_v1, %v4523_v23 }
 0x609   : > { %4619 = vst [vmem:[%s6866_s18 + $0xf8] sm:$0xff] %v4587_v59 }
 0x60a   : > { %4976 = shalt.err (!%p4973_p10)
}
 0x60b   : > { %s5026_s11 = smov 128   ;;  %s5027_s24 = smov 8  }
 0x60c   : > { %4790 = dma.vmem_to_hbm [thread:$0]  (%p5120_p3), %s4634_s27, 4096, %s4636_s28, %s4621_s16, %s5026_s11, %s5026_s11, %s5027_s24  }
 0x60d PF: > { %s4650_s25 = sand.u32 1, %s5007_s12   ;;  %p7247_p12 = scmp.ge.s32.totalorder %s5019_s15, 2 }
 0x60e   : > { %s4651_s5 = scalar_lea.sflag [#allocation7], %s4650_s25 }
 0x60f   : > { %p4804_p13 = pnand %p7247_p12, %p5083_p6 }
 0x611   : > { %p4805_p0 = pneg %p4804_p13 }
 0x613   : > { %5002 = dma.done.wait (%p4805_p0), %s4651_s5, 4096  }
 0x614   : > { %5004 = vsyncadd (%p4805_p0), %s4651_s5, 4294963200  ;;  %p17_p5 = scmp.ge.s32.totalorder %s5110_s6, 4   ;;  %s7248_s12 = smov %s5011_s13 }
 0x615   : > { %s7249_s13 = smov %s5015_s14  ;;  %s7250_s14 = smov %s5126_s10 }
 0x616   : > { %s7251_s15 = smov %s5110_s6  ;;  %19 = sbr.rel (!%p17_p5) target bundleno = 6 (0x6), region = 91 }
 0x61b   :  { %4657 = vsyncpa [#allocation6], 1 }
 0x61c   :  { %4659 = vsyncpa [#allocation6 + $0x1], 1 }
 0x61d   :  { %4660 = vsyncpa [#allocation9], 1 }
 0x61e   :  { %4661 = vsyncpa [#allocation7], 1 }
 0x61f   :  { %4663 = vsyncpa [#allocation7 + $0x1], 1 }

</bundles_post_ra>
